<compile_context>
chip_gen: v7x
topology: tpu7x:2x2x1
jax: 0.10.0
libtpu: 0.0.40
codegen_flags: <defaults>
</compile_context>

<pallas_src>
import math

import jax
import jax.numpy as jnp
from jax import lax
from jax.experimental import pallas as pl
from jax.experimental.pallas import tpu as pltpu

NEG_INF = -1e9
EPS = 1e-6
_VMEM_LIMIT = 32 * 1024 * 1024   # explicit scoped-VMEM budget; well under v7x's 64 MiB/TC

ENC_KEYS = ("ln1_g", "ln1_b", "wqkv", "bqkv", "wo", "bo",
            "ln2_g", "ln2_b", "w1", "b1", "w2", "b2")
DEC_KEYS = ("ln1_g", "ln1_b", "wqkv", "bqkv", "wo_self", "bo_self",
            "ln2_g", "ln2_b", "wq", "bq", "wkv", "bkv", "wo_cross", "bo_cross",
            "ln3_g", "ln3_b", "w1", "b1", "w2", "b2")


# ----------------------------- in-kernel math -------------------------------

def _ln(x, g, b):
    # Matches the spec's LayerNorm exactly: weight*(x-mean)/(std+eps)+bias,
    # with torch.std's unbiased (N-1) estimator.  All statistics in f32.
    d = x.shape[-1]
    mu = jnp.mean(x, axis=-1, keepdims=True)
    diff = x - mu
    var = jnp.sum(diff * diff, axis=-1, keepdims=True) * (1.0 / (d - 1))
    return g * diff / (jnp.sqrt(var) + EPS) + b


def _linear(x, w, b):
    """x (R, Din) f32, w (Din, Dout) bf16, b (1, Dout) f32 -> (R, Dout) f32."""
    y = jnp.dot(x.astype(w.dtype), w, preferred_element_type=jnp.float32)
    return y + b


def _head_linear(x, w, b, num_heads):
    """Batched per-head projection: x (R, Din) f32, w (H, Din, dout) bf16,
    b (H, 1, dout) f32  ->  (H, R, dout) f32.  One batched MXU dot over heads."""
    xb = jnp.broadcast_to(x.astype(w.dtype)[None], (num_heads,) + x.shape)
    y = lax.dot_general(xb, w, (((2,), (1,)), ((0,), (0,))),
                        preferred_element_type=jnp.float32)
    return y + b


def _attend(q, k, v, mask3, wo, bo, scale):
    """q (H,T,dk), k/v (H,S,dk) f32; mask3 broadcastable to (H,T,S) additive f32;
    wo (H,dk,D) bf16, bo (1,D) f32.  Returns attention + out-projection (T, D) f32."""
    qs = (q * scale).astype(jnp.bfloat16)          # fold 1/sqrt(dk) into q (v5e VALU)
    s = lax.dot_general(qs, k.astype(jnp.bfloat16),
                        (((2,), (2,)), ((0,), (0,))),
                        preferred_element_type=jnp.float32)      # (H, T, S)
    s = s + mask3
    s = s - jnp.max(s, axis=-1, keepdims=True)                   # stable softmax (f32)
    p = jnp.exp(s)
    p = p * pl.reciprocal(jnp.sum(p, axis=-1, keepdims=True), approx=True)
    o = lax.dot_general(p.astype(jnp.bfloat16), v.astype(jnp.bfloat16),
                        (((2,), (1,)), ((0,), (0,))),
                        preferred_element_type=jnp.float32)      # (H, T, dk)
    op = lax.dot_general(o.astype(jnp.bfloat16), wo,
                         (((2,), (1,)), ((0,), (0,))),
                         preferred_element_type=jnp.float32)     # (H, T, D)
    return jnp.sum(op, axis=0) + bo                              # (T, D)


def _ffn(x, g, bn, w1, b1, w2, b2):
    """x + relu(LN(x) @ W1 + b1) @ W2 + b2, all intermediates in VMEM/registers."""
    xn = _ln(x, g, bn)
    h = jnp.maximum(_linear(xn, w1, b1), 0.0)
    return x + _linear(h, w2, b2)


def _make_kernel(num_enc, num_dec, num_heads, d_model):
    dk = d_model // num_heads
    scale = 1.0 / math.sqrt(dk)

    def kernel(*refs):
        it = iter(refs)
        x_src_ref = next(it); x_tgt_ref = next(it)
        src_add_ref = next(it); tgt_add_ref = next(it)
        enc = {k: next(it) for k in ENC_KEYS}
        dec = {k: next(it) for k in DEC_KEYS}
        en_g = next(it); en_b = next(it); dn_g = next(it); dn_b = next(it)
        out_ref = next(it)

        src_m3 = src_add_ref[...]   # (1, 1, S) additive, broadcasts over (H, T, S)
        tgt_m3 = tgt_add_ref[...]   # (1, T, T) additive, broadcasts over (H, T, T)

        # -------- encoder (one batch element, all layers, all in VMEM) --------
        x = x_src_ref[0]            # (S, D) f32 residual stream
        for l in range(num_enc):
            xn = _ln(x, enc["ln1_g"][l], enc["ln1_b"][l])
            qkv = _head_linear(xn, enc["wqkv"][l], enc["bqkv"][l], num_heads)  # (H,S,3dk)
            q, k, v = qkv[:, :, :dk], qkv[:, :, dk:2 * dk], qkv[:, :, 2 * dk:]
            x = x + _attend(q, k, v, src_m3, enc["wo"][l], enc["bo"][l], scale)
            x = _ffn(x, enc["ln2_g"][l], enc["ln2_b"][l],
                     enc["w1"][l], enc["b1"][l], enc["w2"][l], enc["b2"][l])
        mem = _ln(x, en_g[...], en_b[...])     # (S, D) encoder memory (stays in VMEM)

        # -------- decoder --------
        y = x_tgt_ref[0]            # (T, D) f32
        for l in range(num_dec):
            # masked self-attention
            yn = _ln(y, dec["ln1_g"][l], dec["ln1_b"][l])
            qkv = _head_linear(yn, dec["wqkv"][l], dec["bqkv"][l], num_heads)
            q, k, v = qkv[:, :, :dk], qkv[:, :, dk:2 * dk], qkv[:, :, 2 * dk:]
            y = y + _attend(q, k, v, tgt_m3, dec["wo_self"][l], dec["bo_self"][l], scale)
            # cross-attention over encoder memory
            yn = _ln(y, dec["ln2_g"][l], dec["ln2_b"][l])
            q = _head_linear(yn, dec["wq"][l], dec["bq"][l], num_heads)        # (H,T,dk)
            kv = _head_linear(mem, dec["wkv"][l], dec["bkv"][l], num_heads)    # (H,S,2dk)
            k, v = kv[:, :, :dk], kv[:, :, dk:]
            y = y + _attend(q, k, v, src_m3, dec["wo_cross"][l], dec["bo_cross"][l], scale)
            # position-wise feed-forward
            y = _ffn(y, dec["ln3_g"][l], dec["ln3_b"][l],
                     dec["w1"][l], dec["b1"][l], dec["w2"][l], dec["b2"][l])

        out_ref[0] = _ln(y, dn_g[...], dn_b[...])

    return kernel


# ------------------------------ kernel wrapper -------------------------------

def embed(ids, table, pe, d_model):
    # TODO(synk): embedding gather + positional-encoding add stay in plain XLA
    # (a Pallas gather would need scalar-prefetch Element indexing; negligible here).
    n = ids.shape[1]
    return jnp.take(table, ids, axis=0) * math.sqrt(d_model) + pe[:n][None, :, :]


def transformer_forward(src_ids, tgt_ids, src_mask, tgt_mask, params, num_heads):
    """Matches Transformer.forward: memory = encode(src); return decode(tgt, memory)."""
    b, s = src_ids.shape
    _, t = tgt_ids.shape
    d = params["d_model"]
    num_enc = params["enc"]["wqkv"].shape[0]
    num_dec = params["dec"]["wqkv"].shape[0]

    x_src = embed(src_ids, params["src_emb"], params["pe"], d)      # (B, S, D) f32
    x_tgt = embed(tgt_ids, params["tgt_emb"], params["pe"], d)      # (B, T, D) f32
    # Additive masks, never broadcast to (B*H, T, S):
    src_add = jnp.where(src_mask, 0.0, NEG_INF).astype(jnp.float32).reshape(b, 1, s)
    tgt_add = jnp.where(tgt_mask, 0.0, NEG_INF).astype(jnp.float32).reshape(1, t, t)

    inputs = [x_src, x_tgt, src_add, tgt_add]
    inputs += [params["enc"][k] for k in ENC_KEYS]
    inputs += [params["dec"][k] for k in DEC_KEYS]
    inputs += [params["enc_norm_g"], params["enc_norm_b"],
               params["dec_norm_g"], params["dec_norm_b"]]

    def batch_spec(a):          # per-batch block (grid axis 0 over batch)
        nd = a.ndim
        return pl.BlockSpec((1,) + a.shape[1:],
                            lambda i, _n=nd: (i,) + (0,) * (_n - 1))

    def const_spec(a):          # full-array block, constant index -> loaded once
        nd = a.ndim
        return pl.BlockSpec(a.shape, lambda i, _n=nd: (0,) * _n)

    in_specs = ([batch_spec(x_src), batch_spec(x_tgt), batch_spec(src_add)]
                + [const_spec(a) for a in inputs[3:]])

    kernel = _make_kernel(num_enc, num_dec, num_heads, d)
    return pl.pallas_call(
        kernel,
        out_shape=jax.ShapeDtypeStruct((b, t, d), jnp.float32),
        grid=(b,),
        in_specs=in_specs,
        out_specs=pl.BlockSpec((1, t, d), lambda i: (i, 0, 0)),
        compiler_params=pltpu.CompilerParams(
            dimension_semantics=("parallel",),          # batch elems are independent
            vmem_limit_bytes=_VMEM_LIMIT),
    )(*inputs)


# ------------------------- deterministic parameters -------------------------

def init_params(key, *, num_enc, num_dec, d_model, num_heads, d_ff,
                src_vocab, tgt_vocab, max_len=64):
    dk = d_model // num_heads

    def dense(k, din, dout):
        w = jax.random.normal(k, (din, dout), jnp.float32) / math.sqrt(din)
        return w, jnp.zeros((dout,), jnp.float32)

    def head_cols(w):          # (D, D) -> (H, D, dk): per-head output columns
        return w.reshape(d_model, num_heads, dk).transpose(1, 0, 2)

    def head_bias(bv):         # (D,) -> (H, 1, dk)
        return bv.reshape(num_heads, 1, dk)

    def ln_pair():
        return jnp.ones((1, d_model), jnp.float32), jnp.zeros((1, d_model), jnp.float32)

    def self_attn_block(k):
        kq, kk, kv_, ko = jax.random.split(k, 4)
        wq, bq = dense(kq, d_model, d_model)
        wk, bk = dense(kk, d_model, d_model)
        wv, bv = dense(kv_, d_model, d_model)
        wo, bo = dense(ko, d_model, d_model)
        wqkv = jnp.concatenate([head_cols(wq), head_cols(wk), head_cols(wv)],
                               axis=-1).astype(jnp.bfloat16)             # (H, D, 3dk)
        bqkv = jnp.concatenate([head_bias(bq), head_bias(bk), head_bias(bv)],
                               axis=-1)                                  # (H, 1, 3dk)
        wo_h = wo.reshape(num_heads, dk, d_model).astype(jnp.bfloat16)   # (H, dk, D)
        return wqkv, bqkv, wo_h, bo.reshape(1, d_model)

    def ffn_block(k):
        k1, k2 = jax.random.split(k, 2)
        w1, b1 = dense(k1, d_model, d_ff)
        w2, b2 = dense(k2, d_ff, d_model)
        return (w1.astype(jnp.bfloat16), b1.reshape(1, d_ff),
                w2.astype(jnp.bfloat16), b2.reshape(1, d_model))

    def enc_layer(k):
        ka, kf = jax.random.split(k, 2)
        wqkv, bqkv, wo, bo = self_attn_block(ka)
        w1, b1, w2, b2 = ffn_block(kf)
        g1, bb1 = ln_pair(); g2, bb2 = ln_pair()
        return dict(ln1_g=g1, ln1_b=bb1, wqkv=wqkv, bqkv=bqkv, wo=wo, bo=bo,
                    ln2_g=g2, ln2_b=bb2, w1=w1, b1=b1, w2=w2, b2=b2)

    def dec_layer(k):
        ka, kc, kf = jax.random.split(k, 3)
        wqkv, bqkv, wo_s, bo_s = self_attn_block(ka)
        kq, kk, kv_, ko = jax.random.split(kc, 4)
        wq, bq = dense(kq, d_model, d_model)
        wk, bk = dense(kk, d_model, d_model)
        wv, bv = dense(kv_, d_model, d_model)
        wo_c, bo_c = dense(ko, d_model, d_model)
        wq_h = head_cols(wq).astype(jnp.bfloat16)                        # (H, D, dk)
        bq_h = head_bias(bq)                                             # (H, 1, dk)
        wkv_h = jnp.concatenate([head_cols(wk), head_cols(wv)],
                                axis=-1).astype(jnp.bfloat16)            # (H, D, 2dk)
        bkv_h = jnp.concatenate([head_bias(bk), head_bias(bv)], axis=-1) # (H, 1, 2dk)
        wo_ch = wo_c.reshape(num_heads, dk, d_model).astype(jnp.bfloat16)
        w1, b1, w2, b2 = ffn_block(kf)
        g1, bb1 = ln_pair(); g2, bb2 = ln_pair(); g3, bb3 = ln_pair()
        return dict(ln1_g=g1, ln1_b=bb1, wqkv=wqkv, bqkv=bqkv,
                    wo_self=wo_s, bo_self=bo_s,
                    ln2_g=g2, ln2_b=bb2, wq=wq_h, bq=bq_h, wkv=wkv_h, bkv=bkv_h,
                    wo_cross=wo_ch, bo_cross=bo_c.reshape(1, d_model),
                    ln3_g=g3, ln3_b=bb3, w1=w1, b1=b1, w2=w2, b2=b2)

    keys = jax.random.split(key, num_enc + num_dec + 2)
    enc_layers = [enc_layer(keys[i]) for i in range(num_enc)]
    dec_layers = [dec_layer(keys[num_enc + i]) for i in range(num_dec)]
    # Stack per-parameter across layers so the fused kernel indexes layers statically.
    enc = {k: jnp.stack([L[k] for L in enc_layers], axis=0) for k in ENC_KEYS}
    dec = {k: jnp.stack([L[k] for L in dec_layers], axis=0) for k in DEC_KEYS}

    src_emb = 0.02 * jax.random.normal(keys[-2], (src_vocab, d_model), jnp.float32)
    tgt_emb = 0.02 * jax.random.normal(keys[-1], (tgt_vocab, d_model), jnp.float32)

    pos = jnp.arange(max_len, dtype=jnp.float32)[:, None]
    div = jnp.exp(jnp.arange(0, d_model, 2, dtype=jnp.float32) * (-math.log(10000.0) / d_model))
    pe = jnp.zeros((max_len, d_model), jnp.float32)
    pe = pe.at[:, 0::2].set(jnp.sin(pos * div))
    pe = pe.at[:, 1::2].set(jnp.cos(pos * div))

    eng, enb = ln_pair(); dng, dnb = ln_pair()
    return dict(d_model=d_model, num_heads=num_heads,
                src_emb=src_emb, tgt_emb=tgt_emb, pe=pe,
                enc=enc, dec=dec,
                enc_norm_g=eng, enc_norm_b=enb, dec_norm_g=dng, dec_norm_b=dnb)


# ---------------------------------- main -------------------------------------

if __name__ == "__main__":
    D_MODEL, NUM_HEADS, NUM_ENC, NUM_DEC, D_FF = 32, 4, 2, 2, 64
    SRC_VOCAB, TGT_VOCAB = 97, 101
    B, S, T = 2, 8, 8

    key = jax.random.PRNGKey(0)
    kp, ks, kt = jax.random.split(key, 3)
    params = init_params(kp, num_enc=NUM_ENC, num_dec=NUM_DEC, d_model=D_MODEL,
                         num_heads=NUM_HEADS, d_ff=D_FF,
                         src_vocab=SRC_VOCAB, tgt_vocab=TGT_VOCAB, max_len=64)
    src = jax.random.randint(ks, (B, S), 0, SRC_VOCAB, dtype=jnp.int32)
    tgt = jax.random.randint(kt, (B, T), 0, TGT_VOCAB, dtype=jnp.int32)
    src_mask = jnp.ones((B, S), jnp.bool_)                 # no source padding
    tgt_mask = jnp.tril(jnp.ones((T, T), jnp.bool_))       # causal target mask

    out = transformer_forward(src, tgt, src_mask, tgt_mask, params, NUM_HEADS)
    out = jax.block_until_ready(out)
    assert out.shape == (B, T, D_MODEL) and out.dtype == jnp.float32
    assert bool(jnp.all(jnp.isfinite(out)))
    print("KERNEL_OK")
</pallas_src>

<mosaic_0001>
module attributes {stable_mosaic.version = 11 : i64} {
  func.func @kernel(%arg0: i32, %arg1: memref<1x8x32xf32, #tpu.memory_space<vmem>>, %arg2: memref<1x8x32xf32, #tpu.memory_space<vmem>>, %arg3: memref<1x1x8xf32, #tpu.memory_space<vmem>>, %arg4: memref<1x8x8xf32, #tpu.memory_space<vmem>>, %arg5: memref<2x1x32xf32, #tpu.memory_space<vmem>>, %arg6: memref<2x1x32xf32, #tpu.memory_space<vmem>>, %arg7: memref<2x4x32x24xbf16, #tpu.memory_space<vmem>>, %arg8: memref<2x4x1x24xf32, #tpu.memory_space<vmem>>, %arg9: memref<2x4x8x32xbf16, #tpu.memory_space<vmem>>, %arg10: memref<2x1x32xf32, #tpu.memory_space<vmem>>, %arg11: memref<2x1x32xf32, #tpu.memory_space<vmem>>, %arg12: memref<2x1x32xf32, #tpu.memory_space<vmem>>, %arg13: memref<2x32x64xbf16, #tpu.memory_space<vmem>>, %arg14: memref<2x1x64xf32, #tpu.memory_space<vmem>>, %arg15: memref<2x64x32xbf16, #tpu.memory_space<vmem>>, %arg16: memref<2x1x32xf32, #tpu.memory_space<vmem>>, %arg17: memref<2x1x32xf32, #tpu.memory_space<vmem>>, %arg18: memref<2x1x32xf32, #tpu.memory_space<vmem>>, %arg19: memref<2x4x32x24xbf16, #tpu.memory_space<vmem>>, %arg20: memref<2x4x1x24xf32, #tpu.memory_space<vmem>>, %arg21: memref<2x4x8x32xbf16, #tpu.memory_space<vmem>>, %arg22: memref<2x1x32xf32, #tpu.memory_space<vmem>>, %arg23: memref<2x1x32xf32, #tpu.memory_space<vmem>>, %arg24: memref<2x1x32xf32, #tpu.memory_space<vmem>>, %arg25: memref<2x4x32x8xbf16, #tpu.memory_space<vmem>>, %arg26: memref<2x4x1x8xf32, #tpu.memory_space<vmem>>, %arg27: memref<2x4x32x16xbf16, #tpu.memory_space<vmem>>, %arg28: memref<2x4x1x16xf32, #tpu.memory_space<vmem>>, %arg29: memref<2x4x8x32xbf16, #tpu.memory_space<vmem>>, %arg30: memref<2x1x32xf32, #tpu.memory_space<vmem>>, %arg31: memref<2x1x32xf32, #tpu.memory_space<vmem>>, %arg32: memref<2x1x32xf32, #tpu.memory_space<vmem>>, %arg33: memref<2x32x64xbf16, #tpu.memory_space<vmem>>, %arg34: memref<2x1x64xf32, #tpu.memory_space<vmem>>, %arg35: memref<2x64x32xbf16, #tpu.memory_space<vmem>>, %arg36: memref<2x1x32xf32, #tpu.memory_space<vmem>>, %arg37: memref<1x32xf32, #tpu.memory_space<vmem>>, %arg38: memref<1x32xf32, #tpu.memory_space<vmem>>, %arg39: memref<1x32xf32, #tpu.memory_space<vmem>>, %arg40: memref<1x32xf32, #tpu.memory_space<vmem>>, %arg41: memref<1x8x32xf32, #tpu.memory_space<vmem>>) attributes {dimension_semantics = [#tpu.dimension_semantics<parallel>], iteration_bounds = array<i64: 2>, scalar_prefetch = 0 : i64, scratch_operands = 0 : i64, tpu.core_type = #tpu.core_type<tc>, window_params = [{transform_indices = @transform_0, window_bounds = array<i64: 1, 8, 32>}, {transform_indices = @transform_1, window_bounds = array<i64: 1, 8, 32>}, {transform_indices = @transform_2, window_bounds = array<i64: 1, 1, 8>}, {pipeline_mode = #tpu.pipeline_mode<synchronous>, transform_indices = @transform_3, window_bounds = array<i64: 1, 8, 8>}, {pipeline_mode = #tpu.pipeline_mode<synchronous>, transform_indices = @transform_4, window_bounds = array<i64: 2, 1, 32>}, {pipeline_mode = #tpu.pipeline_mode<synchronous>, transform_indices = @transform_5, window_bounds = array<i64: 2, 1, 32>}, {pipeline_mode = #tpu.pipeline_mode<synchronous>, transform_indices = @transform_6, window_bounds = array<i64: 2, 4, 32, 24>}, {pipeline_mode = #tpu.pipeline_mode<synchronous>, transform_indices = @transform_7, window_bounds = array<i64: 2, 4, 1, 24>}, {pipeline_mode = #tpu.pipeline_mode<synchronous>, transform_indices = @transform_8, window_bounds = array<i64: 2, 4, 8, 32>}, {pipeline_mode = #tpu.pipeline_mode<synchronous>, transform_indices = @transform_9, window_bounds = array<i64: 2, 1, 32>}, {pipeline_mode = #tpu.pipeline_mode<synchronous>, transform_indices = @transform_10, window_bounds = array<i64: 2, 1, 32>}, {pipeline_mode = #tpu.pipeline_mode<synchronous>, transform_indices = @transform_11, window_bounds = array<i64: 2, 1, 32>}, {pipeline_mode = #tpu.pipeline_mode<synchronous>, transform_indices = @transform_12, window_bounds = array<i64: 2, 32, 64>}, {pipeline_mode = #tpu.pipeline_mode<synchronous>, transform_indices = @transform_13, window_bounds = array<i64: 2, 1, 64>}, {pipeline_mode = #tpu.pipeline_mode<synchronous>, transform_indices = @transform_14, window_bounds = array<i64: 2, 64, 32>}, {pipeline_mode = #tpu.pipeline_mode<synchronous>, transform_indices = @transform_15, window_bounds = array<i64: 2, 1, 32>}, {pipeline_mode = #tpu.pipeline_mode<synchronous>, transform_indices = @transform_16, window_bounds = array<i64: 2, 1, 32>}, {pipeline_mode = #tpu.pipeline_mode<synchronous>, transform_indices = @transform_17, window_bounds = array<i64: 2, 1, 32>}, {pipeline_mode = #tpu.pipeline_mode<synchronous>, transform_indices = @transform_18, window_bounds = array<i64: 2, 4, 32, 24>}, {pipeline_mode = #tpu.pipeline_mode<synchronous>, transform_indices = @transform_19, window_bounds = array<i64: 2, 4, 1, 24>}, {pipeline_mode = #tpu.pipeline_mode<synchronous>, transform_indices = @transform_20, window_bounds = array<i64: 2, 4, 8, 32>}, {pipeline_mode = #tpu.pipeline_mode<synchronous>, transform_indices = @transform_21, window_bounds = array<i64: 2, 1, 32>}, {pipeline_mode = #tpu.pipeline_mode<synchronous>, transform_indices = @transform_22, window_bounds = array<i64: 2, 1, 32>}, {pipeline_mode = #tpu.pipeline_mode<synchronous>, transform_indices = @transform_23, window_bounds = array<i64: 2, 1, 32>}, {pipeline_mode = #tpu.pipeline_mode<synchronous>, transform_indices = @transform_24, window_bounds = array<i64: 2, 4, 32, 8>}, {pipeline_mode = #tpu.pipeline_mode<synchronous>, transform_indices = @transform_25, window_bounds = array<i64: 2, 4, 1, 8>}, {pipeline_mode = #tpu.pipeline_mode<synchronous>, transform_indices = @transform_26, window_bounds = array<i64: 2, 4, 32, 16>}, {pipeline_mode = #tpu.pipeline_mode<synchronous>, transform_indices = @transform_27, window_bounds = array<i64: 2, 4, 1, 16>}, {pipeline_mode = #tpu.pipeline_mode<synchronous>, transform_indices = @transform_28, window_bounds = array<i64: 2, 4, 8, 32>}, {pipeline_mode = #tpu.pipeline_mode<synchronous>, transform_indices = @transform_29, window_bounds = array<i64: 2, 1, 32>}, {pipeline_mode = #tpu.pipeline_mode<synchronous>, transform_indices = @transform_30, window_bounds = array<i64: 2, 1, 32>}, {pipeline_mode = #tpu.pipeline_mode<synchronous>, transform_indices = @transform_31, window_bounds = array<i64: 2, 1, 32>}, {pipeline_mode = #tpu.pipeline_mode<synchronous>, transform_indices = @transform_32, window_bounds = array<i64: 2, 32, 64>}, {pipeline_mode = #tpu.pipeline_mode<synchronous>, transform_indices = @transform_33, window_bounds = array<i64: 2, 1, 64>}, {pipeline_mode = #tpu.pipeline_mode<synchronous>, transform_indices = @transform_34, window_bounds = array<i64: 2, 64, 32>}, {pipeline_mode = #tpu.pipeline_mode<synchronous>, transform_indices = @transform_35, window_bounds = array<i64: 2, 1, 32>}, {pipeline_mode = #tpu.pipeline_mode<synchronous>, transform_indices = @transform_36, window_bounds = array<i64: 1, 32>}, {pipeline_mode = #tpu.pipeline_mode<synchronous>, transform_indices = @transform_37, window_bounds = array<i64: 1, 32>}, {pipeline_mode = #tpu.pipeline_mode<synchronous>, transform_indices = @transform_38, window_bounds = array<i64: 1, 32>}, {pipeline_mode = #tpu.pipeline_mode<synchronous>, transform_indices = @transform_39, window_bounds = array<i64: 1, 32>}, {transform_indices = @transform_40, window_bounds = array<i64: 1, 8, 32>}]} {
    %c0 = arith.constant 0 : index
    %c0_0 = arith.constant 0 : index
    %c0_1 = arith.constant 0 : index
    %0 = vector.load %arg3[%c0, %c0_0, %c0_1] : memref<1x1x8xf32, #tpu.memory_space<vmem>>, vector<1x1x8xf32>
    %c0_2 = arith.constant 0 : index
    %c0_3 = arith.constant 0 : index
    %c0_4 = arith.constant 0 : index
    %1 = vector.load %arg4[%c0_2, %c0_3, %c0_4] : memref<1x8x8xf32, #tpu.memory_space<vmem>>, vector<1x8x8xf32>
    %c0_5 = arith.constant 0 : index
    %c0_6 = arith.constant 0 : index
    %c0_7 = arith.constant 0 : index
    %2 = vector.load %arg1[%c0_5, %c0_6, %c0_7] : memref<1x8x32xf32, #tpu.memory_space<vmem>>, vector<1x8x32xf32>
    %3 = vector.shape_cast %2 : vector<1x8x32xf32> to vector<8x32xf32>
    %c0_8 = arith.constant 0 : index
    %c0_9 = arith.constant 0 : index
    %c0_10 = arith.constant 0 : index
    %4 = vector.load %arg5[%c0_8, %c0_9, %c0_10] : memref<2x1x32xf32, #tpu.memory_space<vmem>>, vector<1x1x32xf32>
    %5 = vector.shape_cast %4 : vector<1x1x32xf32> to vector<1x32xf32>
    %c0_11 = arith.constant 0 : index
    %c0_12 = arith.constant 0 : index
    %c0_13 = arith.constant 0 : index
    %6 = vector.load %arg6[%c0_11, %c0_12, %c0_13] : memref<2x1x32xf32, #tpu.memory_space<vmem>>, vector<1x1x32xf32>
    %7 = vector.shape_cast %6 : vector<1x1x32xf32> to vector<1x32xf32>
    %cst = arith.constant dense<0.000000e+00> : vector<8xf32>
    %8 = vector.multi_reduction <add>, %3, %cst [1] : vector<8x32xf32> to vector<8xf32>
    %9 = vector.shape_cast %8 : vector<8xf32> to vector<8x1xf32>
    %cst_14 = arith.constant 3.200000e+01 : f32
    %10 = vector.broadcast %cst_14 : f32 to vector<8x1xf32>
    %11 = arith.divf %9, %10 : vector<8x1xf32>
    %12 = vector.broadcast %11 : vector<8x1xf32> to vector<8x32xf32>
    %13 = arith.subf %3, %12 : vector<8x32xf32>
    %14 = arith.mulf %13, %13 : vector<8x32xf32>
    %cst_15 = arith.constant dense<0.000000e+00> : vector<8xf32>
    %15 = vector.multi_reduction <add>, %14, %cst_15 [1] : vector<8x32xf32> to vector<8xf32>
    %16 = vector.shape_cast %15 : vector<8xf32> to vector<8x1xf32>
    %cst_16 = arith.constant 0.0322580636 : f32
    %17 = vector.broadcast %cst_16 : f32 to vector<8x1xf32>
    %18 = arith.mulf %16, %17 : vector<8x1xf32>
    %19 = vector.broadcast %5 : vector<1x32xf32> to vector<8x32xf32>
    %20 = arith.mulf %19, %13 : vector<8x32xf32>
    %21 = math.sqrt %18 : vector<8x1xf32>
    %cst_17 = arith.constant 9.99999997E-7 : f32
    %22 = vector.broadcast %cst_17 : f32 to vector<8x1xf32>
    %23 = arith.addf %21, %22 : vector<8x1xf32>
    %24 = vector.broadcast %23 : vector<8x1xf32> to vector<8x32xf32>
    %25 = arith.divf %20, %24 : vector<8x32xf32>
    %26 = vector.broadcast %7 : vector<1x32xf32> to vector<8x32xf32>
    %27 = arith.addf %25, %26 : vector<8x32xf32>
    %c0_18 = arith.constant 0 : index
    %c0_19 = arith.constant 0 : index
    %c0_20 = arith.constant 0 : index
    %c0_21 = arith.constant 0 : index
    %28 = vector.load %arg7[%c0_18, %c0_19, %c0_20, %c0_21] : memref<2x4x32x24xbf16, #tpu.memory_space<vmem>>, vector<1x4x32x24xbf16>
    %29 = vector.shape_cast %28 : vector<1x4x32x24xbf16> to vector<4x32x24xbf16>
    %c0_22 = arith.constant 0 : index
    %c0_23 = arith.constant 0 : index
    %c0_24 = arith.constant 0 : index
    %c0_25 = arith.constant 0 : index
    %30 = vector.load %arg8[%c0_22, %c0_23, %c0_24, %c0_25] : memref<2x4x1x24xf32, #tpu.memory_space<vmem>>, vector<1x4x1x24xf32>
    %31 = vector.shape_cast %30 : vector<1x4x1x24xf32> to vector<4x1x24xf32>
    %32 = arith.truncf %27 : vector<8x32xf32> to vector<8x32xbf16>
    %33 = vector.shape_cast %32 : vector<8x32xbf16> to vector<1x8x32xbf16>
    %34 = vector.shape_cast %33 : vector<1x8x32xbf16> to vector<1x8x32xbf16>
    %35 = vector.broadcast %34 : vector<1x8x32xbf16> to vector<4x8x32xbf16>
    %cst_26 = arith.constant dense<0.000000e+00> : vector<4x8x24xf32>
    %36 = tpu.matmul %35, %29, %cst_26 {dimension_numbers = #tpu.dot_dimension_numbers<[2], [1], [1], [2], [0, 0, 0, 1, 1, 2], [0], [0]>} : vector<4x8x32xbf16>, vector<4x32x24xbf16>, vector<4x8x24xf32> -> vector<4x8x24xf32>
    %37 = vector.broadcast %31 : vector<4x1x24xf32> to vector<4x8x24xf32>
    %38 = arith.addf %36, %37 : vector<4x8x24xf32>
    %39 = vector.extract_strided_slice %38 {offsets = [0, 0, 0], sizes = [4, 8, 8], strides = [1, 1, 1]} : vector<4x8x24xf32> to vector<4x8x8xf32>
    %40 = vector.extract_strided_slice %38 {offsets = [0, 0, 8], sizes = [4, 8, 8], strides = [1, 1, 1]} : vector<4x8x24xf32> to vector<4x8x8xf32>
    %41 = vector.extract_strided_slice %38 {offsets = [0, 0, 16], sizes = [4, 8, 8], strides = [1, 1, 1]} : vector<4x8x24xf32> to vector<4x8x8xf32>
    %c0_27 = arith.constant 0 : index
    %c0_28 = arith.constant 0 : index
    %c0_29 = arith.constant 0 : index
    %c0_30 = arith.constant 0 : index
    %42 = vector.load %arg9[%c0_27, %c0_28, %c0_29, %c0_30] : memref<2x4x8x32xbf16, #tpu.memory_space<vmem>>, vector<1x4x8x32xbf16>
    %43 = vector.shape_cast %42 : vector<1x4x8x32xbf16> to vector<4x8x32xbf16>
    %c0_31 = arith.constant 0 : index
    %c0_32 = arith.constant 0 : index
    %c0_33 = arith.constant 0 : index
    %44 = vector.load %arg10[%c0_31, %c0_32, %c0_33] : memref<2x1x32xf32, #tpu.memory_space<vmem>>, vector<1x1x32xf32>
    %45 = vector.shape_cast %44 : vector<1x1x32xf32> to vector<1x32xf32>
    %cst_34 = arith.constant 0.353553385 : f32
    %46 = vector.broadcast %cst_34 : f32 to vector<4x8x8xf32>
    %47 = arith.mulf %39, %46 : vector<4x8x8xf32>
    %48 = arith.truncf %47 : vector<4x8x8xf32> to vector<4x8x8xbf16>
    %49 = arith.truncf %40 : vector<4x8x8xf32> to vector<4x8x8xbf16>
    %cst_35 = arith.constant dense<0.000000e+00> : vector<4x8x8xf32>
    %50 = tpu.matmul %48, %49, %cst_35 {dimension_numbers = #tpu.dot_dimension_numbers<[2], [2], [1], [1], [0, 0, 0, 1, 1, 1], [0], [0]>} : vector<4x8x8xbf16>, vector<4x8x8xbf16>, vector<4x8x8xf32> -> vector<4x8x8xf32>
    %51 = vector.broadcast %0 : vector<1x1x8xf32> to vector<4x8x8xf32>
    %52 = arith.addf %50, %51 : vector<4x8x8xf32>
    %cst_36 = arith.constant dense<0xFF800000> : vector<4x8xf32>
    %53 = vector.multi_reduction <maximumf>, %52, %cst_36 [2] : vector<4x8x8xf32> to vector<4x8xf32>
    %54 = vector.shape_cast %53 : vector<4x8xf32> to vector<4x8x1xf32>
    %55 = vector.broadcast %54 : vector<4x8x1xf32> to vector<4x8x8xf32>
    %56 = arith.subf %52, %55 : vector<4x8x8xf32>
    %57 = math.exp %56 : vector<4x8x8xf32>
    %cst_37 = arith.constant dense<0.000000e+00> : vector<4x8xf32>
    %58 = vector.multi_reduction <add>, %57, %cst_37 [2] : vector<4x8x8xf32> to vector<4x8xf32>
    %59 = vector.shape_cast %58 : vector<4x8xf32> to vector<4x8x1xf32>
    %60 = tpu.reciprocal %59 {approx = true} : vector<4x8x1xf32> -> vector<4x8x1xf32>
    %61 = vector.broadcast %60 : vector<4x8x1xf32> to vector<4x8x8xf32>
    %62 = arith.mulf %57, %61 : vector<4x8x8xf32>
    %63 = arith.truncf %62 : vector<4x8x8xf32> to vector<4x8x8xbf16>
    %64 = arith.truncf %41 : vector<4x8x8xf32> to vector<4x8x8xbf16>
    %cst_38 = arith.constant dense<0.000000e+00> : vector<4x8x8xf32>
    %65 = tpu.matmul %63, %64, %cst_38 {dimension_numbers = #tpu.dot_dimension_numbers<[2], [1], [1], [2], [0, 0, 0, 1, 1, 2], [0], [0]>} : vector<4x8x8xbf16>, vector<4x8x8xbf16>, vector<4x8x8xf32> -> vector<4x8x8xf32>
    %66 = arith.truncf %65 : vector<4x8x8xf32> to vector<4x8x8xbf16>
    %cst_39 = arith.constant dense<0.000000e+00> : vector<4x8x32xf32>
    %67 = tpu.matmul %66, %43, %cst_39 {dimension_numbers = #tpu.dot_dimension_numbers<[2], [1], [1], [2], [0, 0, 0, 1, 1, 2], [0], [0]>} : vector<4x8x8xbf16>, vector<4x8x32xbf16>, vector<4x8x32xf32> -> vector<4x8x32xf32>
    %cst_40 = arith.constant dense<0.000000e+00> : vector<8x32xf32>
    %68 = vector.multi_reduction <add>, %67, %cst_40 [0] : vector<4x8x32xf32> to vector<8x32xf32>
    %69 = vector.broadcast %45 : vector<1x32xf32> to vector<8x32xf32>
    %70 = arith.addf %68, %69 : vector<8x32xf32>
    %71 = arith.addf %3, %70 : vector<8x32xf32>
    %c0_41 = arith.constant 0 : index
    %c0_42 = arith.constant 0 : index
    %c0_43 = arith.constant 0 : index
    %72 = vector.load %arg11[%c0_41, %c0_42, %c0_43] : memref<2x1x32xf32, #tpu.memory_space<vmem>>, vector<1x1x32xf32>
    %73 = vector.shape_cast %72 : vector<1x1x32xf32> to vector<1x32xf32>
    %c0_44 = arith.constant 0 : index
    %c0_45 = arith.constant 0 : index
    %c0_46 = arith.constant 0 : index
    %74 = vector.load %arg12[%c0_44, %c0_45, %c0_46] : memref<2x1x32xf32, #tpu.memory_space<vmem>>, vector<1x1x32xf32>
    %75 = vector.shape_cast %74 : vector<1x1x32xf32> to vector<1x32xf32>
    %c0_47 = arith.constant 0 : index
    %c0_48 = arith.constant 0 : index
    %c0_49 = arith.constant 0 : index
    %76 = vector.load %arg13[%c0_47, %c0_48, %c0_49] : memref<2x32x64xbf16, #tpu.memory_space<vmem>>, vector<1x32x64xbf16>
    %77 = vector.shape_cast %76 : vector<1x32x64xbf16> to vector<32x64xbf16>
    %c0_50 = arith.constant 0 : index
    %c0_51 = arith.constant 0 : index
    %c0_52 = arith.constant 0 : index
    %78 = vector.load %arg14[%c0_50, %c0_51, %c0_52] : memref<2x1x64xf32, #tpu.memory_space<vmem>>, vector<1x1x64xf32>
    %79 = vector.shape_cast %78 : vector<1x1x64xf32> to vector<1x64xf32>
    %c0_53 = arith.constant 0 : index
    %c0_54 = arith.constant 0 : index
    %c0_55 = arith.constant 0 : index
    %80 = vector.load %arg15[%c0_53, %c0_54, %c0_55] : memref<2x64x32xbf16, #tpu.memory_space<vmem>>, vector<1x64x32xbf16>
    %81 = vector.shape_cast %80 : vector<1x64x32xbf16> to vector<64x32xbf16>
    %c0_56 = arith.constant 0 : index
    %c0_57 = arith.constant 0 : index
    %c0_58 = arith.constant 0 : index
    %82 = vector.load %arg16[%c0_56, %c0_57, %c0_58] : memref<2x1x32xf32, #tpu.memory_space<vmem>>, vector<1x1x32xf32>
    %83 = vector.shape_cast %82 : vector<1x1x32xf32> to vector<1x32xf32>
    %cst_59 = arith.constant dense<0.000000e+00> : vector<8xf32>
    %84 = vector.multi_reduction <add>, %71, %cst_59 [1] : vector<8x32xf32> to vector<8xf32>
    %85 = vector.shape_cast %84 : vector<8xf32> to vector<8x1xf32>
    %cst_60 = arith.constant 3.200000e+01 : f32
    %86 = vector.broadcast %cst_60 : f32 to vector<8x1xf32>
    %87 = arith.divf %85, %86 : vector<8x1xf32>
    %88 = vector.broadcast %87 : vector<8x1xf32> to vector<8x32xf32>
    %89 = arith.subf %71, %88 : vector<8x32xf32>
    %90 = arith.mulf %89, %89 : vector<8x32xf32>
    %cst_61 = arith.constant dense<0.000000e+00> : vector<8xf32>
    %91 = vector.multi_reduction <add>, %90, %cst_61 [1] : vector<8x32xf32> to vector<8xf32>
    %92 = vector.shape_cast %91 : vector<8xf32> to vector<8x1xf32>
    %cst_62 = arith.constant 0.0322580636 : f32
    %93 = vector.broadcast %cst_62 : f32 to vector<8x1xf32>
    %94 = arith.mulf %92, %93 : vector<8x1xf32>
    %95 = vector.broadcast %73 : vector<1x32xf32> to vector<8x32xf32>
    %96 = arith.mulf %95, %89 : vector<8x32xf32>
    %97 = math.sqrt %94 : vector<8x1xf32>
    %cst_63 = arith.constant 9.99999997E-7 : f32
    %98 = vector.broadcast %cst_63 : f32 to vector<8x1xf32>
    %99 = arith.addf %97, %98 : vector<8x1xf32>
    %100 = vector.broadcast %99 : vector<8x1xf32> to vector<8x32xf32>
    %101 = arith.divf %96, %100 : vector<8x32xf32>
    %102 = vector.broadcast %75 : vector<1x32xf32> to vector<8x32xf32>
    %103 = arith.addf %101, %102 : vector<8x32xf32>
    %104 = arith.truncf %103 : vector<8x32xf32> to vector<8x32xbf16>
    %cst_64 = arith.constant dense<0.000000e+00> : vector<8x64xf32>
    %105 = tpu.matmul %104, %77, %cst_64 {dimension_numbers = #tpu.dot_dimension_numbers<[1], [0], [0], [1], [0, 0, 1, 1], [], []>} : vector<8x32xbf16>, vector<32x64xbf16>, vector<8x64xf32> -> vector<8x64xf32>
    %106 = vector.broadcast %79 : vector<1x64xf32> to vector<8x64xf32>
    %107 = arith.addf %105, %106 : vector<8x64xf32>
    %cst_65 = arith.constant 0.000000e+00 : f32
    %108 = vector.broadcast %cst_65 : f32 to vector<8x64xf32>
    %109 = arith.maximumf %107, %108 : vector<8x64xf32>
    %110 = arith.truncf %109 : vector<8x64xf32> to vector<8x64xbf16>
    %cst_66 = arith.constant dense<0.000000e+00> : vector<8x32xf32>
    %111 = tpu.matmul %110, %81, %cst_66 {dimension_numbers = #tpu.dot_dimension_numbers<[1], [0], [0], [1], [0, 0, 1, 1], [], []>} : vector<8x64xbf16>, vector<64x32xbf16>, vector<8x32xf32> -> vector<8x32xf32>
    %112 = vector.broadcast %83 : vector<1x32xf32> to vector<8x32xf32>
    %113 = arith.addf %111, %112 : vector<8x32xf32>
    %114 = arith.addf %71, %113 : vector<8x32xf32>
    %c1 = arith.constant 1 : index
    %c0_67 = arith.constant 0 : index
    %c0_68 = arith.constant 0 : index
    %115 = vector.load %arg5[%c1, %c0_67, %c0_68] : memref<2x1x32xf32, #tpu.memory_space<vmem>>, vector<1x1x32xf32>
    %116 = vector.shape_cast %115 : vector<1x1x32xf32> to vector<1x32xf32>
    %c1_69 = arith.constant 1 : index
    %c0_70 = arith.constant 0 : index
    %c0_71 = arith.constant 0 : index
    %117 = vector.load %arg6[%c1_69, %c0_70, %c0_71] : memref<2x1x32xf32, #tpu.memory_space<vmem>>, vector<1x1x32xf32>
    %118 = vector.shape_cast %117 : vector<1x1x32xf32> to vector<1x32xf32>
    %cst_72 = arith.constant dense<0.000000e+00> : vector<8xf32>
    %119 = vector.multi_reduction <add>, %114, %cst_72 [1] : vector<8x32xf32> to vector<8xf32>
    %120 = vector.shape_cast %119 : vector<8xf32> to vector<8x1xf32>
    %cst_73 = arith.constant 3.200000e+01 : f32
    %121 = vector.broadcast %cst_73 : f32 to vector<8x1xf32>
    %122 = arith.divf %120, %121 : vector<8x1xf32>
    %123 = vector.broadcast %122 : vector<8x1xf32> to vector<8x32xf32>
    %124 = arith.subf %114, %123 : vector<8x32xf32>
    %125 = arith.mulf %124, %124 : vector<8x32xf32>
    %cst_74 = arith.constant dense<0.000000e+00> : vector<8xf32>
    %126 = vector.multi_reduction <add>, %125, %cst_74 [1] : vector<8x32xf32> to vector<8xf32>
    %127 = vector.shape_cast %126 : vector<8xf32> to vector<8x1xf32>
    %cst_75 = arith.constant 0.0322580636 : f32
    %128 = vector.broadcast %cst_75 : f32 to vector<8x1xf32>
    %129 = arith.mulf %127, %128 : vector<8x1xf32>
    %130 = vector.broadcast %116 : vector<1x32xf32> to vector<8x32xf32>
    %131 = arith.mulf %130, %124 : vector<8x32xf32>
    %132 = math.sqrt %129 : vector<8x1xf32>
    %cst_76 = arith.constant 9.99999997E-7 : f32
    %133 = vector.broadcast %cst_76 : f32 to vector<8x1xf32>
    %134 = arith.addf %132, %133 : vector<8x1xf32>
    %135 = vector.broadcast %134 : vector<8x1xf32> to vector<8x32xf32>
    %136 = arith.divf %131, %135 : vector<8x32xf32>
    %137 = vector.broadcast %118 : vector<1x32xf32> to vector<8x32xf32>
    %138 = arith.addf %136, %137 : vector<8x32xf32>
    %c1_77 = arith.constant 1 : index
    %c0_78 = arith.constant 0 : index
    %c0_79 = arith.constant 0 : index
    %c0_80 = arith.constant 0 : index
    %139 = vector.load %arg7[%c1_77, %c0_78, %c0_79, %c0_80] : memref<2x4x32x24xbf16, #tpu.memory_space<vmem>>, vector<1x4x32x24xbf16>
    %140 = vector.shape_cast %139 : vector<1x4x32x24xbf16> to vector<4x32x24xbf16>
    %c1_81 = arith.constant 1 : index
    %c0_82 = arith.constant 0 : index
    %c0_83 = arith.constant 0 : index
    %c0_84 = arith.constant 0 : index
    %141 = vector.load %arg8[%c1_81, %c0_82, %c0_83, %c0_84] : memref<2x4x1x24xf32, #tpu.memory_space<vmem>>, vector<1x4x1x24xf32>
    %142 = vector.shape_cast %141 : vector<1x4x1x24xf32> to vector<4x1x24xf32>
    %143 = arith.truncf %138 : vector<8x32xf32> to vector<8x32xbf16>
    %144 = vector.shape_cast %143 : vector<8x32xbf16> to vector<1x8x32xbf16>
    %145 = vector.shape_cast %144 : vector<1x8x32xbf16> to vector<1x8x32xbf16>
    %146 = vector.broadcast %145 : vector<1x8x32xbf16> to vector<4x8x32xbf16>
    %cst_85 = arith.constant dense<0.000000e+00> : vector<4x8x24xf32>
    %147 = tpu.matmul %146, %140, %cst_85 {dimension_numbers = #tpu.dot_dimension_numbers<[2], [1], [1], [2], [0, 0, 0, 1, 1, 2], [0], [0]>} : vector<4x8x32xbf16>, vector<4x32x24xbf16>, vector<4x8x24xf32> -> vector<4x8x24xf32>
    %148 = vector.broadcast %142 : vector<4x1x24xf32> to vector<4x8x24xf32>
    %149 = arith.addf %147, %148 : vector<4x8x24xf32>
    %150 = vector.extract_strided_slice %149 {offsets = [0, 0, 0], sizes = [4, 8, 8], strides = [1, 1, 1]} : vector<4x8x24xf32> to vector<4x8x8xf32>
    %151 = vector.extract_strided_slice %149 {offsets = [0, 0, 8], sizes = [4, 8, 8], strides = [1, 1, 1]} : vector<4x8x24xf32> to vector<4x8x8xf32>
    %152 = vector.extract_strided_slice %149 {offsets = [0, 0, 16], sizes = [4, 8, 8], strides = [1, 1, 1]} : vector<4x8x24xf32> to vector<4x8x8xf32>
    %c1_86 = arith.constant 1 : index
    %c0_87 = arith.constant 0 : index
    %c0_88 = arith.constant 0 : index
    %c0_89 = arith.constant 0 : index
    %153 = vector.load %arg9[%c1_86, %c0_87, %c0_88, %c0_89] : memref<2x4x8x32xbf16, #tpu.memory_space<vmem>>, vector<1x4x8x32xbf16>
    %154 = vector.shape_cast %153 : vector<1x4x8x32xbf16> to vector<4x8x32xbf16>
    %c1_90 = arith.constant 1 : index
    %c0_91 = arith.constant 0 : index
    %c0_92 = arith.constant 0 : index
    %155 = vector.load %arg10[%c1_90, %c0_91, %c0_92] : memref<2x1x32xf32, #tpu.memory_space<vmem>>, vector<1x1x32xf32>
    %156 = vector.shape_cast %155 : vector<1x1x32xf32> to vector<1x32xf32>
    %cst_93 = arith.constant 0.353553385 : f32
    %157 = vector.broadcast %cst_93 : f32 to vector<4x8x8xf32>
    %158 = arith.mulf %150, %157 : vector<4x8x8xf32>
    %159 = arith.truncf %158 : vector<4x8x8xf32> to vector<4x8x8xbf16>
    %160 = arith.truncf %151 : vector<4x8x8xf32> to vector<4x8x8xbf16>
    %cst_94 = arith.constant dense<0.000000e+00> : vector<4x8x8xf32>
    %161 = tpu.matmul %159, %160, %cst_94 {dimension_numbers = #tpu.dot_dimension_numbers<[2], [2], [1], [1], [0, 0, 0, 1, 1, 1], [0], [0]>} : vector<4x8x8xbf16>, vector<4x8x8xbf16>, vector<4x8x8xf32> -> vector<4x8x8xf32>
    %162 = vector.broadcast %0 : vector<1x1x8xf32> to vector<4x8x8xf32>
    %163 = arith.addf %161, %162 : vector<4x8x8xf32>
    %cst_95 = arith.constant dense<0xFF800000> : vector<4x8xf32>
    %164 = vector.multi_reduction <maximumf>, %163, %cst_95 [2] : vector<4x8x8xf32> to vector<4x8xf32>
    %165 = vector.shape_cast %164 : vector<4x8xf32> to vector<4x8x1xf32>
    %166 = vector.broadcast %165 : vector<4x8x1xf32> to vector<4x8x8xf32>
    %167 = arith.subf %163, %166 : vector<4x8x8xf32>
    %168 = math.exp %167 : vector<4x8x8xf32>
    %cst_96 = arith.constant dense<0.000000e+00> : vector<4x8xf32>
    %169 = vector.multi_reduction <add>, %168, %cst_96 [2] : vector<4x8x8xf32> to vector<4x8xf32>
    %170 = vector.shape_cast %169 : vector<4x8xf32> to vector<4x8x1xf32>
    %171 = tpu.reciprocal %170 {approx = true} : vector<4x8x1xf32> -> vector<4x8x1xf32>
    %172 = vector.broadcast %171 : vector<4x8x1xf32> to vector<4x8x8xf32>
    %173 = arith.mulf %168, %172 : vector<4x8x8xf32>
    %174 = arith.truncf %173 : vector<4x8x8xf32> to vector<4x8x8xbf16>
    %175 = arith.truncf %152 : vector<4x8x8xf32> to vector<4x8x8xbf16>
    %cst_97 = arith.constant dense<0.000000e+00> : vector<4x8x8xf32>
    %176 = tpu.matmul %174, %175, %cst_97 {dimension_numbers = #tpu.dot_dimension_numbers<[2], [1], [1], [2], [0, 0, 0, 1, 1, 2], [0], [0]>} : vector<4x8x8xbf16>, vector<4x8x8xbf16>, vector<4x8x8xf32> -> vector<4x8x8xf32>
    %177 = arith.truncf %176 : vector<4x8x8xf32> to vector<4x8x8xbf16>
    %cst_98 = arith.constant dense<0.000000e+00> : vector<4x8x32xf32>
    %178 = tpu.matmul %177, %154, %cst_98 {dimension_numbers = #tpu.dot_dimension_numbers<[2], [1], [1], [2], [0, 0, 0, 1, 1, 2], [0], [0]>} : vector<4x8x8xbf16>, vector<4x8x32xbf16>, vector<4x8x32xf32> -> vector<4x8x32xf32>
    %cst_99 = arith.constant dense<0.000000e+00> : vector<8x32xf32>
    %179 = vector.multi_reduction <add>, %178, %cst_99 [0] : vector<4x8x32xf32> to vector<8x32xf32>
    %180 = vector.broadcast %156 : vector<1x32xf32> to vector<8x32xf32>
    %181 = arith.addf %179, %180 : vector<8x32xf32>
    %182 = arith.addf %114, %181 : vector<8x32xf32>
    %c1_100 = arith.constant 1 : index
    %c0_101 = arith.constant 0 : index
    %c0_102 = arith.constant 0 : index
    %183 = vector.load %arg11[%c1_100, %c0_101, %c0_102] : memref<2x1x32xf32, #tpu.memory_space<vmem>>, vector<1x1x32xf32>
    %184 = vector.shape_cast %183 : vector<1x1x32xf32> to vector<1x32xf32>
    %c1_103 = arith.constant 1 : index
    %c0_104 = arith.constant 0 : index
    %c0_105 = arith.constant 0 : index
    %185 = vector.load %arg12[%c1_103, %c0_104, %c0_105] : memref<2x1x32xf32, #tpu.memory_space<vmem>>, vector<1x1x32xf32>
    %186 = vector.shape_cast %185 : vector<1x1x32xf32> to vector<1x32xf32>
    %c1_106 = arith.constant 1 : index
    %c0_107 = arith.constant 0 : index
    %c0_108 = arith.constant 0 : index
    %187 = vector.load %arg13[%c1_106, %c0_107, %c0_108] : memref<2x32x64xbf16, #tpu.memory_space<vmem>>, vector<1x32x64xbf16>
    %188 = vector.shape_cast %187 : vector<1x32x64xbf16> to vector<32x64xbf16>
    %c1_109 = arith.constant 1 : index
    %c0_110 = arith.constant 0 : index
    %c0_111 = arith.constant 0 : index
    %189 = vector.load %arg14[%c1_109, %c0_110, %c0_111] : memref<2x1x64xf32, #tpu.memory_space<vmem>>, vector<1x1x64xf32>
    %190 = vector.shape_cast %189 : vector<1x1x64xf32> to vector<1x64xf32>
    %c1_112 = arith.constant 1 : index
    %c0_113 = arith.constant 0 : index
    %c0_114 = arith.constant 0 : index
    %191 = vector.load %arg15[%c1_112, %c0_113, %c0_114] : memref<2x64x32xbf16, #tpu.memory_space<vmem>>, vector<1x64x32xbf16>
    %192 = vector.shape_cast %191 : vector<1x64x32xbf16> to vector<64x32xbf16>
    %c1_115 = arith.constant 1 : index
    %c0_116 = arith.constant 0 : index
    %c0_117 = arith.constant 0 : index
    %193 = vector.load %arg16[%c1_115, %c0_116, %c0_117] : memref<2x1x32xf32, #tpu.memory_space<vmem>>, vector<1x1x32xf32>
    %194 = vector.shape_cast %193 : vector<1x1x32xf32> to vector<1x32xf32>
    %cst_118 = arith.constant dense<0.000000e+00> : vector<8xf32>
    %195 = vector.multi_reduction <add>, %182, %cst_118 [1] : vector<8x32xf32> to vector<8xf32>
    %196 = vector.shape_cast %195 : vector<8xf32> to vector<8x1xf32>
    %cst_119 = arith.constant 3.200000e+01 : f32
    %197 = vector.broadcast %cst_119 : f32 to vector<8x1xf32>
    %198 = arith.divf %196, %197 : vector<8x1xf32>
    %199 = vector.broadcast %198 : vector<8x1xf32> to vector<8x32xf32>
    %200 = arith.subf %182, %199 : vector<8x32xf32>
    %201 = arith.mulf %200, %200 : vector<8x32xf32>
    %cst_120 = arith.constant dense<0.000000e+00> : vector<8xf32>
    %202 = vector.multi_reduction <add>, %201, %cst_120 [1] : vector<8x32xf32> to vector<8xf32>
    %203 = vector.shape_cast %202 : vector<8xf32> to vector<8x1xf32>
    %cst_121 = arith.constant 0.0322580636 : f32
    %204 = vector.broadcast %cst_121 : f32 to vector<8x1xf32>
    %205 = arith.mulf %203, %204 : vector<8x1xf32>
    %206 = vector.broadcast %184 : vector<1x32xf32> to vector<8x32xf32>
    %207 = arith.mulf %206, %200 : vector<8x32xf32>
    %208 = math.sqrt %205 : vector<8x1xf32>
    %cst_122 = arith.constant 9.99999997E-7 : f32
    %209 = vector.broadcast %cst_122 : f32 to vector<8x1xf32>
    %210 = arith.addf %208, %209 : vector<8x1xf32>
    %211 = vector.broadcast %210 : vector<8x1xf32> to vector<8x32xf32>
    %212 = arith.divf %207, %211 : vector<8x32xf32>
    %213 = vector.broadcast %186 : vector<1x32xf32> to vector<8x32xf32>
    %214 = arith.addf %212, %213 : vector<8x32xf32>
    %215 = arith.truncf %214 : vector<8x32xf32> to vector<8x32xbf16>
    %cst_123 = arith.constant dense<0.000000e+00> : vector<8x64xf32>
    %216 = tpu.matmul %215, %188, %cst_123 {dimension_numbers = #tpu.dot_dimension_numbers<[1], [0], [0], [1], [0, 0, 1, 1], [], []>} : vector<8x32xbf16>, vector<32x64xbf16>, vector<8x64xf32> -> vector<8x64xf32>
    %217 = vector.broadcast %190 : vector<1x64xf32> to vector<8x64xf32>
    %218 = arith.addf %216, %217 : vector<8x64xf32>
    %cst_124 = arith.constant 0.000000e+00 : f32
    %219 = vector.broadcast %cst_124 : f32 to vector<8x64xf32>
    %220 = arith.maximumf %218, %219 : vector<8x64xf32>
    %221 = arith.truncf %220 : vector<8x64xf32> to vector<8x64xbf16>
    %cst_125 = arith.constant dense<0.000000e+00> : vector<8x32xf32>
    %222 = tpu.matmul %221, %192, %cst_125 {dimension_numbers = #tpu.dot_dimension_numbers<[1], [0], [0], [1], [0, 0, 1, 1], [], []>} : vector<8x64xbf16>, vector<64x32xbf16>, vector<8x32xf32> -> vector<8x32xf32>
    %223 = vector.broadcast %194 : vector<1x32xf32> to vector<8x32xf32>
    %224 = arith.addf %222, %223 : vector<8x32xf32>
    %225 = arith.addf %182, %224 : vector<8x32xf32>
    %c0_126 = arith.constant 0 : index
    %c0_127 = arith.constant 0 : index
    %226 = vector.load %arg37[%c0_126, %c0_127] : memref<1x32xf32, #tpu.memory_space<vmem>>, vector<1x32xf32>
    %c0_128 = arith.constant 0 : index
    %c0_129 = arith.constant 0 : index
    %227 = vector.load %arg38[%c0_128, %c0_129] : memref<1x32xf32, #tpu.memory_space<vmem>>, vector<1x32xf32>
    %cst_130 = arith.constant dense<0.000000e+00> : vector<8xf32>
    %228 = vector.multi_reduction <add>, %225, %cst_130 [1] : vector<8x32xf32> to vector<8xf32>
    %229 = vector.shape_cast %228 : vector<8xf32> to vector<8x1xf32>
    %cst_131 = arith.constant 3.200000e+01 : f32
    %230 = vector.broadcast %cst_131 : f32 to vector<8x1xf32>
    %231 = arith.divf %229, %230 : vector<8x1xf32>
    %232 = vector.broadcast %231 : vector<8x1xf32> to vector<8x32xf32>
    %233 = arith.subf %225, %232 : vector<8x32xf32>
    %234 = arith.mulf %233, %233 : vector<8x32xf32>
    %cst_132 = arith.constant dense<0.000000e+00> : vector<8xf32>
    %235 = vector.multi_reduction <add>, %234, %cst_132 [1] : vector<8x32xf32> to vector<8xf32>
    %236 = vector.shape_cast %235 : vector<8xf32> to vector<8x1xf32>
    %cst_133 = arith.constant 0.0322580636 : f32
    %237 = vector.broadcast %cst_133 : f32 to vector<8x1xf32>
    %238 = arith.mulf %236, %237 : vector<8x1xf32>
    %239 = vector.broadcast %226 : vector<1x32xf32> to vector<8x32xf32>
    %240 = arith.mulf %239, %233 : vector<8x32xf32>
    %241 = math.sqrt %238 : vector<8x1xf32>
    %cst_134 = arith.constant 9.99999997E-7 : f32
    %242 = vector.broadcast %cst_134 : f32 to vector<8x1xf32>
    %243 = arith.addf %241, %242 : vector<8x1xf32>
    %244 = vector.broadcast %243 : vector<8x1xf32> to vector<8x32xf32>
    %245 = arith.divf %240, %244 : vector<8x32xf32>
    %246 = vector.broadcast %227 : vector<1x32xf32> to vector<8x32xf32>
    %247 = arith.addf %245, %246 : vector<8x32xf32>
    %c0_135 = arith.constant 0 : index
    %c0_136 = arith.constant 0 : index
    %c0_137 = arith.constant 0 : index
    %248 = vector.load %arg2[%c0_135, %c0_136, %c0_137] : memref<1x8x32xf32, #tpu.memory_space<vmem>>, vector<1x8x32xf32>
    %249 = vector.shape_cast %248 : vector<1x8x32xf32> to vector<8x32xf32>
    %c0_138 = arith.constant 0 : index
    %c0_139 = arith.constant 0 : index
    %c0_140 = arith.constant 0 : index
    %250 = vector.load %arg17[%c0_138, %c0_139, %c0_140] : memref<2x1x32xf32, #tpu.memory_space<vmem>>, vector<1x1x32xf32>
    %251 = vector.shape_cast %250 : vector<1x1x32xf32> to vector<1x32xf32>
    %c0_141 = arith.constant 0 : index
    %c0_142 = arith.constant 0 : index
    %c0_143 = arith.constant 0 : index
    %252 = vector.load %arg18[%c0_141, %c0_142, %c0_143] : memref<2x1x32xf32, #tpu.memory_space<vmem>>, vector<1x1x32xf32>
    %253 = vector.shape_cast %252 : vector<1x1x32xf32> to vector<1x32xf32>
    %cst_144 = arith.constant dense<0.000000e+00> : vector<8xf32>
    %254 = vector.multi_reduction <add>, %249, %cst_144 [1] : vector<8x32xf32> to vector<8xf32>
    %255 = vector.shape_cast %254 : vector<8xf32> to vector<8x1xf32>
    %cst_145 = arith.constant 3.200000e+01 : f32
    %256 = vector.broadcast %cst_145 : f32 to vector<8x1xf32>
    %257 = arith.divf %255, %256 : vector<8x1xf32>
    %258 = vector.broadcast %257 : vector<8x1xf32> to vector<8x32xf32>
    %259 = arith.subf %249, %258 : vector<8x32xf32>
    %260 = arith.mulf %259, %259 : vector<8x32xf32>
    %cst_146 = arith.constant dense<0.000000e+00> : vector<8xf32>
    %261 = vector.multi_reduction <add>, %260, %cst_146 [1] : vector<8x32xf32> to vector<8xf32>
    %262 = vector.shape_cast %261 : vector<8xf32> to vector<8x1xf32>
    %cst_147 = arith.constant 0.0322580636 : f32
    %263 = vector.broadcast %cst_147 : f32 to vector<8x1xf32>
    %264 = arith.mulf %262, %263 : vector<8x1xf32>
    %265 = vector.broadcast %251 : vector<1x32xf32> to vector<8x32xf32>
    %266 = arith.mulf %265, %259 : vector<8x32xf32>
    %267 = math.sqrt %264 : vector<8x1xf32>
    %cst_148 = arith.constant 9.99999997E-7 : f32
    %268 = vector.broadcast %cst_148 : f32 to vector<8x1xf32>
    %269 = arith.addf %267, %268 : vector<8x1xf32>
    %270 = vector.broadcast %269 : vector<8x1xf32> to vector<8x32xf32>
    %271 = arith.divf %266, %270 : vector<8x32xf32>
    %272 = vector.broadcast %253 : vector<1x32xf32> to vector<8x32xf32>
    %273 = arith.addf %271, %272 : vector<8x32xf32>
    %c0_149 = arith.constant 0 : index
    %c0_150 = arith.constant 0 : index
    %c0_151 = arith.constant 0 : index
    %c0_152 = arith.constant 0 : index
    %274 = vector.load %arg19[%c0_149, %c0_150, %c0_151, %c0_152] : memref<2x4x32x24xbf16, #tpu.memory_space<vmem>>, vector<1x4x32x24xbf16>
    %275 = vector.shape_cast %274 : vector<1x4x32x24xbf16> to vector<4x32x24xbf16>
    %c0_153 = arith.constant 0 : index
    %c0_154 = arith.constant 0 : index
    %c0_155 = arith.constant 0 : index
    %c0_156 = arith.constant 0 : index
    %276 = vector.load %arg20[%c0_153, %c0_154, %c0_155, %c0_156] : memref<2x4x1x24xf32, #tpu.memory_space<vmem>>, vector<1x4x1x24xf32>
    %277 = vector.shape_cast %276 : vector<1x4x1x24xf32> to vector<4x1x24xf32>
    %278 = arith.truncf %273 : vector<8x32xf32> to vector<8x32xbf16>
    %279 = vector.shape_cast %278 : vector<8x32xbf16> to vector<1x8x32xbf16>
    %280 = vector.shape_cast %279 : vector<1x8x32xbf16> to vector<1x8x32xbf16>
    %281 = vector.broadcast %280 : vector<1x8x32xbf16> to vector<4x8x32xbf16>
    %cst_157 = arith.constant dense<0.000000e+00> : vector<4x8x24xf32>
    %282 = tpu.matmul %281, %275, %cst_157 {dimension_numbers = #tpu.dot_dimension_numbers<[2], [1], [1], [2], [0, 0, 0, 1, 1, 2], [0], [0]>} : vector<4x8x32xbf16>, vector<4x32x24xbf16>, vector<4x8x24xf32> -> vector<4x8x24xf32>
    %283 = vector.broadcast %277 : vector<4x1x24xf32> to vector<4x8x24xf32>
    %284 = arith.addf %282, %283 : vector<4x8x24xf32>
    %285 = vector.extract_strided_slice %284 {offsets = [0, 0, 0], sizes = [4, 8, 8], strides = [1, 1, 1]} : vector<4x8x24xf32> to vector<4x8x8xf32>
    %286 = vector.extract_strided_slice %284 {offsets = [0, 0, 8], sizes = [4, 8, 8], strides = [1, 1, 1]} : vector<4x8x24xf32> to vector<4x8x8xf32>
    %287 = vector.extract_strided_slice %284 {offsets = [0, 0, 16], sizes = [4, 8, 8], strides = [1, 1, 1]} : vector<4x8x24xf32> to vector<4x8x8xf32>
    %c0_158 = arith.constant 0 : index
    %c0_159 = arith.constant 0 : index
    %c0_160 = arith.constant 0 : index
    %c0_161 = arith.constant 0 : index
    %288 = vector.load %arg21[%c0_158, %c0_159, %c0_160, %c0_161] : memref<2x4x8x32xbf16, #tpu.memory_space<vmem>>, vector<1x4x8x32xbf16>
    %289 = vector.shape_cast %288 : vector<1x4x8x32xbf16> to vector<4x8x32xbf16>
    %c0_162 = arith.constant 0 : index
    %c0_163 = arith.constant 0 : index
    %c0_164 = arith.constant 0 : index
    %290 = vector.load %arg22[%c0_162, %c0_163, %c0_164] : memref<2x1x32xf32, #tpu.memory_space<vmem>>, vector<1x1x32xf32>
    %291 = vector.shape_cast %290 : vector<1x1x32xf32> to vector<1x32xf32>
    %cst_165 = arith.constant 0.353553385 : f32
    %292 = vector.broadcast %cst_165 : f32 to vector<4x8x8xf32>
    %293 = arith.mulf %285, %292 : vector<4x8x8xf32>
    %294 = arith.truncf %293 : vector<4x8x8xf32> to vector<4x8x8xbf16>
    %295 = arith.truncf %286 : vector<4x8x8xf32> to vector<4x8x8xbf16>
    %cst_166 = arith.constant dense<0.000000e+00> : vector<4x8x8xf32>
    %296 = tpu.matmul %294, %295, %cst_166 {dimension_numbers = #tpu.dot_dimension_numbers<[2], [2], [1], [1], [0, 0, 0, 1, 1, 1], [0], [0]>} : vector<4x8x8xbf16>, vector<4x8x8xbf16>, vector<4x8x8xf32> -> vector<4x8x8xf32>
    %297 = vector.broadcast %1 : vector<1x8x8xf32> to vector<4x8x8xf32>
    %298 = arith.addf %296, %297 : vector<4x8x8xf32>
    %cst_167 = arith.constant dense<0xFF800000> : vector<4x8xf32>
    %299 = vector.multi_reduction <maximumf>, %298, %cst_167 [2] : vector<4x8x8xf32> to vector<4x8xf32>
    %300 = vector.shape_cast %299 : vector<4x8xf32> to vector<4x8x1xf32>
    %301 = vector.broadcast %300 : vector<4x8x1xf32> to vector<4x8x8xf32>
    %302 = arith.subf %298, %301 : vector<4x8x8xf32>
    %303 = math.exp %302 : vector<4x8x8xf32>
    %cst_168 = arith.constant dense<0.000000e+00> : vector<4x8xf32>
    %304 = vector.multi_reduction <add>, %303, %cst_168 [2] : vector<4x8x8xf32> to vector<4x8xf32>
    %305 = vector.shape_cast %304 : vector<4x8xf32> to vector<4x8x1xf32>
    %306 = tpu.reciprocal %305 {approx = true} : vector<4x8x1xf32> -> vector<4x8x1xf32>
    %307 = vector.broadcast %306 : vector<4x8x1xf32> to vector<4x8x8xf32>
    %308 = arith.mulf %303, %307 : vector<4x8x8xf32>
    %309 = arith.truncf %308 : vector<4x8x8xf32> to vector<4x8x8xbf16>
    %310 = arith.truncf %287 : vector<4x8x8xf32> to vector<4x8x8xbf16>
    %cst_169 = arith.constant dense<0.000000e+00> : vector<4x8x8xf32>
    %311 = tpu.matmul %309, %310, %cst_169 {dimension_numbers = #tpu.dot_dimension_numbers<[2], [1], [1], [2], [0, 0, 0, 1, 1, 2], [0], [0]>} : vector<4x8x8xbf16>, vector<4x8x8xbf16>, vector<4x8x8xf32> -> vector<4x8x8xf32>
    %312 = arith.truncf %311 : vector<4x8x8xf32> to vector<4x8x8xbf16>
    %cst_170 = arith.constant dense<0.000000e+00> : vector<4x8x32xf32>
    %313 = tpu.matmul %312, %289, %cst_170 {dimension_numbers = #tpu.dot_dimension_numbers<[2], [1], [1], [2], [0, 0, 0, 1, 1, 2], [0], [0]>} : vector<4x8x8xbf16>, vector<4x8x32xbf16>, vector<4x8x32xf32> -> vector<4x8x32xf32>
    %cst_171 = arith.constant dense<0.000000e+00> : vector<8x32xf32>
    %314 = vector.multi_reduction <add>, %313, %cst_171 [0] : vector<4x8x32xf32> to vector<8x32xf32>
    %315 = vector.broadcast %291 : vector<1x32xf32> to vector<8x32xf32>
    %316 = arith.addf %314, %315 : vector<8x32xf32>
    %317 = arith.addf %249, %316 : vector<8x32xf32>
    %c0_172 = arith.constant 0 : index
    %c0_173 = arith.constant 0 : index
    %c0_174 = arith.constant 0 : index
    %318 = vector.load %arg23[%c0_172, %c0_173, %c0_174] : memref<2x1x32xf32, #tpu.memory_space<vmem>>, vector<1x1x32xf32>
    %319 = vector.shape_cast %318 : vector<1x1x32xf32> to vector<1x32xf32>
    %c0_175 = arith.constant 0 : index
    %c0_176 = arith.constant 0 : index
    %c0_177 = arith.constant 0 : index
    %320 = vector.load %arg24[%c0_175, %c0_176, %c0_177] : memref<2x1x32xf32, #tpu.memory_space<vmem>>, vector<1x1x32xf32>
    %321 = vector.shape_cast %320 : vector<1x1x32xf32> to vector<1x32xf32>
    %cst_178 = arith.constant dense<0.000000e+00> : vector<8xf32>
    %322 = vector.multi_reduction <add>, %317, %cst_178 [1] : vector<8x32xf32> to vector<8xf32>
    %323 = vector.shape_cast %322 : vector<8xf32> to vector<8x1xf32>
    %cst_179 = arith.constant 3.200000e+01 : f32
    %324 = vector.broadcast %cst_179 : f32 to vector<8x1xf32>
    %325 = arith.divf %323, %324 : vector<8x1xf32>
    %326 = vector.broadcast %325 : vector<8x1xf32> to vector<8x32xf32>
    %327 = arith.subf %317, %326 : vector<8x32xf32>
    %328 = arith.mulf %327, %327 : vector<8x32xf32>
    %cst_180 = arith.constant dense<0.000000e+00> : vector<8xf32>
    %329 = vector.multi_reduction <add>, %328, %cst_180 [1] : vector<8x32xf32> to vector<8xf32>
    %330 = vector.shape_cast %329 : vector<8xf32> to vector<8x1xf32>
    %cst_181 = arith.constant 0.0322580636 : f32
    %331 = vector.broadcast %cst_181 : f32 to vector<8x1xf32>
    %332 = arith.mulf %330, %331 : vector<8x1xf32>
    %333 = vector.broadcast %319 : vector<1x32xf32> to vector<8x32xf32>
    %334 = arith.mulf %333, %327 : vector<8x32xf32>
    %335 = math.sqrt %332 : vector<8x1xf32>
    %cst_182 = arith.constant 9.99999997E-7 : f32
    %336 = vector.broadcast %cst_182 : f32 to vector<8x1xf32>
    %337 = arith.addf %335, %336 : vector<8x1xf32>
    %338 = vector.broadcast %337 : vector<8x1xf32> to vector<8x32xf32>
    %339 = arith.divf %334, %338 : vector<8x32xf32>
    %340 = vector.broadcast %321 : vector<1x32xf32> to vector<8x32xf32>
    %341 = arith.addf %339, %340 : vector<8x32xf32>
    %c0_183 = arith.constant 0 : index
    %c0_184 = arith.constant 0 : index
    %c0_185 = arith.constant 0 : index
    %c0_186 = arith.constant 0 : index
    %342 = vector.load %arg25[%c0_183, %c0_184, %c0_185, %c0_186] : memref<2x4x32x8xbf16, #tpu.memory_space<vmem>>, vector<1x4x32x8xbf16>
    %343 = vector.shape_cast %342 : vector<1x4x32x8xbf16> to vector<4x32x8xbf16>
    %c0_187 = arith.constant 0 : index
    %c0_188 = arith.constant 0 : index
    %c0_189 = arith.constant 0 : index
    %c0_190 = arith.constant 0 : index
    %344 = vector.load %arg26[%c0_187, %c0_188, %c0_189, %c0_190] : memref<2x4x1x8xf32, #tpu.memory_space<vmem>>, vector<1x4x1x8xf32>
    %345 = vector.shape_cast %344 : vector<1x4x1x8xf32> to vector<4x1x8xf32>
    %346 = arith.truncf %341 : vector<8x32xf32> to vector<8x32xbf16>
    %347 = vector.shape_cast %346 : vector<8x32xbf16> to vector<1x8x32xbf16>
    %348 = vector.shape_cast %347 : vector<1x8x32xbf16> to vector<1x8x32xbf16>
    %349 = vector.broadcast %348 : vector<1x8x32xbf16> to vector<4x8x32xbf16>
    %cst_191 = arith.constant dense<0.000000e+00> : vector<4x8x8xf32>
    %350 = tpu.matmul %349, %343, %cst_191 {dimension_numbers = #tpu.dot_dimension_numbers<[2], [1], [1], [2], [0, 0, 0, 1, 1, 2], [0], [0]>} : vector<4x8x32xbf16>, vector<4x32x8xbf16>, vector<4x8x8xf32> -> vector<4x8x8xf32>
    %351 = vector.broadcast %345 : vector<4x1x8xf32> to vector<4x8x8xf32>
    %352 = arith.addf %350, %351 : vector<4x8x8xf32>
    %c0_192 = arith.constant 0 : index
    %c0_193 = arith.constant 0 : index
    %c0_194 = arith.constant 0 : index
    %c0_195 = arith.constant 0 : index
    %353 = vector.load %arg27[%c0_192, %c0_193, %c0_194, %c0_195] : memref<2x4x32x16xbf16, #tpu.memory_space<vmem>>, vector<1x4x32x16xbf16>
    %354 = vector.shape_cast %353 : vector<1x4x32x16xbf16> to vector<4x32x16xbf16>
    %c0_196 = arith.constant 0 : index
    %c0_197 = arith.constant 0 : index
    %c0_198 = arith.constant 0 : index
    %c0_199 = arith.constant 0 : index
    %355 = vector.load %arg28[%c0_196, %c0_197, %c0_198, %c0_199] : memref<2x4x1x16xf32, #tpu.memory_space<vmem>>, vector<1x4x1x16xf32>
    %356 = vector.shape_cast %355 : vector<1x4x1x16xf32> to vector<4x1x16xf32>
    %357 = arith.truncf %247 : vector<8x32xf32> to vector<8x32xbf16>
    %358 = vector.shape_cast %357 : vector<8x32xbf16> to vector<1x8x32xbf16>
    %359 = vector.shape_cast %358 : vector<1x8x32xbf16> to vector<1x8x32xbf16>
    %360 = vector.broadcast %359 : vector<1x8x32xbf16> to vector<4x8x32xbf16>
    %cst_200 = arith.constant dense<0.000000e+00> : vector<4x8x16xf32>
    %361 = tpu.matmul %360, %354, %cst_200 {dimension_numbers = #tpu.dot_dimension_numbers<[2], [1], [1], [2], [0, 0, 0, 1, 1, 2], [0], [0]>} : vector<4x8x32xbf16>, vector<4x32x16xbf16>, vector<4x8x16xf32> -> vector<4x8x16xf32>
    %362 = vector.broadcast %356 : vector<4x1x16xf32> to vector<4x8x16xf32>
    %363 = arith.addf %361, %362 : vector<4x8x16xf32>
    %364 = vector.extract_strided_slice %363 {offsets = [0, 0, 0], sizes = [4, 8, 8], strides = [1, 1, 1]} : vector<4x8x16xf32> to vector<4x8x8xf32>
    %365 = vector.extract_strided_slice %363 {offsets = [0, 0, 8], sizes = [4, 8, 8], strides = [1, 1, 1]} : vector<4x8x16xf32> to vector<4x8x8xf32>
    %c0_201 = arith.constant 0 : index
    %c0_202 = arith.constant 0 : index
    %c0_203 = arith.constant 0 : index
    %c0_204 = arith.constant 0 : index
    %366 = vector.load %arg29[%c0_201, %c0_202, %c0_203, %c0_204] : memref<2x4x8x32xbf16, #tpu.memory_space<vmem>>, vector<1x4x8x32xbf16>
    %367 = vector.shape_cast %366 : vector<1x4x8x32xbf16> to vector<4x8x32xbf16>
    %c0_205 = arith.constant 0 : index
    %c0_206 = arith.constant 0 : index
    %c0_207 = arith.constant 0 : index
    %368 = vector.load %arg30[%c0_205, %c0_206, %c0_207] : memref<2x1x32xf32, #tpu.memory_space<vmem>>, vector<1x1x32xf32>
    %369 = vector.shape_cast %368 : vector<1x1x32xf32> to vector<1x32xf32>
    %cst_208 = arith.constant 0.353553385 : f32
    %370 = vector.broadcast %cst_208 : f32 to vector<4x8x8xf32>
    %371 = arith.mulf %352, %370 : vector<4x8x8xf32>
    %372 = arith.truncf %371 : vector<4x8x8xf32> to vector<4x8x8xbf16>
    %373 = arith.truncf %364 : vector<4x8x8xf32> to vector<4x8x8xbf16>
    %cst_209 = arith.constant dense<0.000000e+00> : vector<4x8x8xf32>
    %374 = tpu.matmul %372, %373, %cst_209 {dimension_numbers = #tpu.dot_dimension_numbers<[2], [2], [1], [1], [0, 0, 0, 1, 1, 1], [0], [0]>} : vector<4x8x8xbf16>, vector<4x8x8xbf16>, vector<4x8x8xf32> -> vector<4x8x8xf32>
    %375 = vector.broadcast %0 : vector<1x1x8xf32> to vector<4x8x8xf32>
    %376 = arith.addf %374, %375 : vector<4x8x8xf32>
    %cst_210 = arith.constant dense<0xFF800000> : vector<4x8xf32>
    %377 = vector.multi_reduction <maximumf>, %376, %cst_210 [2] : vector<4x8x8xf32> to vector<4x8xf32>
    %378 = vector.shape_cast %377 : vector<4x8xf32> to vector<4x8x1xf32>
    %379 = vector.broadcast %378 : vector<4x8x1xf32> to vector<4x8x8xf32>
    %380 = arith.subf %376, %379 : vector<4x8x8xf32>
    %381 = math.exp %380 : vector<4x8x8xf32>
    %cst_211 = arith.constant dense<0.000000e+00> : vector<4x8xf32>
    %382 = vector.multi_reduction <add>, %381, %cst_211 [2] : vector<4x8x8xf32> to vector<4x8xf32>
    %383 = vector.shape_cast %382 : vector<4x8xf32> to vector<4x8x1xf32>
    %384 = tpu.reciprocal %383 {approx = true} : vector<4x8x1xf32> -> vector<4x8x1xf32>
    %385 = vector.broadcast %384 : vector<4x8x1xf32> to vector<4x8x8xf32>
    %386 = arith.mulf %381, %385 : vector<4x8x8xf32>
    %387 = arith.truncf %386 : vector<4x8x8xf32> to vector<4x8x8xbf16>
    %388 = arith.truncf %365 : vector<4x8x8xf32> to vector<4x8x8xbf16>
    %cst_212 = arith.constant dense<0.000000e+00> : vector<4x8x8xf32>
    %389 = tpu.matmul %387, %388, %cst_212 {dimension_numbers = #tpu.dot_dimension_numbers<[2], [1], [1], [2], [0, 0, 0, 1, 1, 2], [0], [0]>} : vector<4x8x8xbf16>, vector<4x8x8xbf16>, vector<4x8x8xf32> -> vector<4x8x8xf32>
    %390 = arith.truncf %389 : vector<4x8x8xf32> to vector<4x8x8xbf16>
    %cst_213 = arith.constant dense<0.000000e+00> : vector<4x8x32xf32>
    %391 = tpu.matmul %390, %367, %cst_213 {dimension_numbers = #tpu.dot_dimension_numbers<[2], [1], [1], [2], [0, 0, 0, 1, 1, 2], [0], [0]>} : vector<4x8x8xbf16>, vector<4x8x32xbf16>, vector<4x8x32xf32> -> vector<4x8x32xf32>
    %cst_214 = arith.constant dense<0.000000e+00> : vector<8x32xf32>
    %392 = vector.multi_reduction <add>, %391, %cst_214 [0] : vector<4x8x32xf32> to vector<8x32xf32>
    %393 = vector.broadcast %369 : vector<1x32xf32> to vector<8x32xf32>
    %394 = arith.addf %392, %393 : vector<8x32xf32>
    %395 = arith.addf %317, %394 : vector<8x32xf32>
    %c0_215 = arith.constant 0 : index
    %c0_216 = arith.constant 0 : index
    %c0_217 = arith.constant 0 : index
    %396 = vector.load %arg31[%c0_215, %c0_216, %c0_217] : memref<2x1x32xf32, #tpu.memory_space<vmem>>, vector<1x1x32xf32>
    %397 = vector.shape_cast %396 : vector<1x1x32xf32> to vector<1x32xf32>
    %c0_218 = arith.constant 0 : index
    %c0_219 = arith.constant 0 : index
    %c0_220 = arith.constant 0 : index
    %398 = vector.load %arg32[%c0_218, %c0_219, %c0_220] : memref<2x1x32xf32, #tpu.memory_space<vmem>>, vector<1x1x32xf32>
    %399 = vector.shape_cast %398 : vector<1x1x32xf32> to vector<1x32xf32>
    %c0_221 = arith.constant 0 : index
    %c0_222 = arith.constant 0 : index
    %c0_223 = arith.constant 0 : index
    %400 = vector.load %arg33[%c0_221, %c0_222, %c0_223] : memref<2x32x64xbf16, #tpu.memory_space<vmem>>, vector<1x32x64xbf16>
    %401 = vector.shape_cast %400 : vector<1x32x64xbf16> to vector<32x64xbf16>
    %c0_224 = arith.constant 0 : index
    %c0_225 = arith.constant 0 : index
    %c0_226 = arith.constant 0 : index
    %402 = vector.load %arg34[%c0_224, %c0_225, %c0_226] : memref<2x1x64xf32, #tpu.memory_space<vmem>>, vector<1x1x64xf32>
    %403 = vector.shape_cast %402 : vector<1x1x64xf32> to vector<1x64xf32>
    %c0_227 = arith.constant 0 : index
    %c0_228 = arith.constant 0 : index
    %c0_229 = arith.constant 0 : index
    %404 = vector.load %arg35[%c0_227, %c0_228, %c0_229] : memref<2x64x32xbf16, #tpu.memory_space<vmem>>, vector<1x64x32xbf16>
    %405 = vector.shape_cast %404 : vector<1x64x32xbf16> to vector<64x32xbf16>
    %c0_230 = arith.constant 0 : index
    %c0_231 = arith.constant 0 : index
    %c0_232 = arith.constant 0 : index
    %406 = vector.load %arg36[%c0_230, %c0_231, %c0_232] : memref<2x1x32xf32, #tpu.memory_space<vmem>>, vector<1x1x32xf32>
    %407 = vector.shape_cast %406 : vector<1x1x32xf32> to vector<1x32xf32>
    %cst_233 = arith.constant dense<0.000000e+00> : vector<8xf32>
    %408 = vector.multi_reduction <add>, %395, %cst_233 [1] : vector<8x32xf32> to vector<8xf32>
    %409 = vector.shape_cast %408 : vector<8xf32> to vector<8x1xf32>
    %cst_234 = arith.constant 3.200000e+01 : f32
    %410 = vector.broadcast %cst_234 : f32 to vector<8x1xf32>
    %411 = arith.divf %409, %410 : vector<8x1xf32>
    %412 = vector.broadcast %411 : vector<8x1xf32> to vector<8x32xf32>
    %413 = arith.subf %395, %412 : vector<8x32xf32>
    %414 = arith.mulf %413, %413 : vector<8x32xf32>
    %cst_235 = arith.constant dense<0.000000e+00> : vector<8xf32>
    %415 = vector.multi_reduction <add>, %414, %cst_235 [1] : vector<8x32xf32> to vector<8xf32>
    %416 = vector.shape_cast %415 : vector<8xf32> to vector<8x1xf32>
    %cst_236 = arith.constant 0.0322580636 : f32
    %417 = vector.broadcast %cst_236 : f32 to vector<8x1xf32>
    %418 = arith.mulf %416, %417 : vector<8x1xf32>
    %419 = vector.broadcast %397 : vector<1x32xf32> to vector<8x32xf32>
    %420 = arith.mulf %419, %413 : vector<8x32xf32>
    %421 = math.sqrt %418 : vector<8x1xf32>
    %cst_237 = arith.constant 9.99999997E-7 : f32
    %422 = vector.broadcast %cst_237 : f32 to vector<8x1xf32>
    %423 = arith.addf %421, %422 : vector<8x1xf32>
    %424 = vector.broadcast %423 : vector<8x1xf32> to vector<8x32xf32>
    %425 = arith.divf %420, %424 : vector<8x32xf32>
    %426 = vector.broadcast %399 : vector<1x32xf32> to vector<8x32xf32>
    %427 = arith.addf %425, %426 : vector<8x32xf32>
    %428 = arith.truncf %427 : vector<8x32xf32> to vector<8x32xbf16>
    %cst_238 = arith.constant dense<0.000000e+00> : vector<8x64xf32>
    %429 = tpu.matmul %428, %401, %cst_238 {dimension_numbers = #tpu.dot_dimension_numbers<[1], [0], [0], [1], [0, 0, 1, 1], [], []>} : vector<8x32xbf16>, vector<32x64xbf16>, vector<8x64xf32> -> vector<8x64xf32>
    %430 = vector.broadcast %403 : vector<1x64xf32> to vector<8x64xf32>
    %431 = arith.addf %429, %430 : vector<8x64xf32>
    %cst_239 = arith.constant 0.000000e+00 : f32
    %432 = vector.broadcast %cst_239 : f32 to vector<8x64xf32>
    %433 = arith.maximumf %431, %432 : vector<8x64xf32>
    %434 = arith.truncf %433 : vector<8x64xf32> to vector<8x64xbf16>
    %cst_240 = arith.constant dense<0.000000e+00> : vector<8x32xf32>
    %435 = tpu.matmul %434, %405, %cst_240 {dimension_numbers = #tpu.dot_dimension_numbers<[1], [0], [0], [1], [0, 0, 1, 1], [], []>} : vector<8x64xbf16>, vector<64x32xbf16>, vector<8x32xf32> -> vector<8x32xf32>
    %436 = vector.broadcast %407 : vector<1x32xf32> to vector<8x32xf32>
    %437 = arith.addf %435, %436 : vector<8x32xf32>
    %438 = arith.addf %395, %437 : vector<8x32xf32>
    %c1_241 = arith.constant 1 : index
    %c0_242 = arith.constant 0 : index
    %c0_243 = arith.constant 0 : index
    %439 = vector.load %arg17[%c1_241, %c0_242, %c0_243] : memref<2x1x32xf32, #tpu.memory_space<vmem>>, vector<1x1x32xf32>
    %440 = vector.shape_cast %439 : vector<1x1x32xf32> to vector<1x32xf32>
    %c1_244 = arith.constant 1 : index
    %c0_245 = arith.constant 0 : index
    %c0_246 = arith.constant 0 : index
    %441 = vector.load %arg18[%c1_244, %c0_245, %c0_246] : memref<2x1x32xf32, #tpu.memory_space<vmem>>, vector<1x1x32xf32>
    %442 = vector.shape_cast %441 : vector<1x1x32xf32> to vector<1x32xf32>
    %cst_247 = arith.constant dense<0.000000e+00> : vector<8xf32>
    %443 = vector.multi_reduction <add>, %438, %cst_247 [1] : vector<8x32xf32> to vector<8xf32>
    %444 = vector.shape_cast %443 : vector<8xf32> to vector<8x1xf32>
    %cst_248 = arith.constant 3.200000e+01 : f32
    %445 = vector.broadcast %cst_248 : f32 to vector<8x1xf32>
    %446 = arith.divf %444, %445 : vector<8x1xf32>
    %447 = vector.broadcast %446 : vector<8x1xf32> to vector<8x32xf32>
    %448 = arith.subf %438, %447 : vector<8x32xf32>
    %449 = arith.mulf %448, %448 : vector<8x32xf32>
    %cst_249 = arith.constant dense<0.000000e+00> : vector<8xf32>
    %450 = vector.multi_reduction <add>, %449, %cst_249 [1] : vector<8x32xf32> to vector<8xf32>
    %451 = vector.shape_cast %450 : vector<8xf32> to vector<8x1xf32>
    %cst_250 = arith.constant 0.0322580636 : f32
    %452 = vector.broadcast %cst_250 : f32 to vector<8x1xf32>
    %453 = arith.mulf %451, %452 : vector<8x1xf32>
    %454 = vector.broadcast %440 : vector<1x32xf32> to vector<8x32xf32>
    %455 = arith.mulf %454, %448 : vector<8x32xf32>
    %456 = math.sqrt %453 : vector<8x1xf32>
    %cst_251 = arith.constant 9.99999997E-7 : f32
    %457 = vector.broadcast %cst_251 : f32 to vector<8x1xf32>
    %458 = arith.addf %456, %457 : vector<8x1xf32>
    %459 = vector.broadcast %458 : vector<8x1xf32> to vector<8x32xf32>
    %460 = arith.divf %455, %459 : vector<8x32xf32>
    %461 = vector.broadcast %442 : vector<1x32xf32> to vector<8x32xf32>
    %462 = arith.addf %460, %461 : vector<8x32xf32>
    %c1_252 = arith.constant 1 : index
    %c0_253 = arith.constant 0 : index
    %c0_254 = arith.constant 0 : index
    %c0_255 = arith.constant 0 : index
    %463 = vector.load %arg19[%c1_252, %c0_253, %c0_254, %c0_255] : memref<2x4x32x24xbf16, #tpu.memory_space<vmem>>, vector<1x4x32x24xbf16>
    %464 = vector.shape_cast %463 : vector<1x4x32x24xbf16> to vector<4x32x24xbf16>
    %c1_256 = arith.constant 1 : index
    %c0_257 = arith.constant 0 : index
    %c0_258 = arith.constant 0 : index
    %c0_259 = arith.constant 0 : index
    %465 = vector.load %arg20[%c1_256, %c0_257, %c0_258, %c0_259] : memref<2x4x1x24xf32, #tpu.memory_space<vmem>>, vector<1x4x1x24xf32>
    %466 = vector.shape_cast %465 : vector<1x4x1x24xf32> to vector<4x1x24xf32>
    %467 = arith.truncf %462 : vector<8x32xf32> to vector<8x32xbf16>
    %468 = vector.shape_cast %467 : vector<8x32xbf16> to vector<1x8x32xbf16>
    %469 = vector.shape_cast %468 : vector<1x8x32xbf16> to vector<1x8x32xbf16>
    %470 = vector.broadcast %469 : vector<1x8x32xbf16> to vector<4x8x32xbf16>
    %cst_260 = arith.constant dense<0.000000e+00> : vector<4x8x24xf32>
    %471 = tpu.matmul %470, %464, %cst_260 {dimension_numbers = #tpu.dot_dimension_numbers<[2], [1], [1], [2], [0, 0, 0, 1, 1, 2], [0], [0]>} : vector<4x8x32xbf16>, vector<4x32x24xbf16>, vector<4x8x24xf32> -> vector<4x8x24xf32>
    %472 = vector.broadcast %466 : vector<4x1x24xf32> to vector<4x8x24xf32>
    %473 = arith.addf %471, %472 : vector<4x8x24xf32>
    %474 = vector.extract_strided_slice %473 {offsets = [0, 0, 0], sizes = [4, 8, 8], strides = [1, 1, 1]} : vector<4x8x24xf32> to vector<4x8x8xf32>
    %475 = vector.extract_strided_slice %473 {offsets = [0, 0, 8], sizes = [4, 8, 8], strides = [1, 1, 1]} : vector<4x8x24xf32> to vector<4x8x8xf32>
    %476 = vector.extract_strided_slice %473 {offsets = [0, 0, 16], sizes = [4, 8, 8], strides = [1, 1, 1]} : vector<4x8x24xf32> to vector<4x8x8xf32>
    %c1_261 = arith.constant 1 : index
    %c0_262 = arith.constant 0 : index
    %c0_263 = arith.constant 0 : index
    %c0_264 = arith.constant 0 : index
    %477 = vector.load %arg21[%c1_261, %c0_262, %c0_263, %c0_264] : memref<2x4x8x32xbf16, #tpu.memory_space<vmem>>, vector<1x4x8x32xbf16>
    %478 = vector.shape_cast %477 : vector<1x4x8x32xbf16> to vector<4x8x32xbf16>
    %c1_265 = arith.constant 1 : index
    %c0_266 = arith.constant 0 : index
    %c0_267 = arith.constant 0 : index
    %479 = vector.load %arg22[%c1_265, %c0_266, %c0_267] : memref<2x1x32xf32, #tpu.memory_space<vmem>>, vector<1x1x32xf32>
    %480 = vector.shape_cast %479 : vector<1x1x32xf32> to vector<1x32xf32>
    %cst_268 = arith.constant 0.353553385 : f32
    %481 = vector.broadcast %cst_268 : f32 to vector<4x8x8xf32>
    %482 = arith.mulf %474, %481 : vector<4x8x8xf32>
    %483 = arith.truncf %482 : vector<4x8x8xf32> to vector<4x8x8xbf16>
    %484 = arith.truncf %475 : vector<4x8x8xf32> to vector<4x8x8xbf16>
    %cst_269 = arith.constant dense<0.000000e+00> : vector<4x8x8xf32>
    %485 = tpu.matmul %483, %484, %cst_269 {dimension_numbers = #tpu.dot_dimension_numbers<[2], [2], [1], [1], [0, 0, 0, 1, 1, 1], [0], [0]>} : vector<4x8x8xbf16>, vector<4x8x8xbf16>, vector<4x8x8xf32> -> vector<4x8x8xf32>
    %486 = vector.broadcast %1 : vector<1x8x8xf32> to vector<4x8x8xf32>
    %487 = arith.addf %485, %486 : vector<4x8x8xf32>
    %cst_270 = arith.constant dense<0xFF800000> : vector<4x8xf32>
    %488 = vector.multi_reduction <maximumf>, %487, %cst_270 [2] : vector<4x8x8xf32> to vector<4x8xf32>
    %489 = vector.shape_cast %488 : vector<4x8xf32> to vector<4x8x1xf32>
    %490 = vector.broadcast %489 : vector<4x8x1xf32> to vector<4x8x8xf32>
    %491 = arith.subf %487, %490 : vector<4x8x8xf32>
    %492 = math.exp %491 : vector<4x8x8xf32>
    %cst_271 = arith.constant dense<0.000000e+00> : vector<4x8xf32>
    %493 = vector.multi_reduction <add>, %492, %cst_271 [2] : vector<4x8x8xf32> to vector<4x8xf32>
    %494 = vector.shape_cast %493 : vector<4x8xf32> to vector<4x8x1xf32>
    %495 = tpu.reciprocal %494 {approx = true} : vector<4x8x1xf32> -> vector<4x8x1xf32>
    %496 = vector.broadcast %495 : vector<4x8x1xf32> to vector<4x8x8xf32>
    %497 = arith.mulf %492, %496 : vector<4x8x8xf32>
    %498 = arith.truncf %497 : vector<4x8x8xf32> to vector<4x8x8xbf16>
    %499 = arith.truncf %476 : vector<4x8x8xf32> to vector<4x8x8xbf16>
    %cst_272 = arith.constant dense<0.000000e+00> : vector<4x8x8xf32>
    %500 = tpu.matmul %498, %499, %cst_272 {dimension_numbers = #tpu.dot_dimension_numbers<[2], [1], [1], [2], [0, 0, 0, 1, 1, 2], [0], [0]>} : vector<4x8x8xbf16>, vector<4x8x8xbf16>, vector<4x8x8xf32> -> vector<4x8x8xf32>
    %501 = arith.truncf %500 : vector<4x8x8xf32> to vector<4x8x8xbf16>
    %cst_273 = arith.constant dense<0.000000e+00> : vector<4x8x32xf32>
    %502 = tpu.matmul %501, %478, %cst_273 {dimension_numbers = #tpu.dot_dimension_numbers<[2], [1], [1], [2], [0, 0, 0, 1, 1, 2], [0], [0]>} : vector<4x8x8xbf16>, vector<4x8x32xbf16>, vector<4x8x32xf32> -> vector<4x8x32xf32>
    %cst_274 = arith.constant dense<0.000000e+00> : vector<8x32xf32>
    %503 = vector.multi_reduction <add>, %502, %cst_274 [0] : vector<4x8x32xf32> to vector<8x32xf32>
    %504 = vector.broadcast %480 : vector<1x32xf32> to vector<8x32xf32>
    %505 = arith.addf %503, %504 : vector<8x32xf32>
    %506 = arith.addf %438, %505 : vector<8x32xf32>
    %c1_275 = arith.constant 1 : index
    %c0_276 = arith.constant 0 : index
    %c0_277 = arith.constant 0 : index
    %507 = vector.load %arg23[%c1_275, %c0_276, %c0_277] : memref<2x1x32xf32, #tpu.memory_space<vmem>>, vector<1x1x32xf32>
    %508 = vector.shape_cast %507 : vector<1x1x32xf32> to vector<1x32xf32>
    %c1_278 = arith.constant 1 : index
    %c0_279 = arith.constant 0 : index
    %c0_280 = arith.constant 0 : index
    %509 = vector.load %arg24[%c1_278, %c0_279, %c0_280] : memref<2x1x32xf32, #tpu.memory_space<vmem>>, vector<1x1x32xf32>
    %510 = vector.shape_cast %509 : vector<1x1x32xf32> to vector<1x32xf32>
    %cst_281 = arith.constant dense<0.000000e+00> : vector<8xf32>
    %511 = vector.multi_reduction <add>, %506, %cst_281 [1] : vector<8x32xf32> to vector<8xf32>
    %512 = vector.shape_cast %511 : vector<8xf32> to vector<8x1xf32>
    %cst_282 = arith.constant 3.200000e+01 : f32
    %513 = vector.broadcast %cst_282 : f32 to vector<8x1xf32>
    %514 = arith.divf %512, %513 : vector<8x1xf32>
    %515 = vector.broadcast %514 : vector<8x1xf32> to vector<8x32xf32>
    %516 = arith.subf %506, %515 : vector<8x32xf32>
    %517 = arith.mulf %516, %516 : vector<8x32xf32>
    %cst_283 = arith.constant dense<0.000000e+00> : vector<8xf32>
    %518 = vector.multi_reduction <add>, %517, %cst_283 [1] : vector<8x32xf32> to vector<8xf32>
    %519 = vector.shape_cast %518 : vector<8xf32> to vector<8x1xf32>
    %cst_284 = arith.constant 0.0322580636 : f32
    %520 = vector.broadcast %cst_284 : f32 to vector<8x1xf32>
    %521 = arith.mulf %519, %520 : vector<8x1xf32>
    %522 = vector.broadcast %508 : vector<1x32xf32> to vector<8x32xf32>
    %523 = arith.mulf %522, %516 : vector<8x32xf32>
    %524 = math.sqrt %521 : vector<8x1xf32>
    %cst_285 = arith.constant 9.99999997E-7 : f32
    %525 = vector.broadcast %cst_285 : f32 to vector<8x1xf32>
    %526 = arith.addf %524, %525 : vector<8x1xf32>
    %527 = vector.broadcast %526 : vector<8x1xf32> to vector<8x32xf32>
    %528 = arith.divf %523, %527 : vector<8x32xf32>
    %529 = vector.broadcast %510 : vector<1x32xf32> to vector<8x32xf32>
    %530 = arith.addf %528, %529 : vector<8x32xf32>
    %c1_286 = arith.constant 1 : index
    %c0_287 = arith.constant 0 : index
    %c0_288 = arith.constant 0 : index
    %c0_289 = arith.constant 0 : index
    %531 = vector.load %arg25[%c1_286, %c0_287, %c0_288, %c0_289] : memref<2x4x32x8xbf16, #tpu.memory_space<vmem>>, vector<1x4x32x8xbf16>
    %532 = vector.shape_cast %531 : vector<1x4x32x8xbf16> to vector<4x32x8xbf16>
    %c1_290 = arith.constant 1 : index
    %c0_291 = arith.constant 0 : index
    %c0_292 = arith.constant 0 : index
    %c0_293 = arith.constant 0 : index
    %533 = vector.load %arg26[%c1_290, %c0_291, %c0_292, %c0_293] : memref<2x4x1x8xf32, #tpu.memory_space<vmem>>, vector<1x4x1x8xf32>
    %534 = vector.shape_cast %533 : vector<1x4x1x8xf32> to vector<4x1x8xf32>
    %535 = arith.truncf %530 : vector<8x32xf32> to vector<8x32xbf16>
    %536 = vector.shape_cast %535 : vector<8x32xbf16> to vector<1x8x32xbf16>
    %537 = vector.shape_cast %536 : vector<1x8x32xbf16> to vector<1x8x32xbf16>
    %538 = vector.broadcast %537 : vector<1x8x32xbf16> to vector<4x8x32xbf16>
    %cst_294 = arith.constant dense<0.000000e+00> : vector<4x8x8xf32>
    %539 = tpu.matmul %538, %532, %cst_294 {dimension_numbers = #tpu.dot_dimension_numbers<[2], [1], [1], [2], [0, 0, 0, 1, 1, 2], [0], [0]>} : vector<4x8x32xbf16>, vector<4x32x8xbf16>, vector<4x8x8xf32> -> vector<4x8x8xf32>
    %540 = vector.broadcast %534 : vector<4x1x8xf32> to vector<4x8x8xf32>
    %541 = arith.addf %539, %540 : vector<4x8x8xf32>
    %c1_295 = arith.constant 1 : index
    %c0_296 = arith.constant 0 : index
    %c0_297 = arith.constant 0 : index
    %c0_298 = arith.constant 0 : index
    %542 = vector.load %arg27[%c1_295, %c0_296, %c0_297, %c0_298] : memref<2x4x32x16xbf16, #tpu.memory_space<vmem>>, vector<1x4x32x16xbf16>
    %543 = vector.shape_cast %542 : vector<1x4x32x16xbf16> to vector<4x32x16xbf16>
    %c1_299 = arith.constant 1 : index
    %c0_300 = arith.constant 0 : index
    %c0_301 = arith.constant 0 : index
    %c0_302 = arith.constant 0 : index
    %544 = vector.load %arg28[%c1_299, %c0_300, %c0_301, %c0_302] : memref<2x4x1x16xf32, #tpu.memory_space<vmem>>, vector<1x4x1x16xf32>
    %545 = vector.shape_cast %544 : vector<1x4x1x16xf32> to vector<4x1x16xf32>
    %546 = arith.truncf %247 : vector<8x32xf32> to vector<8x32xbf16>
    %547 = vector.shape_cast %546 : vector<8x32xbf16> to vector<1x8x32xbf16>
    %548 = vector.shape_cast %547 : vector<1x8x32xbf16> to vector<1x8x32xbf16>
    %549 = vector.broadcast %548 : vector<1x8x32xbf16> to vector<4x8x32xbf16>
    %cst_303 = arith.constant dense<0.000000e+00> : vector<4x8x16xf32>
    %550 = tpu.matmul %549, %543, %cst_303 {dimension_numbers = #tpu.dot_dimension_numbers<[2], [1], [1], [2], [0, 0, 0, 1, 1, 2], [0], [0]>} : vector<4x8x32xbf16>, vector<4x32x16xbf16>, vector<4x8x16xf32> -> vector<4x8x16xf32>
    %551 = vector.broadcast %545 : vector<4x1x16xf32> to vector<4x8x16xf32>
    %552 = arith.addf %550, %551 : vector<4x8x16xf32>
    %553 = vector.extract_strided_slice %552 {offsets = [0, 0, 0], sizes = [4, 8, 8], strides = [1, 1, 1]} : vector<4x8x16xf32> to vector<4x8x8xf32>
    %554 = vector.extract_strided_slice %552 {offsets = [0, 0, 8], sizes = [4, 8, 8], strides = [1, 1, 1]} : vector<4x8x16xf32> to vector<4x8x8xf32>
    %c1_304 = arith.constant 1 : index
    %c0_305 = arith.constant 0 : index
    %c0_306 = arith.constant 0 : index
    %c0_307 = arith.constant 0 : index
    %555 = vector.load %arg29[%c1_304, %c0_305, %c0_306, %c0_307] : memref<2x4x8x32xbf16, #tpu.memory_space<vmem>>, vector<1x4x8x32xbf16>
    %556 = vector.shape_cast %555 : vector<1x4x8x32xbf16> to vector<4x8x32xbf16>
    %c1_308 = arith.constant 1 : index
    %c0_309 = arith.constant 0 : index
    %c0_310 = arith.constant 0 : index
    %557 = vector.load %arg30[%c1_308, %c0_309, %c0_310] : memref<2x1x32xf32, #tpu.memory_space<vmem>>, vector<1x1x32xf32>
    %558 = vector.shape_cast %557 : vector<1x1x32xf32> to vector<1x32xf32>
    %cst_311 = arith.constant 0.353553385 : f32
    %559 = vector.broadcast %cst_311 : f32 to vector<4x8x8xf32>
    %560 = arith.mulf %541, %559 : vector<4x8x8xf32>
    %561 = arith.truncf %560 : vector<4x8x8xf32> to vector<4x8x8xbf16>
    %562 = arith.truncf %553 : vector<4x8x8xf32> to vector<4x8x8xbf16>
    %cst_312 = arith.constant dense<0.000000e+00> : vector<4x8x8xf32>
    %563 = tpu.matmul %561, %562, %cst_312 {dimension_numbers = #tpu.dot_dimension_numbers<[2], [2], [1], [1], [0, 0, 0, 1, 1, 1], [0], [0]>} : vector<4x8x8xbf16>, vector<4x8x8xbf16>, vector<4x8x8xf32> -> vector<4x8x8xf32>
    %564 = vector.broadcast %0 : vector<1x1x8xf32> to vector<4x8x8xf32>
    %565 = arith.addf %563, %564 : vector<4x8x8xf32>
    %cst_313 = arith.constant dense<0xFF800000> : vector<4x8xf32>
    %566 = vector.multi_reduction <maximumf>, %565, %cst_313 [2] : vector<4x8x8xf32> to vector<4x8xf32>
    %567 = vector.shape_cast %566 : vector<4x8xf32> to vector<4x8x1xf32>
    %568 = vector.broadcast %567 : vector<4x8x1xf32> to vector<4x8x8xf32>
    %569 = arith.subf %565, %568 : vector<4x8x8xf32>
    %570 = math.exp %569 : vector<4x8x8xf32>
    %cst_314 = arith.constant dense<0.000000e+00> : vector<4x8xf32>
    %571 = vector.multi_reduction <add>, %570, %cst_314 [2] : vector<4x8x8xf32> to vector<4x8xf32>
    %572 = vector.shape_cast %571 : vector<4x8xf32> to vector<4x8x1xf32>
    %573 = tpu.reciprocal %572 {approx = true} : vector<4x8x1xf32> -> vector<4x8x1xf32>
    %574 = vector.broadcast %573 : vector<4x8x1xf32> to vector<4x8x8xf32>
    %575 = arith.mulf %570, %574 : vector<4x8x8xf32>
    %576 = arith.truncf %575 : vector<4x8x8xf32> to vector<4x8x8xbf16>
    %577 = arith.truncf %554 : vector<4x8x8xf32> to vector<4x8x8xbf16>
    %cst_315 = arith.constant dense<0.000000e+00> : vector<4x8x8xf32>
    %578 = tpu.matmul %576, %577, %cst_315 {dimension_numbers = #tpu.dot_dimension_numbers<[2], [1], [1], [2], [0, 0, 0, 1, 1, 2], [0], [0]>} : vector<4x8x8xbf16>, vector<4x8x8xbf16>, vector<4x8x8xf32> -> vector<4x8x8xf32>
    %579 = arith.truncf %578 : vector<4x8x8xf32> to vector<4x8x8xbf16>
    %cst_316 = arith.constant dense<0.000000e+00> : vector<4x8x32xf32>
    %580 = tpu.matmul %579, %556, %cst_316 {dimension_numbers = #tpu.dot_dimension_numbers<[2], [1], [1], [2], [0, 0, 0, 1, 1, 2], [0], [0]>} : vector<4x8x8xbf16>, vector<4x8x32xbf16>, vector<4x8x32xf32> -> vector<4x8x32xf32>
    %cst_317 = arith.constant dense<0.000000e+00> : vector<8x32xf32>
    %581 = vector.multi_reduction <add>, %580, %cst_317 [0] : vector<4x8x32xf32> to vector<8x32xf32>
    %582 = vector.broadcast %558 : vector<1x32xf32> to vector<8x32xf32>
    %583 = arith.addf %581, %582 : vector<8x32xf32>
    %584 = arith.addf %506, %583 : vector<8x32xf32>
    %c1_318 = arith.constant 1 : index
    %c0_319 = arith.constant 0 : index
    %c0_320 = arith.constant 0 : index
    %585 = vector.load %arg31[%c1_318, %c0_319, %c0_320] : memref<2x1x32xf32, #tpu.memory_space<vmem>>, vector<1x1x32xf32>
    %586 = vector.shape_cast %585 : vector<1x1x32xf32> to vector<1x32xf32>
    %c1_321 = arith.constant 1 : index
    %c0_322 = arith.constant 0 : index
    %c0_323 = arith.constant 0 : index
    %587 = vector.load %arg32[%c1_321, %c0_322, %c0_323] : memref<2x1x32xf32, #tpu.memory_space<vmem>>, vector<1x1x32xf32>
    %588 = vector.shape_cast %587 : vector<1x1x32xf32> to vector<1x32xf32>
    %c1_324 = arith.constant 1 : index
    %c0_325 = arith.constant 0 : index
    %c0_326 = arith.constant 0 : index
    %589 = vector.load %arg33[%c1_324, %c0_325, %c0_326] : memref<2x32x64xbf16, #tpu.memory_space<vmem>>, vector<1x32x64xbf16>
    %590 = vector.shape_cast %589 : vector<1x32x64xbf16> to vector<32x64xbf16>
    %c1_327 = arith.constant 1 : index
    %c0_328 = arith.constant 0 : index
    %c0_329 = arith.constant 0 : index
    %591 = vector.load %arg34[%c1_327, %c0_328, %c0_329] : memref<2x1x64xf32, #tpu.memory_space<vmem>>, vector<1x1x64xf32>
    %592 = vector.shape_cast %591 : vector<1x1x64xf32> to vector<1x64xf32>
    %c1_330 = arith.constant 1 : index
    %c0_331 = arith.constant 0 : index
    %c0_332 = arith.constant 0 : index
    %593 = vector.load %arg35[%c1_330, %c0_331, %c0_332] : memref<2x64x32xbf16, #tpu.memory_space<vmem>>, vector<1x64x32xbf16>
    %594 = vector.shape_cast %593 : vector<1x64x32xbf16> to vector<64x32xbf16>
    %c1_333 = arith.constant 1 : index
    %c0_334 = arith.constant 0 : index
    %c0_335 = arith.constant 0 : index
    %595 = vector.load %arg36[%c1_333, %c0_334, %c0_335] : memref<2x1x32xf32, #tpu.memory_space<vmem>>, vector<1x1x32xf32>
    %596 = vector.shape_cast %595 : vector<1x1x32xf32> to vector<1x32xf32>
    %cst_336 = arith.constant dense<0.000000e+00> : vector<8xf32>
    %597 = vector.multi_reduction <add>, %584, %cst_336 [1] : vector<8x32xf32> to vector<8xf32>
    %598 = vector.shape_cast %597 : vector<8xf32> to vector<8x1xf32>
    %cst_337 = arith.constant 3.200000e+01 : f32
    %599 = vector.broadcast %cst_337 : f32 to vector<8x1xf32>
    %600 = arith.divf %598, %599 : vector<8x1xf32>
    %601 = vector.broadcast %600 : vector<8x1xf32> to vector<8x32xf32>
    %602 = arith.subf %584, %601 : vector<8x32xf32>
    %603 = arith.mulf %602, %602 : vector<8x32xf32>
    %cst_338 = arith.constant dense<0.000000e+00> : vector<8xf32>
    %604 = vector.multi_reduction <add>, %603, %cst_338 [1] : vector<8x32xf32> to vector<8xf32>
    %605 = vector.shape_cast %604 : vector<8xf32> to vector<8x1xf32>
    %cst_339 = arith.constant 0.0322580636 : f32
    %606 = vector.broadcast %cst_339 : f32 to vector<8x1xf32>
    %607 = arith.mulf %605, %606 : vector<8x1xf32>
    %608 = vector.broadcast %586 : vector<1x32xf32> to vector<8x32xf32>
    %609 = arith.mulf %608, %602 : vector<8x32xf32>
    %610 = math.sqrt %607 : vector<8x1xf32>
    %cst_340 = arith.constant 9.99999997E-7 : f32
    %611 = vector.broadcast %cst_340 : f32 to vector<8x1xf32>
    %612 = arith.addf %610, %611 : vector<8x1xf32>
    %613 = vector.broadcast %612 : vector<8x1xf32> to vector<8x32xf32>
    %614 = arith.divf %609, %613 : vector<8x32xf32>
    %615 = vector.broadcast %588 : vector<1x32xf32> to vector<8x32xf32>
    %616 = arith.addf %614, %615 : vector<8x32xf32>
    %617 = arith.truncf %616 : vector<8x32xf32> to vector<8x32xbf16>
    %cst_341 = arith.constant dense<0.000000e+00> : vector<8x64xf32>
    %618 = tpu.matmul %617, %590, %cst_341 {dimension_numbers = #tpu.dot_dimension_numbers<[1], [0], [0], [1], [0, 0, 1, 1], [], []>} : vector<8x32xbf16>, vector<32x64xbf16>, vector<8x64xf32> -> vector<8x64xf32>
    %619 = vector.broadcast %592 : vector<1x64xf32> to vector<8x64xf32>
    %620 = arith.addf %618, %619 : vector<8x64xf32>
    %cst_342 = arith.constant 0.000000e+00 : f32
    %621 = vector.broadcast %cst_342 : f32 to vector<8x64xf32>
    %622 = arith.maximumf %620, %621 : vector<8x64xf32>
    %623 = arith.truncf %622 : vector<8x64xf32> to vector<8x64xbf16>
    %cst_343 = arith.constant dense<0.000000e+00> : vector<8x32xf32>
    %624 = tpu.matmul %623, %594, %cst_343 {dimension_numbers = #tpu.dot_dimension_numbers<[1], [0], [0], [1], [0, 0, 1, 1], [], []>} : vector<8x64xbf16>, vector<64x32xbf16>, vector<8x32xf32> -> vector<8x32xf32>
    %625 = vector.broadcast %596 : vector<1x32xf32> to vector<8x32xf32>
    %626 = arith.addf %624, %625 : vector<8x32xf32>
    %627 = arith.addf %584, %626 : vector<8x32xf32>
    %c0_344 = arith.constant 0 : index
    %c0_345 = arith.constant 0 : index
    %628 = vector.load %arg39[%c0_344, %c0_345] : memref<1x32xf32, #tpu.memory_space<vmem>>, vector<1x32xf32>
    %c0_346 = arith.constant 0 : index
    %c0_347 = arith.constant 0 : index
    %629 = vector.load %arg40[%c0_346, %c0_347] : memref<1x32xf32, #tpu.memory_space<vmem>>, vector<1x32xf32>
    %cst_348 = arith.constant dense<0.000000e+00> : vector<8xf32>
    %630 = vector.multi_reduction <add>, %627, %cst_348 [1] : vector<8x32xf32> to vector<8xf32>
    %631 = vector.shape_cast %630 : vector<8xf32> to vector<8x1xf32>
    %cst_349 = arith.constant 3.200000e+01 : f32
    %632 = vector.broadcast %cst_349 : f32 to vector<8x1xf32>
    %633 = arith.divf %631, %632 : vector<8x1xf32>
    %634 = vector.broadcast %633 : vector<8x1xf32> to vector<8x32xf32>
    %635 = arith.subf %627, %634 : vector<8x32xf32>
    %636 = arith.mulf %635, %635 : vector<8x32xf32>
    %cst_350 = arith.constant dense<0.000000e+00> : vector<8xf32>
    %637 = vector.multi_reduction <add>, %636, %cst_350 [1] : vector<8x32xf32> to vector<8xf32>
    %638 = vector.shape_cast %637 : vector<8xf32> to vector<8x1xf32>
    %cst_351 = arith.constant 0.0322580636 : f32
    %639 = vector.broadcast %cst_351 : f32 to vector<8x1xf32>
    %640 = arith.mulf %638, %639 : vector<8x1xf32>
    %641 = vector.broadcast %628 : vector<1x32xf32> to vector<8x32xf32>
    %642 = arith.mulf %641, %635 : vector<8x32xf32>
    %643 = math.sqrt %640 : vector<8x1xf32>
    %cst_352 = arith.constant 9.99999997E-7 : f32
    %644 = vector.broadcast %cst_352 : f32 to vector<8x1xf32>
    %645 = arith.addf %643, %644 : vector<8x1xf32>
    %646 = vector.broadcast %645 : vector<8x1xf32> to vector<8x32xf32>
    %647 = arith.divf %642, %646 : vector<8x32xf32>
    %648 = vector.broadcast %629 : vector<1x32xf32> to vector<8x32xf32>
    %649 = arith.addf %647, %648 : vector<8x32xf32>
    %c0_353 = arith.constant 0 : index
    %c0_354 = arith.constant 0 : index
    %c0_355 = arith.constant 0 : index
    %650 = vector.load %arg41[%c0_353, %c0_354, %c0_355] : memref<1x8x32xf32, #tpu.memory_space<vmem>>, vector<1x8x32xf32>
    %651 = vector.shape_cast %650 : vector<1x8x32xf32> to vector<8x32xf32>
    %652 = vector.shape_cast %649 : vector<8x32xf32> to vector<1x8x32xf32>
    tpu.vector_store %arg41[%c0_353, %c0_354, %c0_355], %652 {strides = array<i32>} : memref<1x8x32xf32, #tpu.memory_space<vmem>>, vector<1x8x32xf32>,
    return
  }
  func.func @transform_0(%arg0: i32) -> (i32, i32, i32) {
    %c0_i32 = arith.constant 0 : i32
    %c0_i32_0 = arith.constant 0 : i32
    %c0_i32_1 = arith.constant 0 : i32
    return %arg0, %c0_i32, %c0_i32_0 : i32, i32, i32
  }
  func.func @transform_1(%arg0: i32) -> (i32, i32, i32) {
    %c0_i32 = arith.constant 0 : i32
    %c0_i32_0 = arith.constant 0 : i32
    %c0_i32_1 = arith.constant 0 : i32
    return %arg0, %c0_i32, %c0_i32_0 : i32, i32, i32
  }
  func.func @transform_2(%arg0: i32) -> (i32, i32, i32) {
    %c0_i32 = arith.constant 0 : i32
    %c0_i32_0 = arith.constant 0 : i32
    %c0_i32_1 = arith.constant 0 : i32
    return %arg0, %c0_i32, %c0_i32_0 : i32, i32, i32
  }
  func.func @transform_3(%arg0: i32) -> (i32, i32, i32) {
    %c0_i32 = arith.constant 0 : i32
    %c0_i32_0 = arith.constant 0 : i32
    %c0_i32_1 = arith.constant 0 : i32
    %c0_i32_2 = arith.constant 0 : i32
    return %c0_i32, %c0_i32_0, %c0_i32_1 : i32, i32, i32
  }
  func.func @transform_4(%arg0: i32) -> (i32, i32, i32) {
    %c0_i32 = arith.constant 0 : i32
    %c0_i32_0 = arith.constant 0 : i32
    %c0_i32_1 = arith.constant 0 : i32
    %c0_i32_2 = arith.constant 0 : i32
    return %c0_i32, %c0_i32_0, %c0_i32_1 : i32, i32, i32
  }
  func.func @transform_5(%arg0: i32) -> (i32, i32, i32) {
    %c0_i32 = arith.constant 0 : i32
    %c0_i32_0 = arith.constant 0 : i32
    %c0_i32_1 = arith.constant 0 : i32
    %c0_i32_2 = arith.constant 0 : i32
    return %c0_i32, %c0_i32_0, %c0_i32_1 : i32, i32, i32
  }
  func.func @transform_6(%arg0: i32) -> (i32, i32, i32, i32) {
    %c0_i32 = arith.constant 0 : i32
    %c0_i32_0 = arith.constant 0 : i32
    %c0_i32_1 = arith.constant 0 : i32
    %c0_i32_2 = arith.constant 0 : i32
    %c0_i32_3 = arith.constant 0 : i32
    return %c0_i32, %c0_i32_0, %c0_i32_1, %c0_i32_2 : i32, i32, i32, i32
  }
  func.func @transform_7(%arg0: i32) -> (i32, i32, i32, i32) {
    %c0_i32 = arith.constant 0 : i32
    %c0_i32_0 = arith.constant 0 : i32
    %c0_i32_1 = arith.constant 0 : i32
    %c0_i32_2 = arith.constant 0 : i32
    %c0_i32_3 = arith.constant 0 : i32
    return %c0_i32, %c0_i32_0, %c0_i32_1, %c0_i32_2 : i32, i32, i32, i32
  }
  func.func @transform_8(%arg0: i32) -> (i32, i32, i32, i32) {
    %c0_i32 = arith.constant 0 : i32
    %c0_i32_0 = arith.constant 0 : i32
    %c0_i32_1 = arith.constant 0 : i32
    %c0_i32_2 = arith.constant 0 : i32
    %c0_i32_3 = arith.constant 0 : i32
    return %c0_i32, %c0_i32_0, %c0_i32_1, %c0_i32_2 : i32, i32, i32, i32
  }
  func.func @transform_9(%arg0: i32) -> (i32, i32, i32) {
    %c0_i32 = arith.constant 0 : i32
    %c0_i32_0 = arith.constant 0 : i32
    %c0_i32_1 = arith.constant 0 : i32
    %c0_i32_2 = arith.constant 0 : i32
    return %c0_i32, %c0_i32_0, %c0_i32_1 : i32, i32, i32
  }
  func.func @transform_10(%arg0: i32) -> (i32, i32, i32) {
    %c0_i32 = arith.constant 0 : i32
    %c0_i32_0 = arith.constant 0 : i32
    %c0_i32_1 = arith.constant 0 : i32
    %c0_i32_2 = arith.constant 0 : i32
    return %c0_i32, %c0_i32_0, %c0_i32_1 : i32, i32, i32
  }
  func.func @transform_11(%arg0: i32) -> (i32, i32, i32) {
    %c0_i32 = arith.constant 0 : i32
    %c0_i32_0 = arith.constant 0 : i32
    %c0_i32_1 = arith.constant 0 : i32
    %c0_i32_2 = arith.constant 0 : i32
    return %c0_i32, %c0_i32_0, %c0_i32_1 : i32, i32, i32
  }
  func.func @transform_12(%arg0: i32) -> (i32, i32, i32) {
    %c0_i32 = arith.constant 0 : i32
    %c0_i32_0 = arith.constant 0 : i32
    %c0_i32_1 = arith.constant 0 : i32
    %c0_i32_2 = arith.constant 0 : i32
    return %c0_i32, %c0_i32_0, %c0_i32_1 : i32, i32, i32
  }
  func.func @transform_13(%arg0: i32) -> (i32, i32, i32) {
    %c0_i32 = arith.constant 0 : i32
    %c0_i32_0 = arith.constant 0 : i32
    %c0_i32_1 = arith.constant 0 : i32
    %c0_i32_2 = arith.constant 0 : i32
    return %c0_i32, %c0_i32_0, %c0_i32_1 : i32, i32, i32
  }
  func.func @transform_14(%arg0: i32) -> (i32, i32, i32) {
    %c0_i32 = arith.constant 0 : i32
    %c0_i32_0 = arith.constant 0 : i32
    %c0_i32_1 = arith.constant 0 : i32
    %c0_i32_2 = arith.constant 0 : i32
    return %c0_i32, %c0_i32_0, %c0_i32_1 : i32, i32, i32
  }
  func.func @transform_15(%arg0: i32) -> (i32, i32, i32) {
    %c0_i32 = arith.constant 0 : i32
    %c0_i32_0 = arith.constant 0 : i32
    %c0_i32_1 = arith.constant 0 : i32
    %c0_i32_2 = arith.constant 0 : i32
    return %c0_i32, %c0_i32_0, %c0_i32_1 : i32, i32, i32
  }
  func.func @transform_16(%arg0: i32) -> (i32, i32, i32) {
    %c0_i32 = arith.constant 0 : i32
    %c0_i32_0 = arith.constant 0 : i32
    %c0_i32_1 = arith.constant 0 : i32
    %c0_i32_2 = arith.constant 0 : i32
    return %c0_i32, %c0_i32_0, %c0_i32_1 : i32, i32, i32
  }
  func.func @transform_17(%arg0: i32) -> (i32, i32, i32) {
    %c0_i32 = arith.constant 0 : i32
    %c0_i32_0 = arith.constant 0 : i32
    %c0_i32_1 = arith.constant 0 : i32
    %c0_i32_2 = arith.constant 0 : i32
    return %c0_i32, %c0_i32_0, %c0_i32_1 : i32, i32, i32
  }
  func.func @transform_18(%arg0: i32) -> (i32, i32, i32, i32) {
    %c0_i32 = arith.constant 0 : i32
    %c0_i32_0 = arith.constant 0 : i32
    %c0_i32_1 = arith.constant 0 : i32
    %c0_i32_2 = arith.constant 0 : i32
    %c0_i32_3 = arith.constant 0 : i32
    return %c0_i32, %c0_i32_0, %c0_i32_1, %c0_i32_2 : i32, i32, i32, i32
  }
  func.func @transform_19(%arg0: i32) -> (i32, i32, i32, i32) {
    %c0_i32 = arith.constant 0 : i32
    %c0_i32_0 = arith.constant 0 : i32
    %c0_i32_1 = arith.constant 0 : i32
    %c0_i32_2 = arith.constant 0 : i32
    %c0_i32_3 = arith.constant 0 : i32
    return %c0_i32, %c0_i32_0, %c0_i32_1, %c0_i32_2 : i32, i32, i32, i32
  }
  func.func @transform_20(%arg0: i32) -> (i32, i32, i32, i32) {
    %c0_i32 = arith.constant 0 : i32
    %c0_i32_0 = arith.constant 0 : i32
    %c0_i32_1 = arith.constant 0 : i32
    %c0_i32_2 = arith.constant 0 : i32
    %c0_i32_3 = arith.constant 0 : i32
    return %c0_i32, %c0_i32_0, %c0_i32_1, %c0_i32_2 : i32, i32, i32, i32
  }
  func.func @transform_21(%arg0: i32) -> (i32, i32, i32) {
    %c0_i32 = arith.constant 0 : i32
    %c0_i32_0 = arith.constant 0 : i32
    %c0_i32_1 = arith.constant 0 : i32
    %c0_i32_2 = arith.constant 0 : i32
    return %c0_i32, %c0_i32_0, %c0_i32_1 : i32, i32, i32
  }
  func.func @transform_22(%arg0: i32) -> (i32, i32, i32) {
    %c0_i32 = arith.constant 0 : i32
    %c0_i32_0 = arith.constant 0 : i32
    %c0_i32_1 = arith.constant 0 : i32
    %c0_i32_2 = arith.constant 0 : i32
    return %c0_i32, %c0_i32_0, %c0_i32_1 : i32, i32, i32
  }
  func.func @transform_23(%arg0: i32) -> (i32, i32, i32) {
    %c0_i32 = arith.constant 0 : i32
    %c0_i32_0 = arith.constant 0 : i32
    %c0_i32_1 = arith.constant 0 : i32
    %c0_i32_2 = arith.constant 0 : i32
    return %c0_i32, %c0_i32_0, %c0_i32_1 : i32, i32, i32
  }
  func.func @transform_24(%arg0: i32) -> (i32, i32, i32, i32) {
    %c0_i32 = arith.constant 0 : i32
    %c0_i32_0 = arith.constant 0 : i32
    %c0_i32_1 = arith.constant 0 : i32
    %c0_i32_2 = arith.constant 0 : i32
    %c0_i32_3 = arith.constant 0 : i32
    return %c0_i32, %c0_i32_0, %c0_i32_1, %c0_i32_2 : i32, i32, i32, i32
  }
  func.func @transform_25(%arg0: i32) -> (i32, i32, i32, i32) {
    %c0_i32 = arith.constant 0 : i32
    %c0_i32_0 = arith.constant 0 : i32
    %c0_i32_1 = arith.constant 0 : i32
    %c0_i32_2 = arith.constant 0 : i32
    %c0_i32_3 = arith.constant 0 : i32
    return %c0_i32, %c0_i32_0, %c0_i32_1, %c0_i32_2 : i32, i32, i32, i32
  }
  func.func @transform_26(%arg0: i32) -> (i32, i32, i32, i32) {
    %c0_i32 = arith.constant 0 : i32
    %c0_i32_0 = arith.constant 0 : i32
    %c0_i32_1 = arith.constant 0 : i32
    %c0_i32_2 = arith.constant 0 : i32
    %c0_i32_3 = arith.constant 0 : i32
    return %c0_i32, %c0_i32_0, %c0_i32_1, %c0_i32_2 : i32, i32, i32, i32
  }
  func.func @transform_27(%arg0: i32) -> (i32, i32, i32, i32) {
    %c0_i32 = arith.constant 0 : i32
    %c0_i32_0 = arith.constant 0 : i32
    %c0_i32_1 = arith.constant 0 : i32
    %c0_i32_2 = arith.constant 0 : i32
    %c0_i32_3 = arith.constant 0 : i32
    return %c0_i32, %c0_i32_0, %c0_i32_1, %c0_i32_2 : i32, i32, i32, i32
  }
  func.func @transform_28(%arg0: i32) -> (i32, i32, i32, i32) {
    %c0_i32 = arith.constant 0 : i32
    %c0_i32_0 = arith.constant 0 : i32
    %c0_i32_1 = arith.constant 0 : i32
    %c0_i32_2 = arith.constant 0 : i32
    %c0_i32_3 = arith.constant 0 : i32
    return %c0_i32, %c0_i32_0, %c0_i32_1, %c0_i32_2 : i32, i32, i32, i32
  }
  func.func @transform_29(%arg0: i32) -> (i32, i32, i32) {
    %c0_i32 = arith.constant 0 : i32
    %c0_i32_0 = arith.constant 0 : i32
    %c0_i32_1 = arith.constant 0 : i32
    %c0_i32_2 = arith.constant 0 : i32
    return %c0_i32, %c0_i32_0, %c0_i32_1 : i32, i32, i32
  }
  func.func @transform_30(%arg0: i32) -> (i32, i32, i32) {
    %c0_i32 = arith.constant 0 : i32
    %c0_i32_0 = arith.constant 0 : i32
    %c0_i32_1 = arith.constant 0 : i32
    %c0_i32_2 = arith.constant 0 : i32
    return %c0_i32, %c0_i32_0, %c0_i32_1 : i32, i32, i32
  }
  func.func @transform_31(%arg0: i32) -> (i32, i32, i32) {
    %c0_i32 = arith.constant 0 : i32
    %c0_i32_0 = arith.constant 0 : i32
    %c0_i32_1 = arith.constant 0 : i32
    %c0_i32_2 = arith.constant 0 : i32
    return %c0_i32, %c0_i32_0, %c0_i32_1 : i32, i32, i32
  }
  func.func @transform_32(%arg0: i32) -> (i32, i32, i32) {
    %c0_i32 = arith.constant 0 : i32
    %c0_i32_0 = arith.constant 0 : i32
    %c0_i32_1 = arith.constant 0 : i32
    %c0_i32_2 = arith.constant 0 : i32
    return %c0_i32, %c0_i32_0, %c0_i32_1 : i32, i32, i32
  }
  func.func @transform_33(%arg0: i32) -> (i32, i32, i32) {
    %c0_i32 = arith.constant 0 : i32
    %c0_i32_0 = arith.constant 0 : i32
    %c0_i32_1 = arith.constant 0 : i32
    %c0_i32_2 = arith.constant 0 : i32
    return %c0_i32, %c0_i32_0, %c0_i32_1 : i32, i32, i32
  }
  func.func @transform_34(%arg0: i32) -> (i32, i32, i32) {
    %c0_i32 = arith.constant 0 : i32
    %c0_i32_0 = arith.constant 0 : i32
    %c0_i32_1 = arith.constant 0 : i32
    %c0_i32_2 = arith.constant 0 : i32
    return %c0_i32, %c0_i32_0, %c0_i32_1 : i32, i32, i32
  }
  func.func @transform_35(%arg0: i32) -> (i32, i32, i32) {
    %c0_i32 = arith.constant 0 : i32
    %c0_i32_0 = arith.constant 0 : i32
    %c0_i32_1 = arith.constant 0 : i32
    %c0_i32_2 = arith.constant 0 : i32
    return %c0_i32, %c0_i32_0, %c0_i32_1 : i32, i32, i32
  }
  func.func @transform_36(%arg0: i32) -> (i32, i32) {
    %c0_i32 = arith.constant 0 : i32
    %c0_i32_0 = arith.constant 0 : i32
    %c0_i32_1 = arith.constant 0 : i32
    return %c0_i32, %c0_i32_0 : i32, i32
  }
  func.func @transform_37(%arg0: i32) -> (i32, i32) {
    %c0_i32 = arith.constant 0 : i32
    %c0_i32_0 = arith.constant 0 : i32
    %c0_i32_1 = arith.constant 0 : i32
    return %c0_i32, %c0_i32_0 : i32, i32
  }
  func.func @transform_38(%arg0: i32) -> (i32, i32) {
    %c0_i32 = arith.constant 0 : i32
    %c0_i32_0 = arith.constant 0 : i32
    %c0_i32_1 = arith.constant 0 : i32
    return %c0_i32, %c0_i32_0 : i32, i32
  }
  func.func @transform_39(%arg0: i32) -> (i32, i32) {
    %c0_i32 = arith.constant 0 : i32
    %c0_i32_0 = arith.constant 0 : i32
    %c0_i32_1 = arith.constant 0 : i32
    return %c0_i32, %c0_i32_0 : i32, i32
  }
  func.func @transform_40(%arg0: i32) -> (i32, i32, i32) {
    %c0_i32 = arith.constant 0 : i32
    %c0_i32_0 = arith.constant 0 : i32
    %c0_i32_1 = arith.constant 0 : i32
    return %arg0, %c0_i32, %c0_i32_0 : i32, i32, i32
  }
}

</mosaic_0001>

<bundles_post_ra>
// kernel: tpu_custom_call.1
= control target key start
LH: loop header
LB: loop body
LE: loop exit
PB: predicated region body
PF: predicated region fallthrough
CT: control target
= control target key end

     0   :  { %s10261_s6 = smov 1   ;;  %s10262_s10 = smov 2   ;;  %s11685_s0 = inlined_call_operand.smem [shape: u32[41], index: -1, kind: input, shape index: {}] }
   0x1   :  { %s10314_s5 = sld [smem:[%s11685_s0]]   ;;  %s10263_s14 = smov 3  }
   0x2   :  { %s10319_s9 = sld [smem:[%s11685_s0 + %s10261_s6]]   ;;  %s10264_s18 = smov 4  }
   0x3   :  { %s10324_s13 = sld [smem:[%s11685_s0 + %s10262_s10]]   ;;  %s10265_s22 = smov 5  }
   0x4   :  { %s10329_s17 = sld [smem:[%s11685_s0 + %s10263_s14]]   ;;  %s10266_s26 = smov 6  }
   0x5   :  { %s10334_s21 = sld [smem:[%s11685_s0 + %s10264_s18]]   ;;  %s10267_s30 = smov 7  }
   0x6   :  { %s10339_s25 = sld [smem:[%s11685_s0 + %s10265_s22]]   ;;  %s10268_s4 = smov 8  }
   0x7   :  { %11737 = sst [smem:[#allocation5_spill]] %s10314_s5  ;;  %s10269_s10 = smov 9  }
   0x8   :  { %11738 = sst [smem:[#allocation6_spill]] %s10319_s9  ;;  %s10270_s15 = smov 10  }
   0x9   :  { %11739 = sst [smem:[#allocation7_spill]] %s10324_s13  ;;  %s10271_s20 = smov 11  }
   0xa   :  { %11740 = sst [smem:[#allocation8_spill]] %s10329_s17  ;;  %s10273_s1 = smov 13  }
   0xb   :  { %11741 = sst [smem:[#allocation9_spill]] %s10334_s21  ;;  %s10274_s7 = smov 14  }
   0xc   :  { %11742 = sst [smem:[#allocation10_spill]] %s10339_s25  ;;  %s10276_s22 = smov 16  }
   0xd   :  { %s10344_s29 = sld [smem:[%s11685_s0 + %s10266_s26]]   ;;  %s10272_s26 = smov 12  }
   0xe   :  { %s10349_s3 = sld [smem:[%s11685_s0 + %s10267_s30]]   ;;  %s10277_s28 = smov 17  }
   0xf   :  { %s10354_s8 = sld [smem:[%s11685_s0 + %s10268_s4]]  }
  0x10   :  { %s10359_s14 = sld [smem:[%s11685_s0 + %s10269_s10]]  }
  0x11   :  { %s10364_s19 = sld [smem:[%s11685_s0 + %s10270_s15]]   ;;  %s10275_s15 = smov 15  }
  0x12   :  { %s10369_s24 = sld [smem:[%s11685_s0 + %s10271_s20]]  }
  0x13   :  { %11743 = sst [smem:[#allocation11_spill]] %s10344_s29 }
  0x14   :  { %11744 = sst [smem:[#allocation12_spill]] %s10349_s3 }
  0x15   :  { %11745 = sst [smem:[#allocation13_spill]] %s10354_s8 }
  0x16   :  { %11746 = sst [smem:[#allocation14_spill]] %s10359_s14 }
  0x17   :  { %11747 = sst [smem:[#allocation15_spill]] %s10364_s19 }
  0x18   :  { %11748 = sst [smem:[#allocation16_spill]] %s10369_s24 }
  0x19   :  { %s10374_s30 = sld [smem:[%s11685_s0 + %s10272_s26]]  }
  0x1a   :  { %s10379_s6 = sld [smem:[%s11685_s0 + %s10273_s1]]  }
  0x1b   :  { %s10384_s12 = sld [smem:[%s11685_s0 + %s10274_s7]]   ;;  %s10278_s7 = smov 18  }
  0x1c   :  { %s10389_s20 = sld [smem:[%s11685_s0 + %s10275_s15]]   ;;  %s10279_s15 = smov 19  }
  0x1d   :  { %s10394_s27 = sld [smem:[%s11685_s0 + %s10276_s22]]   ;;  %s10280_s22 = smov 20  }
  0x1e   :  { %s10399_s4 = sld [smem:[%s11685_s0 + %s10277_s28]]   ;;  %s10281_s28 = smov 21  }
  0x1f   :  { %11749 = sst [smem:[#allocation17_spill]] %s10374_s30 }
  0x20   :  { %11750 = sst [smem:[#allocation18_spill]] %s10379_s6 }
  0x21   :  { %11751 = sst [smem:[#allocation19_spill]] %s10384_s12 }
  0x22   :  { %11752 = sst [smem:[#allocation20_spill]] %s10389_s20 }
  0x23   :  { %11753 = sst [smem:[#allocation21_spill]] %s10394_s27 }
  0x24   :  { %11754 = sst [smem:[#allocation22_spill]] %s10399_s4 }
  0x25   :  { %s10404_s17 = sld [smem:[%s11685_s0 + %s10278_s7]]   ;;  %s10282_s7 = smov 22  }
  0x26   :  { %s10409_s9 = sld [smem:[%s11685_s0 + %s10279_s15]]   ;;  %s10283_s15 = smov 23  }
  0x27   :  { %s10414_s27 = sld [smem:[%s11685_s0 + %s10280_s22]]   ;;  %s10284_s22 = smov 24  }
  0x28   :  { %s10419_s4 = sld [smem:[%s11685_s0 + %s10281_s28]]   ;;  %s10285_s28 = smov 25  }
  0x2b   :  { %11755 = sst [smem:[#allocation23_spill]] %s10404_s17 }
  0x2c   :  { %11756 = sst [smem:[#allocation24_spill]] %s10409_s9 }
  0x2d   :  { %11757 = sst [smem:[#allocation25_spill]] %s10414_s27 }
  0x2e   :  { %11758 = sst [smem:[#allocation26_spill]] %s10419_s4 }
  0x2f   :  { %s10424_s17 = sld [smem:[%s11685_s0 + %s10282_s7]]   ;;  %s10286_s7 = smov 26  }
  0x30   :  { %s10429_s9 = sld [smem:[%s11685_s0 + %s10283_s15]]   ;;  %s10287_s15 = smov 27  }
  0x31   :  { %s10434_s27 = sld [smem:[%s11685_s0 + %s10284_s22]]   ;;  %s10288_s22 = smov 28  }
  0x32   :  { %s10439_s4 = sld [smem:[%s11685_s0 + %s10285_s28]]   ;;  %s10289_s28 = smov 29  }
  0x35   :  { %11759 = sst [smem:[#allocation27_spill]] %s10424_s17 }
  0x36   :  { %11760 = sst [smem:[#allocation28_spill]] %s10429_s9 }
  0x37   :  { %11761 = sst [smem:[#allocation29_spill]] %s10434_s27 }
  0x38   :  { %11762 = sst [smem:[#allocation30_spill]] %s10439_s4 }
  0x39   :  { %s10444_s17 = sld [smem:[%s11685_s0 + %s10286_s7]]   ;;  %s10290_s7 = smov 30  }
  0x3a   :  { %s10449_s9 = sld [smem:[%s11685_s0 + %s10287_s15]]   ;;  %s10291_s15 = smov 31  }
  0x3b   :  { %s10454_s27 = sld [smem:[%s11685_s0 + %s10288_s22]]   ;;  %s10292_s22 = smov 32  }
  0x3c   :  { %s10459_s4 = sld [smem:[%s11685_s0 + %s10289_s28]]   ;;  %s10293_s28 = smov 33  }
  0x3f   :  { %11763 = sst [smem:[#allocation31_spill]] %s10444_s17 }
  0x40   :  { %11764 = sst [smem:[#allocation32_spill]] %s10449_s9 }
  0x41   :  { %11765 = sst [smem:[#allocation33_spill]] %s10454_s27 }
  0x42   :  { %11766 = sst [smem:[#allocation34_spill]] %s10459_s4 }
  0x43   :  { %s10464_s17 = sld [smem:[%s11685_s0 + %s10290_s7]]   ;;  %s10294_s7 = smov 34  }
  0x44   :  { %s10469_s9 = sld [smem:[%s11685_s0 + %s10291_s15]]   ;;  %s10295_s15 = smov 35  }
  0x45   :  { %s10474_s27 = sld [smem:[%s11685_s0 + %s10292_s22]]   ;;  %s10296_s22 = smov 36  }
  0x46   :  { %s10479_s4 = sld [smem:[%s11685_s0 + %s10293_s28]]   ;;  %s10297_s28 = smov 37  }
  0x49   :  { %11767 = sst [smem:[#allocation35_spill]] %s10464_s17 }
  0x4a   :  { %11768 = sst [smem:[#allocation36_spill]] %s10469_s9 }
  0x4b   :  { %11769 = sst [smem:[#allocation37_spill]] %s10474_s27 }
  0x4c   :  { %11770 = sst [smem:[#allocation38_spill]] %s10479_s4 }
  0x4d   :  { %s10484_s17 = sld [smem:[%s11685_s0 + %s10294_s7]]   ;;  %s10298_s7 = smov 38  }
  0x4e   :  { %s10489_s9 = sld [smem:[%s11685_s0 + %s10295_s15]]   ;;  %s10299_s15 = smov 39  }
  0x4f   :  { %s10494_s27 = sld [smem:[%s11685_s0 + %s10296_s22]]   ;;  %s10300_s22 = smov 40  }
  0x50   :  { %s10499_s4 = sld [smem:[%s11685_s0 + %s10297_s28]]  }
  0x53   :  { %11771 = sst [smem:[#allocation39_spill]] %s10484_s17 }
  0x54   :  { %11772 = sst [smem:[#allocation40_spill]] %s10489_s9 }
  0x55   :  { %11773 = sst [smem:[#allocation41_spill]] %s10494_s27 }
  0x56   :  { %11774 = sst [smem:[#allocation42_spill]] %s10499_s4 }
  0x57   :  { %s10504_s17 = sld [smem:[%s11685_s0 + %s10298_s7]]  }
  0x58   :  { %s10509_s9 = sld [smem:[%s11685_s0 + %s10299_s15]]  }
  0x59   :  { %s10514_s27 = sld [smem:[%s11685_s0 + %s10300_s22]]  }
  0x5e   :  { %11775 = sst [smem:[#allocation43_spill]] %s10509_s9 }
  0x5f   :  { %11776 = sst [smem:[#allocation44_spill]] %s10514_s27 }
  0x60   :  { %86 = vsyncpa [#allocation3], 0 }
  0x61   :  { %88 = vsyncpa [#allocation3 + $0x1], 0  ;;  %s10516_s28 = smov 0   ;;  %s10518_s1 = smov 0  }
  0x62   :  { %s10520_s2 = smov 0   ;;  %s10522_s7 = smov 0  }
  0x63 LB: > { %s11777_s30 = sld [smem:[#allocation17_spill]]  ;;  %s11778_s29 = sld [smem:[#allocation11_spill]]  ;;  %s10259_s7 = sphi %s10522_s7, %s11836_s7   ;;  %s10255_s2 = sphi %s10520_s2, %s11838_s2   ;;  %s10251_s1 = sphi %s10518_s1, %s11840_s1   ;;  %s10247_s28 = sphi %s10516_s28, %s11839_s28  }
  0x64   : > { %s11779_s25 = sld [smem:[#allocation10_spill]]  ;;  %s11780_s24 = sld [smem:[#allocation16_spill]] }
  0x65   : > { %s11781_s21 = sld [smem:[#allocation9_spill]]  ;;  %s11782_s20 = sld [smem:[#allocation20_spill]] }
  0x66   : > { %s11783_s19 = sld [smem:[#allocation15_spill]]  ;;  %s11784_s14 = sld [smem:[#allocation14_spill]] }
  0x67   : > { %s11785_s12 = sld [smem:[#allocation19_spill]]  ;;  %s11786_s8 = sld [smem:[#allocation13_spill]] }
  0x68   : > { %s11787_s6 = sld [smem:[#allocation18_spill]]  ;;  %s11788_s3 = sld [smem:[#allocation12_spill]] }
  0x69   : > { %11789 = sst [smem:[#allocation45_spill]] %s10247_s28  ;;  %s10537_s0 = sadd.s32 4294967295, %s10259_s7  }
  0x6a   : > { %11790 = sst [smem:[#allocation46_spill]] %s10255_s2  ;;  %s8424_s10 = sadd.s32 4294967294, %s10259_s7  }
  0x6b   : > { %11791 = sst [smem:[#allocation47_spill]] %s10259_s7  ;;  %s10541_s11 = sadd.s32 1, %s10259_s7  }
  0x6c   : > { %11792 = sst [smem:[#allocation48_spill]] %s10541_s11  ;;  %s956_s15 = sadd.s32 1, %s10255_s2 }
  0x6d   : > { %s953_s16 = ssub.s32 %s10259_s7, %s10541_s11  ;;  %p966_p0 = scmp.ne.s32.totalorder %s10255_s2, %s10251_s1 }
  0x6e   : > { %p954_p1 = scmp.eq.s32.totalorder %s953_s16, 0  ;;  %p967_p2 = scmp.eq.s32.totalorder %s10537_s0, 1 }
  0x6f   : > { %p972_p3 = scmp.ne.s32.totalorder %s10251_s1, %s10247_s28  ;;  %p973_p4 = scmp.eq.s32.totalorder %s8424_s10, 1 }
  0x70   : > { %s10552_s18 = scalar_select %p954_p1, %s10255_s2, %s956_s15  }
  0x71   : > { %p10554_p5 = por %p967_p2, %p966_p0  ;;  %p10558_p6 = por %p973_p4, %p972_p3 }
  0x72   : > { %11793 = sst [smem:[#allocation49_spill]] %s10552_s18  ;;  %p8427_p7 = scmp.ge.s32.totalorder %s10259_s7, 1 }
  0x73   : > { %s11794_s22 = scalar_select %p10554_p5, 1, 0 }
  0x74   : > { %s11796_s23 = scalar_select %p10558_p6, 1, 0 }
  0x75   : > { %11795 = sst [smem:[#allocation50_spill]] %s11794_s22  ;;  %p1122_p8 = scmp.lt.s32.totalorder %s10259_s7, 3 }
  0x76   : > { %11797 = sst [smem:[#allocation51_spill]] %s11796_s23 }
  0x77   : > { %p1123_p9 = pnand %p8427_p7, %p1122_p8 }
  0x78   : > { %s11798_s5 = sld [smem:[#allocation5_spill]] (!%p1123_p9)  ;;  %p1226_p10 = scmp.lt.s32.totalorder (!%p1123_p9), %s10537_s0, 1  ;;  %vm1243_vm0 = vcmask (!%p1123_p9), 261120   ;;  %v9962_v7 = vld [vmem:[%s11778_s29] sm:$0xff] (!%p1123_p9)   ;;  %v10301_v9 = vmov (!%p1123_p9), 0.0   ;;  %v9964_v10 = vld [vmem:[%s11778_s29 + $0x8] sm:$0xff] (!%p1123_p9)  }
  0x79   : > { %1126 = sbr.rel (%p1123_p9) target bundleno = 12639 (0x315f), region = 180  ;;  %v9963_v8 = vld [vmem:[%s11778_s29 + $0x20] sm:$0xff] (!%p1123_p9)   ;;  %9111 = vmatprep.subr.bf16.mxu1 (!%p1123_p9), %v10301_v9  ;;  %9127 = vmatprep.subr.bf16.mxu0 (!%p1123_p9), %v10301_v9  ;;  %v9965_v11 = vld [vmem:[%s11778_s29 + $0x28] sm:$0xff] (!%p1123_p9)   ;;  %vm10302_vm1 = vmmov (!%p1123_p9), 0   ;;  %v9966_v26 = vld [vmem:[%s11778_s29 + $0x10] sm:$0xff] (!%p1123_p9)   ;;  %s11710_s16 = smov (!%p1123_p9), 120  }
  0x7a   : > { %9112 = vmatpush3.bf16.msra.mxu1 (!%p1123_p9), %v9962_v7  ;;  %9128 = vmatpush3.bf16.msra.mxu0 (!%p1123_p9), %v9963_v8  ;;  %v8431_v20 = vld [vmem:[%s11781_s21] ss:$0 sm:$0xff] (!%p1123_p9)  ;;  %v9967_v28 = vld [vmem:[%s11778_s29 + $0x18] sm:$0xff] (!%p1123_p9)   ;;  %v9968_v29 = vld [vmem:[%s11778_s29 + $0x30] sm:$0xff] (!%p1123_p9)   ;;  %vm1561_vm4 = vcmask (!%p1123_p9), 64512   ;;  %s11799_s13 = sld [smem:[#allocation7_spill]] (!%p1123_p9) }
  0x7b   : > { %9113 = vmatprep.subr.bf16.mxu1 (!%p1123_p9), %v10301_v9  ;;  %9129 = vmatprep.subr.bf16.mxu0 (!%p1123_p9), %v10301_v9  ;;  %v8432_v23 = vld [vmem:[%s11779_s25] ss:$0 sm:$0xff] (!%p1123_p9)  ;;  %v9969_v30 = vld [vmem:[%s11778_s29 + $0x38] sm:$0xff] (!%p1123_p9)   ;;  %v8435_v32 = vld [vmem:[%s11788_s3 + $0x2] ss:$0 sm:$0xff] (!%p1123_p9)  ;;  %vm1808_vm5 = vcmask (!%p1123_p9), 1043456  }
  0x7c   : > { %9115 = vmatprep.mubr.msk.bf16.mxu1 (!%p1123_p9), %vm10302_vm1, %v10301_v9  ;;  %9131 = vmatprep.mubr.msk.bf16.mxu0 (!%p1123_p9), %vm10302_vm1, %v10301_v9  ;;  %v8433_v31 = vld [vmem:[%s11788_s3] ss:$0 sm:$0xff] (!%p1123_p9)  ;;  %v8434_v45 = vld [vmem:[%s11788_s3 + $0x1] ss:$0 sm:$0xff] (!%p1123_p9)  ;;  %v8436_v52 = vld [vmem:[%s11788_s3 + $0x3] ss:$0 sm:$0xff] (!%p1123_p9) }
  0x7d   : > { %vm2343_vm8 = vcmask (!%p1123_p9), 523264   ;;  %s11816_s4 = sld [smem:[#allocation42_spill]] (!%p1123_p9)  ;;  %s11822_s18 = sld [smem:[#allocation39_spill]] (!%p1123_p9) }
  0x7e   : > { %9114 = vmatpush3.bf16.msra.mxu1 (!%p1123_p9), %v9964_v10  ;;  %9130 = vmatpush3.bf16.msra.mxu0 (!%p1123_p9), %v9965_v11  ;;  %s11823_s2 = sld [smem:[#allocation35_spill]] (!%p1123_p9)  ;;  %s11825_s23 = sld [smem:[#allocation36_spill]] (!%p1123_p9) }
  0x7f   : > { %9119 = vmatprep.subr.bf16.mxu1 (!%p1123_p9), %v10301_v9  ;;  %9143 = vmatprep.subr.bf16.mxu0 (!%p1123_p9), %v10301_v9  ;;  %s11826_s28 = sld [smem:[#allocation38_spill]] (!%p1123_p9)  ;;  %s11828_s7 = sld [smem:[#allocation40_spill]] (!%p1123_p9) }
  0x80   : > { %s10566_s26 = scalar_select %p1226_p10, %s10537_s0, 1 }
  0x81   : > { %s11830_s9 = sld [smem:[#allocation43_spill]] }
  0x82   : > { %s11707_s10 = sshll.u32 %s10566_s26, 3 }
  0x83   : > { %s1229_s15 = scalar_lea.vmem %s11798_s5, %s11707_s10  ;;  %s11708_s10 = smov 112  }
  0x84   : > { %v10572_v0 = vld [vmem:[%s1229_s15] sm:$0xff]  ;;  %s10656_s15 = scalar_lea.vmem %s11799_s13, %s10566_s26  ;;  %s11806_s5 = smov 120  }
  0x85   : > { %v1244_v1 = vsel %vm1243_vm0, %v10572_v0, 0.0  ;;  %s11810_s13 = sld [smem:[#allocation26_spill]]  ;;  %s11824_s11 = smov %s11823_s2 }
  0x86   : > { %1245 = vadd.xlane.f32.xlu0 %v1244_v1  ;;  %s11827_s22 = smov %s11826_s28  ;;  %s11829_s27 = smov %s11828_s7 }
 0x113   : > { %v1246_v2 = vpop.xlane.xlu0 %1245 }
 0x114   : > { %v1248_v3 = vmul.f32 0.03125, %v1246_v2 }
 0x116   : > { %v1249_v4 = vsub.f32 %v10572_v0, %v1248_v3 }
 0x118   : > { %v1250_v5 = vmul.f32 %v1249_v4, %v1249_v4  ;;  %v1261_v21 = vmul.f32 %v8431_v20, %v1249_v4 }
 0x11a   : > { %v1251_v6 = vsel %vm1243_vm0, %v1250_v5, 0.0 }
 0x11b   : > { %1252 = vadd.xlane.f32.xlu0 %v1251_v6 }
 0x1a8   : > { %v1253_v12 = vpop.xlane.xlu0 %1252 }
 0x1a9   : > { %v1254_v13 = vmul.f32 0.032258064, %v1253_v12 }
 0x1ab   : > { %10050 = vrsqrt.f32 %v1254_v13  ;;  %vm1264_vm2 = vcmp.eq.f32.partialorder %v1254_v13, inf  ;;  %v1267_v16 = vand.u32 2147483648, %v1254_v13  ;;  %vm1266_vm3 = vcmp.eq.f32.partialorder %v1254_v13, 0.0 }
 0x1b5   : > { %v10051_v14 = vpop.eup %10050 }
 0x1b6   : > { %v1263_v15 = vmul.f32 %v10051_v14, %v1254_v13 }
 0x1b8   : > { %v1265_v17 = vsel %vm1264_vm2, %v1254_v13, %v1263_v15  ;;  %v10659_v13 = vld [vmem:[%s10656_s15] ss:$0 sm:$0xff] }
 0x1b9   : > { %v1268_v18 = vsel %vm1266_vm3, %v1267_v16, %v1265_v17 }
 0x1ba   : > { %v1269_v19 = vadd.f32 1e-06, %v1268_v18 }
 0x1bc   : > { %10052 = vrcp.f32 %v1269_v19 }
 0x1c6   : > { %v10053_v22 = vpop.eup %10052 }
 0x1c7   : > { %v1271_v24 = vmul.f32 %v10053_v22, %v1261_v21 }
 0x1c9   : > { %v1278_v25 = vadd.f32 %v8432_v23, %v1271_v24 }
 0x1cb   : > { %v1299_v27 = vpack.c.bf16 %v1278_v25, %v1278_v25 }
 0x1cd   : > { %9116 = vmatmul.mubr.msk.bf16.vlgmr.msra.gmra.mrb[0].mxu1 %vm1243_vm0, %v1299_v27  ;;  %9132 = vmatmul.mubr.msk.bf16.vlgmr.msra.gmra.mrb[0].mxu0 %vm1243_vm0, %v1299_v27 }
 0x1ce   : > { %9120 = vmatpush3.bf16.msra.mxu1 %v9966_v26  ;;  %9123 = vmatprep.mubr.msk.bf16.mxu1 %vm10302_vm1, %v10301_v9 }
 0x1cf   : > { %9121 = vmatprep.subr.bf16.mxu1 %v10301_v9  ;;  %9145 = vmatprep.mubr.msk.bf16.mxu0 %vm10302_vm1, %v10301_v9 }
 0x1d2   : > { %9122 = vmatpush3.bf16.msra.mxu1 %v9967_v28 }
 0x1d3   : > { %9135 = vmatprep.subr.bf16.mxu1 %v10301_v9 }
 0x1d5   : > { %9124 = vmatmul.mubr.msk.bf16.vlgmr.msra.gmra.mrb[4].mxu1 %vm1243_vm0, %v1299_v27 }
 0x1d6   : > { %9136 = vmatpush3.bf16.msra.mxu1 %v9968_v29  ;;  %9139 = vmatprep.mubr.msk.bf16.mxu1 %vm10302_vm1, %v10301_v9 }
 0x1d7   : > { %9137 = vmatprep.subr.bf16.mxu1 %v10301_v9 }
 0x1da   : > { %9138 = vmatpush3.bf16.msra.mxu1 %v9969_v30 }
 0x1db   : > { %9149 = vmatprep.subr.bf16.mxu1 %v10301_v9 }
 0x1dd   : > { %9140 = vmatmul.mubr.msk.bf16.vlgmr.msra.gmra.mrb[8].mxu1 %vm1243_vm0, %v1299_v27 }
 0x1de   : > { %9151 = vmatprep.mubr.msk.bf16.mxu1 %vm10302_vm1, %v10301_v9 }
 0x2a0   : > { %v1373_v33 = vpop.f32.mrb[0].mxu1  ;;  %v1477_v34 = vpop.f32.mrb[0].mxu0 }
 0x2a1   : > { %v1374_v35 = vadd.f32 %v8433_v31, %v1373_v33  ;;  %v1478_v36 = vadd.f32 %v8435_v32, %v1477_v34  ;;  %v9117_v37 = vpop.f32.mrb[1].mxu1  ;;  %v9133_v38 = vpop.f32.mrb[1].mxu0 }
 0x2a2   : > { %v1376_v39 = vpop.f32.mrb[2].mxu1  ;;  %v1480_v40 = vpop.f32.mrb[2].mxu0 }
 0x2a3   : > { %v10616_v41 = vpack.c.bf16 %v1478_v36, %v1478_v36  ;;  %v9118_v42 = vpop.f32.mrb[3].mxu1  ;;  %v9134_v43 = vpop.f32.mrb[3].mxu0  ;;  %v10618_v44 = vpack.c.bf16 %v1374_v35, %v1374_v35  ;;  %v1540_v61 = vmul.f32 0.35355338, %v1374_v35  ;;  %v1542_v4 = vmul.f32 0.35355338, %v1478_v36 }
 0x2a5   : > { %1658 = vrot.lane.b32.xlu0 %v10616_v41, %s11710_s16  ;;  %1559 = vrot.lane.b32.xlu1 %v10618_v44, %s11710_s16  ;;  %v1544_v63 = vpack.c.bf16 %v1540_v61, %v1540_v61  ;;  %v1546_v6 = vpack.c.bf16 %v1542_v4, %v1542_v4 }
 0x2a8   : > { %v1425_v46 = vpop.f32.mrb[4].mxu1 }
 0x2a9   : > { %v1426_v47 = vadd.f32 %v8434_v45, %v1425_v46  ;;  %v9125_v48 = vpop.f32.mrb[5].mxu1 }
 0x2aa   : > { %v1428_v49 = vpop.f32.mrb[6].mxu1 }
 0x2ab   : > { %v10625_v50 = vpack.c.bf16 %v1426_v47, %v1426_v47  ;;  %v9126_v51 = vpop.f32.mrb[7].mxu1  ;;  %v1541_v5 = vmul.f32 0.35355338, %v1426_v47 }
 0x2ad   : > { %1609 = vrot.lane.b32.xlu1 %v10625_v50, %s11710_s16  ;;  %v1545_v7 = vpack.c.bf16 %v1541_v5, %v1541_v5 }
 0x2b0   : > { %v1529_v53 = vpop.f32.mrb[8].mxu1 }
 0x2b1   : > { %v1530_v54 = vadd.f32 %v8436_v52, %v1529_v53  ;;  %v9141_v55 = vpop.f32.mrb[9].mxu1 }
 0x2b2   : > { %v1532_v56 = vpop.f32.mrb[10].mxu1 }
 0x2b3   : > { %v10630_v57 = vpack.c.bf16 %v1530_v54, %v1530_v54  ;;  %v9142_v58 = vpop.f32.mrb[11].mxu1  ;;  %v1543_v11 = vmul.f32 0.35355338, %v1530_v54 }
 0x2b5   : > { %1707 = vrot.lane.b32.xlu1 %v10630_v57, %s11710_s16  ;;  %v1547_v12 = vpack.c.bf16 %v1543_v11, %v1543_v11 }
 0x317   : > { %v1560_v59 = vpop.permute.xlu1 %1559  ;;  %v1659_v62 = vpop.permute.xlu0 %1658 }
 0x318   : > { %v1566_v60 = vsel %vm1561_vm4, %v1560_v59, 0  ;;  %v1664_v2 = vsel %vm1561_vm4, %v1659_v62, 0 }
 0x319   : > { %9144 = vmatpush3.bf16.xpose.msra.mxu0 %v1566_v60 }
 0x31a   : > { %9155 = vmatprep.subr.bf16.mxu0 %v10301_v9 }
 0x31f   : > { %v1610_v1 = vpop.permute.xlu1 %1609 }
 0x320   : > { %v1615_v3 = vsel %vm1561_vm4, %v1610_v1, 0  ;;  %9146 = vmatmul.mubr.msk.bf16.vlgmr.msra.gmra.mrb[4].mxu0 %vm1561_vm4, %v1544_v63 }
 0x321   : > { %9150 = vmatpush3.bf16.xpose.msra.mxu1 %v1615_v3  ;;  %9156 = vmatpush3.bf16.xpose.msra.mxu0 %v1664_v2 }
 0x322   : > { %9157 = vmatprep.mubr.msk.bf16.mxu0 %vm10302_vm1, %v10301_v9  ;;  %9161 = vmatprep.subr.bf16.mxu1 %v10301_v9 }
 0x323   : > { %9167 = vmatprep.subr.bf16.mxu0 %v10301_v9 }
 0x327   : > { %v1708_v8 = vpop.permute.xlu1 %1707 }
 0x328   : > { %v1713_v10 = vsel %vm1561_vm4, %v1708_v8, 0  ;;  %9152 = vmatmul.mubr.msk.bf16.vlgmr.msra.gmra.mrb[12].mxu1 %vm1561_vm4, %v1545_v7  ;;  %9158 = vmatmul.mubr.msk.bf16.vlgmr.msra.gmra.mrb[8].mxu0 %vm1561_vm4, %v1546_v6 }
 0x329   : > { %9162 = vmatpush3.bf16.xpose.msra.mxu1 %v1713_v10  ;;  %9163 = vmatprep.mubr.msk.bf16.mxu1 %vm10302_vm1, %v10301_v9 }
 0x32a   : > { %9173 = vmatprep.subr.bf16.mxu1 %v10301_v9  ;;  %9169 = vmatprep.mubr.msk.bf16.mxu0 %vm10302_vm1, %v10301_v9 }
 0x330   : > { %9164 = vmatmul.mubr.msk.bf16.vlgmr.msra.gmra.mrb[16].mxu1 %vm1561_vm4, %v1547_v12 }
 0x331   : > { %9175 = vmatprep.mubr.msk.bf16.mxu1 %vm10302_vm1, %v10301_v9 }
 0x3f3   : > { %v1602_v14 = vpop.f32.mrb[4].mxu0 }
 0x3f4   : > { %v1603_v15 = vadd.f32 %v10659_v13, %v1602_v14  ;;  %v9147_v16 = vpop.f32.mrb[5].mxu0 }
 0x3f5   : > { %v1605_v17 = vpop.f32.mrb[6].mxu0 }
 0x3f6   : > { %v9148_v18 = vpop.f32.mrb[7].mxu0  ;;  %v1755_v19 = vsel %vm1561_vm4, %v1603_v15, -inf }
 0x3f7   : > { %1756 = vmax.xlane.f32.xlu1 %v1755_v19 }
 0x3fb   : > { %v1651_v20 = vpop.f32.mrb[12].mxu1  ;;  %v1700_v21 = vpop.f32.mrb[8].mxu0 }
 0x3fc   : > { %v1652_v22 = vadd.f32 %v10659_v13, %v1651_v20  ;;  %v1701_v23 = vadd.f32 %v10659_v13, %v1700_v21  ;;  %v9153_v24 = vpop.f32.mrb[13].mxu1  ;;  %v9159_v25 = vpop.f32.mrb[9].mxu0  ;;  %v1535_v21 = vld [vmem:[%s11786_s8] sm:$0xf] }
 0x3fd   : > { %v1654_v26 = vpop.f32.mrb[14].mxu1  ;;  %v1703_v27 = vpop.f32.mrb[10].mxu0  ;;  %v1537_v25 = vld [vmem:[%s11786_s8 + $0x8] sm:$0xf] }
 0x3fe   : > { %v9154_v28 = vpop.f32.mrb[15].mxu1  ;;  %v9160_v29 = vpop.f32.mrb[11].mxu0  ;;  %v1761_v30 = vsel %vm1561_vm4, %v1701_v23, -inf  ;;  %v1758_v31 = vsel %vm1561_vm4, %v1652_v22, -inf }
 0x3ff   : > { %1762 = vmax.xlane.f32.xlu1 %v1761_v30  ;;  %1759 = vmax.xlane.f32.xlu0 %v1758_v31  ;;  %v2096_v29 = vsel %vm1808_vm5, %v1537_v25, 0 }
 0x403   : > { %v1749_v32 = vpop.f32.mrb[16].mxu1 }
 0x404   : > { %v1750_v33 = vadd.f32 %v10659_v13, %v1749_v32  ;;  %v9165_v34 = vpop.f32.mrb[17].mxu1  ;;  %v1538_v32 = vld [vmem:[%s11786_s8 + $0xc] sm:$0xf] }
 0x405   : > { %v1752_v35 = vpop.f32.mrb[18].mxu1 }
 0x406   : > { %v9166_v36 = vpop.f32.mrb[19].mxu1  ;;  %v1764_v37 = vsel %vm1561_vm4, %v1750_v33, -inf }
 0x407   : > { %1765 = vmax.xlane.f32.xlu1 %v1764_v37 }
 0x415   : > { %1803 = vrot.lane.b32.xlu0 %v10618_v44, %s11708_s10 }
 0x418   : > { %1852 = vrot.lane.b32.xlu1 %v10625_v50, %s11708_s10 }
 0x484   : > { %v1757_v38 = vpop.xlane.xlu1 %1756 }
 0x485   : > { %v1767_v39 = vsub.f32 %v1603_v15, %v1757_v38 }
 0x487   : > { %v1771_v40 = vmul.f32 1.442695, %v1767_v39  ;;  %v2142_v39 = vsel %vm1808_vm5, %v1538_v32, 0 }
 0x489   : > { %10054 = vpow2.f32 %v1771_v40 }
 0x48c   : > { %v1763_v42 = vpop.xlane.xlu1 %1762  ;;  %v1760_v43 = vpop.xlane.xlu0 %1759 }
 0x48d   : > { %v1769_v45 = vsub.f32 %v1701_v23, %v1763_v42  ;;  %v1768_v46 = vsub.f32 %v1652_v22, %v1760_v43  ;;  %v2004_v22 = vsel %vm1808_vm5, %v1535_v21, 0  ;;  %v1536_v23 = vld [vmem:[%s11786_s8 + $0x4] sm:$0xf]  ;;  %v9971_v21 = vld [vmem:[%s11777_s30 + $0x8] sm:$0xff]  }
 0x48e   : > { %v2050_v24 = vsel %vm1808_vm5, %v1536_v23, 0 }
 0x48f   : > { %v1775_v47 = vmul.f32 1.442695, %v1769_v45  ;;  %v1773_v48 = vmul.f32 1.442695, %v1768_v46 }
 0x490   : > { %v1804_v49 = vpop.permute.xlu0 %1803 }
 0x491   : > { %10056 = vpow2.f32 %v1775_v47  ;;  %v1810_v51 = vsel %vm1808_vm5, %v1804_v49, 0 }
 0x492   : > { %10058 = vpow2.f32 %v1773_v48  ;;  %9168 = vmatpush3.bf16.msra.mxu0 %v1810_v51 }
 0x493   : > { %v10055_v44 = vpop.eup %10054  ;;  %9179 = vmatprep.subr.bf16.mxu0 %v10301_v9 }
 0x494   : > { %v1766_v50 = vpop.xlane.xlu1 %1765  ;;  %v1779_v52 = vsel %vm1561_vm4, %v10055_v44, 0.0 }
 0x495   : > { %v1770_v53 = vsub.f32 %v1750_v33, %v1766_v50  ;;  %1780 = vadd.xlane.f32.xlu1 %v1779_v52 }
 0x497   : > { %v1777_v54 = vmul.f32 1.442695, %v1770_v53 }
 0x498   : > { %v1853_v55 = vpop.permute.xlu1 %1852 }
 0x499   : > { %10060 = vpow2.f32 %v1777_v54  ;;  %v1858_v56 = vsel %vm1808_vm5, %v1853_v55, 0 }
 0x49a   : > { %9174 = vmatpush3.bf16.msra.mxu1 %v1858_v56 }
 0x49b   : > { %v10057_v58 = vpop.eup %10056  ;;  %9185 = vmatprep.subr.bf16.mxu1 %v10301_v9 }
 0x49c   : > { %v10059_v59 = vpop.eup %10058  ;;  %v1785_v60 = vsel %vm1561_vm4, %v10057_v58, 0.0 }
 0x49d   : > { %1786 = vadd.xlane.f32.xlu0 %v1785_v60  ;;  %v1782_v61 = vsel %vm1561_vm4, %v10059_v59, 0.0 }
 0x49e   : > { %1783 = vadd.xlane.f32.xlu1 %v1782_v61 }
 0x4a3   : > { %v10061_v62 = vpop.eup %10060 }
 0x4a4   : > { %v1788_v63 = vsel %vm1561_vm4, %v10061_v62, 0.0 }
 0x4a5   : > { %1789 = vadd.xlane.f32.xlu1 %v1788_v63 }
 0x4b3   : > { %1948 = vrot.lane.b32.xlu0 %v10630_v57, %s11708_s10 }
 0x4b6   : > { %1900 = vrot.lane.b32.xlu1 %v10616_v41, %s11708_s10 }
 0x522   : > { %v1781_v1 = vpop.xlane.xlu1 %1780 }
 0x523   : > { %10062 = vrcp.f32 %v1781_v1 }
 0x52a   : > { %v1787_v2 = vpop.xlane.xlu0 %1786 }
 0x52b   : > { %10064 = vrcp.f32 %v1787_v2  ;;  %v1784_v3 = vpop.xlane.xlu1 %1783 }
 0x52c   : > { %10066 = vrcp.f32 %v1784_v3 }
 0x52d   : > { %v10063_v4 = vpop.eup %10062 }
 0x52e   : > { %v1795_v5 = vmul.f32 %v10063_v4, %v10055_v44  ;;  %v1949_v14 = vpop.permute.xlu0 %1948 }
 0x52f   : > { %v1954_v17 = vsel %vm1808_vm5, %v1949_v14, 0 }
 0x530   : > { %v1799_v6 = vpack.c.bf16 %v1795_v5, %v1795_v5 }
 0x532   : > { %9170 = vmatmul.mubr.msk.bf16.vlgmr.msra.gmra.mrb[12].mxu0 %vm1561_vm4, %v1799_v6  ;;  %v1790_v7 = vpop.xlane.xlu1 %1789  ;;  %v8462_v6 = vld [vmem:[%s11784_s14] ss:$0 sm:$0xff] }
 0x533   : > { %10068 = vrcp.f32 %v1790_v7  ;;  %9181 = vmatprep.mubr.msk.bf16.mxu0 %vm10302_vm1, %v10301_v9 }
 0x535   : > { %v10065_v57 = vpop.eup %10064 }
 0x536   : > { %v10067_v8 = vpop.eup %10066  ;;  %v1797_v10 = vmul.f32 %v10065_v57, %v10057_v58  ;;  %v1901_v41 = vpop.permute.xlu1 %1900 }
 0x537   : > { %v1906_v11 = vsel %vm1808_vm5, %v1901_v41, 0  ;;  %v1796_v12 = vmul.f32 %v10067_v8, %v10059_v59 }
 0x538   : > { %9180 = vmatpush3.bf16.msra.mxu0 %v1906_v11  ;;  %v1801_v15 = vpack.c.bf16 %v1797_v10, %v1797_v10 }
 0x539   : > { %v1800_v16 = vpack.c.bf16 %v1796_v12, %v1796_v12  ;;  %9191 = vmatprep.subr.bf16.mxu0 %v10301_v9 }
 0x53b   : > { %9176 = vmatmul.mubr.msk.bf16.vlgmr.msra.gmra.mrb[20].mxu1 %vm1561_vm4, %v1800_v16  ;;  %9182 = vmatmul.mubr.msk.bf16.vlgmr.msra.gmra.mrb[16].mxu0 %vm1561_vm4, %v1801_v15 }
 0x53c   : > { %9186 = vmatpush3.bf16.msra.mxu1 %v1954_v17  ;;  %9187 = vmatprep.mubr.msk.bf16.mxu1 %vm10302_vm1, %v10301_v9 }
 0x53d   : > { %v10069_v18 = vpop.eup %10068  ;;  %9193 = vmatprep.mubr.msk.bf16.mxu0 %vm10302_vm1, %v10301_v9  ;;  %9197 = vmatprep.subr.bf16.mxu1 %v10301_v9 }
 0x53e   : > { %v1798_v19 = vmul.f32 %v10069_v18, %v10061_v62  ;;  %9192 = vmatpush3.bf16.msra.mxu0 %v2004_v22  ;;  %v9973_v22 = vld [vmem:[%s11785_s12 + $0x8] sm:$0xff]  }
 0x53f   : > { %9203 = vmatprep.subr.bf16.mxu0 %v10301_v9 }
 0x540   : > { %v1802_v20 = vpack.c.bf16 %v1798_v19, %v1798_v19 }
 0x543   : > { %9188 = vmatmul.mubr.msk.bf16.vlgmr.msra.gmra.mrb[24].mxu1 %vm1561_vm4, %v1802_v20  ;;  %v9970_v20 = vld [vmem:[%s11777_s30] sm:$0xff]  }
 0x544   : > { %9199 = vmatprep.mubr.msk.bf16.mxu1 %vm10302_vm1, %v10301_v9  ;;  %9198 = vmatpush3.bf16.msra.mxu1 %v2050_v24 }
 0x545   : > { %9209 = vmatprep.subr.bf16.mxu1 %v10301_v9 }
 0x605   : > { %v1846_v26 = vpop.f32.mrb[12].mxu0 }
 0x606   : > { %v1996_v27 = vpack.c.bf16 %v1846_v26, %v1846_v26  ;;  %v9171_v28 = vpop.f32.mrb[13].mxu0 }
 0x607   : > { %v1849_v30 = vpop.f32.mrb[14].mxu0 }
 0x608   : > { %v9172_v31 = vpop.f32.mrb[15].mxu0  ;;  %9194 = vmatmul.mubr.msk.bf16.vlgmr.msra.gmra.mrb[20].mxu0 %vm1561_vm4, %v1996_v27 }
 0x609   : > { %9204 = vmatpush3.bf16.msra.mxu0 %v2096_v29  ;;  %9205 = vmatprep.mubr.msk.bf16.mxu0 %vm10302_vm1, %v10301_v9  ;;  %v8463_v31 = vld [vmem:[%s11783_s19] ss:$0 sm:$0xff] }
 0x60a   : > { %9215 = vmatprep.subr.bf16.mxu0 %v10301_v9 }
 0x60e   : > { %v1894_v33 = vpop.f32.mrb[20].mxu1  ;;  %v1942_v34 = vpop.f32.mrb[16].mxu0 }
 0x60f   : > { %v1997_v35 = vpack.c.bf16 %v1894_v33, %v1894_v33  ;;  %v9177_v36 = vpop.f32.mrb[21].mxu1  ;;  %v1998_v37 = vpack.c.bf16 %v1942_v34, %v1942_v34  ;;  %v9183_v38 = vpop.f32.mrb[17].mxu0  ;;  %v8464_v34 = vld [vmem:[%s11780_s24] ss:$0 sm:$0xff] }
 0x610   : > { %v1897_v40 = vpop.f32.mrb[22].mxu1  ;;  %v1945_v42 = vpop.f32.mrb[18].mxu0  ;;  %v9974_v38 = vld [vmem:[%s11785_s12 + $0x10] sm:$0xff]  }
 0x611   : > { %v9178_v43 = vpop.f32.mrb[23].mxu1  ;;  %9200 = vmatmul.mubr.msk.bf16.vlgmr.msra.gmra.mrb[28].mxu1 %vm1561_vm4, %v1997_v35  ;;  %v9184_v45 = vpop.f32.mrb[19].mxu0  ;;  %9206 = vmatmul.mubr.msk.bf16.vlgmr.msra.gmra.mrb[24].mxu0 %vm1561_vm4, %v1998_v37  ;;  %v8465_v40 = vld [vmem:[%s11787_s6] ss:$0 sm:$0xff] }
 0x612   : > { %9210 = vmatpush3.bf16.msra.mxu1 %v2142_v39  ;;  %9211 = vmatprep.mubr.msk.bf16.mxu1 %vm10302_vm1, %v10301_v9  ;;  %v9975_v39 = vld [vmem:[%s11785_s12 + $0x18] sm:$0xff]  }
 0x613   : > { %9219 = vmatprep.mubr.msk.bf16.mxu0 %vm10302_vm1, %v10301_v9  ;;  %9223 = vmatprep.subr.bf16.mxu1 %v10301_v9 }
 0x614   : > { %9216 = vmatpush3.bf16.msra.mxu0 %v9970_v20  ;;  %v9981_v20 = vld [vmem:[%s11778_s29 + $0x58] sm:$0xff]  }
 0x615   : > { %9217 = vmatprep.subr.bf16.mxu0 %v10301_v9 }
 0x616   : > { %v1990_v46 = vpop.f32.mrb[24].mxu1 }
 0x617   : > { %v1999_v47 = vpack.c.bf16 %v1990_v46, %v1990_v46  ;;  %v9189_v48 = vpop.f32.mrb[25].mxu1 }
 0x618   : > { %v1993_v49 = vpop.f32.mrb[26].mxu1  ;;  %9218 = vmatpush3.bf16.msra.mxu0 %v9971_v21  ;;  %v9982_v21 = vld [vmem:[%s11778_s29 + $0x70] sm:$0xff]  }
 0x619   : > { %v9190_v51 = vpop.f32.mrb[27].mxu1  ;;  %9212 = vmatmul.mubr.msk.bf16.vlgmr.msra.gmra.mrb[32].mxu1 %vm1561_vm4, %v1999_v47  ;;  %9235 = vmatprep.subr.bf16.mxu0 %v10301_v9 }
 0x61a   : > { %9231 = vmatprep.mubr.msk.bf16.mxu1 %vm10302_vm1, %v10301_v9  ;;  %v8469_v51 = vld [vmem:[%s11782_s20] ss:$0 sm:$0xff] }
 0x6db   : > { %v2040_v44 = vpop.f32.mrb[20].mxu0 }
 0x6dc   : > { %v9195_v50 = vpop.f32.mrb[21].mxu0  ;;  %v2184_v56 = vsel %vm1243_vm0, %v2040_v44, 0.0 }
 0x6dd   : > { %v2043_v52 = vpop.f32.mrb[22].mxu0 }
 0x6de   : > { %v9196_v53 = vpop.f32.mrb[23].mxu0 }
 0x6e4   : > { %v2086_v54 = vpop.f32.mrb[28].mxu1  ;;  %v2132_v55 = vpop.f32.mrb[24].mxu0 }
 0x6e5   : > { %v2185_v58 = vsel %vm1243_vm0, %v2086_v54, 0.0  ;;  %v9201_v59 = vpop.f32.mrb[29].mxu1  ;;  %v2187_v60 = vsel %vm1243_vm0, %v2132_v55, 0.0  ;;  %v9207_v61 = vpop.f32.mrb[25].mxu0 }
 0x6e6   : > { %v2186_v62 = vadd.f32 %v2185_v58, %v2184_v56  ;;  %v2089_v63 = vpop.f32.mrb[30].mxu1  ;;  %v2135_v1 = vpop.f32.mrb[26].mxu0 }
 0x6e7   : > { %v9202_v2 = vpop.f32.mrb[31].mxu1  ;;  %v9208_v3 = vpop.f32.mrb[27].mxu0  ;;  %v9976_v63 = vld [vmem:[%s11778_s29 + $0x40] sm:$0xff]  }
 0x6e8   : > { %v2188_v4 = vadd.f32 %v2187_v60, %v2186_v62  ;;  %v9977_v1 = vld [vmem:[%s11778_s29 + $0x60] sm:$0xff]   ;;  %v9978_v2 = vld [vmem:[%s11778_s29 + $0x48] sm:$0xff]  }
 0x6e9   : > { %v9979_v3 = vld [vmem:[%s11778_s29 + $0x68] sm:$0xff]  }
 0x6ec   : > { %v2178_v5 = vpop.f32.mrb[32].mxu1 }
 0x6ed   : > { %v2189_v7 = vsel %vm1243_vm0, %v2178_v5, 0.0  ;;  %v9213_v57 = vpop.f32.mrb[33].mxu1 }
 0x6ee   : > { %v2190_v8 = vadd.f32 %v2189_v7, %v2188_v4  ;;  %v2181_v10 = vpop.f32.mrb[34].mxu1 }
 0x6ef   : > { %v9214_v41 = vpop.f32.mrb[35].mxu1 }
 0x6f0   : > { %v2197_v11 = vadd.f32 %v8462_v6, %v2190_v8 }
 0x6f2   : > { %v10731_v12 = vadd.f32 %v2197_v11, %v10572_v0  ;;  %v9972_v0 = vld [vmem:[%s11785_s12] sm:$0xff]  }
 0x6f3   : > { %9224 = vmatpush3.bf16.msra.mxu1 %v9972_v0  ;;  %v8477_v11 = vld [vmem:[%s11781_s21 + $0x1] ss:$0 sm:$0xff]  ;;  %v9983_v0 = vld [vmem:[%s11778_s29 + $0x78] sm:$0xff]   ;;  %s11814_s21 = sld [smem:[#allocation41_spill]] }
 0x6f4   : > { %v2215_v14 = vsel %vm1243_vm0, %v10731_v12, 0.0  ;;  %9225 = vmatprep.subr.bf16.mxu1 %v10301_v9 }
 0x6f5   : > { %2216 = vadd.xlane.f32.xlu1 %v2215_v14 }
 0x6f7   : > { %9226 = vmatpush3.bf16.msra.mxu1 %v9973_v22  ;;  %v8499_v22 = vld [vmem:[%s11788_s3 + $0x4] ss:$0 sm:$0xff] }
 0x6f8   : > { %9227 = vmatprep.subr.bf16.mxu1 %v10301_v9 }
 0x6fb   : > { %9228 = vmatpush3.bf16.msra.mxu1 %v9974_v38 }
 0x6fc   : > { %9229 = vmatprep.subr.bf16.mxu1 %v10301_v9 }
 0x6ff   : > { %9230 = vmatpush3.bf16.msra.mxu1 %v9975_v39 }
 0x700   : > { %9251 = vmatprep.subr.bf16.mxu1 %v10301_v9 }
 0x782   : > { %v2217_v15 = vpop.xlane.xlu1 %2216 }
 0x783   : > { %v2218_v16 = vmul.f32 0.03125, %v2217_v15  ;;  %v8478_v15 = vld [vmem:[%s11779_s25 + $0x1] ss:$0 sm:$0xff]  ;;  %s11819_s25 = sld [smem:[#allocation33_spill]] }
 0x785   : > { %v2219_v17 = vsub.f32 %v10731_v12, %v2218_v16 }
 0x787   : > { %v2220_v18 = vmul.f32 %v2219_v17, %v2219_v17  ;;  %v2231_v32 = vmul.f32 %v8463_v31, %v2219_v17 }
 0x789   : > { %v2221_v19 = vsel %vm1243_vm0, %v2220_v18, 0.0  ;;  %v9980_v18 = vld [vmem:[%s11778_s29 + $0x50] sm:$0xff]   ;;  %s11820_s29 = sld [smem:[#allocation34_spill]] }
 0x78a   : > { %2222 = vadd.xlane.f32.xlu0 %v2221_v19 }
 0x817   : > { %v2223_v23 = vpop.xlane.xlu0 %2222 }
 0x818   : > { %v2224_v24 = vmul.f32 0.032258064, %v2223_v23 }
 0x81a   : > { %10070 = vrsqrt.f32 %v2224_v24  ;;  %vm2234_vm6 = vcmp.eq.f32.partialorder %v2224_v24, inf  ;;  %v2237_v27 = vand.u32 2147483648, %v2224_v24  ;;  %vm2236_vm7 = vcmp.eq.f32.partialorder %v2224_v24, 0.0 }
 0x824   : > { %v10071_v25 = vpop.eup %10070 }
 0x825   : > { %v2233_v26 = vmul.f32 %v10071_v25, %v2224_v24 }
 0x827   : > { %v2235_v28 = vsel %vm2234_vm6, %v2224_v24, %v2233_v26 }
 0x828   : > { %v2238_v29 = vsel %vm2236_vm7, %v2237_v27, %v2235_v28 }
 0x829   : > { %v2239_v30 = vadd.f32 1e-06, %v2238_v29 }
 0x82b   : > { %10072 = vrcp.f32 %v2239_v30 }
 0x835   : > { %v10073_v33 = vpop.eup %10072 }
 0x836   : > { %v2241_v35 = vmul.f32 %v10073_v33, %v2231_v32  ;;  %v8500_v33 = vld [vmem:[%s11788_s3 + $0x5] ss:$0 sm:$0xff] }
 0x838   : > { %v2248_v36 = vadd.f32 %v8464_v34, %v2241_v35  ;;  %v8501_v34 = vld [vmem:[%s11788_s3 + $0x6] ss:$0 sm:$0xff] }
 0x83a   : > { %v2249_v37 = vpack.c.bf16 %v2248_v36, %v2248_v36 }
 0x83c   : > { %9220 = vmatmul.mubr.msk.bf16.vlgmr.msra.gmra.mrb[28].mxu0 %vm1243_vm0, %v2249_v37 }
 0x83d   : > { %9239 = vmatprep.mubr.msk.bf16.mxu0 %vm10302_vm1, %v10301_v9  ;;  %9236 = vmatpush3.bf16.msra.mxu0 %v9976_v63 }
 0x83e   : > { %9237 = vmatprep.subr.bf16.mxu0 %v10301_v9 }
 0x841   : > { %9238 = vmatpush3.bf16.msra.mxu0 %v9978_v2 }
 0x842   : > { %9243 = vmatprep.subr.bf16.mxu0 %v10301_v9 }
 0x90f   : > { %v2305_v42 = vpop.f32.mrb[28].mxu0 }
 0x910   : > { %v2306_v43 = vadd.f32 %v8465_v40, %v2305_v42  ;;  %v9221_v45 = vpop.f32.mrb[29].mxu0 }
 0x911   : > { %v2308_v46 = vpop.f32.mrb[30].mxu0 }
 0x912   : > { %v2311_v47 = vmax.f32 %v2306_v43, 0.0  ;;  %v9222_v48 = vpop.f32.mrb[31].mxu0  ;;  %v8502_v43 = vld [vmem:[%s11788_s3 + $0x7] ss:$0 sm:$0xff] }
 0x914   : > { %v2312_v49 = vpack.c.bf16 %v2311_v47, %v2311_v47 }
 0x916   : > { %9232 = vmatmul.mubr.msk.bf16.vlgmr.msra.gmra.mrb[36].mxu1 %vm2343_vm8, %v2312_v49 }
 0x917   : > { %9255 = vmatprep.mubr.msk.bf16.mxu1 %vm10302_vm1, %v10301_v9  ;;  %9252 = vmatpush3.bf16.msra.mxu1 %v9977_v1 }
 0x918   : > { %9253 = vmatprep.subr.bf16.mxu1 %v10301_v9 }
 0x91b   : > { %9254 = vmatpush3.bf16.msra.mxu1 %v9979_v3 }
 0x91c   : > { %9267 = vmatprep.subr.bf16.mxu1 %v10301_v9 }
 0x9e9   : > { %v2381_v44 = vpop.f32.mrb[36].mxu1 }
 0x9ea   : > { %v2382_v50 = vadd.f32 %v8469_v51, %v2381_v44  ;;  %v9233_v52 = vpop.f32.mrb[37].mxu1 }
 0x9eb   : > { %v2384_v53 = vpop.f32.mrb[38].mxu1 }
 0x9ec   : > { %v10760_v54 = vadd.f32 %v2382_v50, %v10731_v12  ;;  %v9234_v55 = vpop.f32.mrb[39].mxu1 }
 0x9ee   : > { %v2392_v56 = vsel %vm1243_vm0, %v10760_v54, 0.0 }
 0x9ef   : > { %2393 = vadd.xlane.f32.xlu0 %v2392_v56 }
 0xa7c   : > { %v2394_v58 = vpop.xlane.xlu0 %2393 }
 0xa7d   : > { %v2395_v59 = vmul.f32 0.03125, %v2394_v58 }
 0xa7f   : > { %v2396_v60 = vsub.f32 %v10760_v54, %v2395_v59 }
 0xa81   : > { %v2397_v61 = vmul.f32 %v2396_v60, %v2396_v60  ;;  %v2408_v12 = vmul.f32 %v8477_v11, %v2396_v60 }
 0xa83   : > { %v2398_v62 = vsel %vm1243_vm0, %v2397_v61, 0.0 }
 0xa84   : > { %2399 = vadd.xlane.f32.xlu1 %v2398_v62 }
 0xb11   : > { %v2400_v4 = vpop.xlane.xlu1 %2399 }
 0xb12   : > { %v2401_v5 = vmul.f32 0.032258064, %v2400_v4 }
 0xb14   : > { %10074 = vrsqrt.f32 %v2401_v5  ;;  %vm2411_vm9 = vcmp.eq.f32.partialorder %v2401_v5, inf  ;;  %v2414_v57 = vand.u32 2147483648, %v2401_v5  ;;  %vm2413_vm10 = vcmp.eq.f32.partialorder %v2401_v5, 0.0 }
 0xb1e   : > { %v10075_v6 = vpop.eup %10074 }
 0xb1f   : > { %v2410_v7 = vmul.f32 %v10075_v6, %v2401_v5 }
 0xb21   : > { %v2412_v8 = vsel %vm2411_vm9, %v2401_v5, %v2410_v7 }
 0xb22   : > { %v2415_v10 = vsel %vm2413_vm10, %v2414_v57, %v2412_v8 }
 0xb23   : > { %v2416_v41 = vadd.f32 1e-06, %v2415_v10 }
 0xb25   : > { %10076 = vrcp.f32 %v2416_v41 }
 0xb2f   : > { %v10077_v14 = vpop.eup %10076 }
 0xb30   : > { %v2418_v16 = vmul.f32 %v10077_v14, %v2408_v12 }
 0xb32   : > { %v2425_v17 = vadd.f32 %v8478_v15, %v2418_v16 }
 0xb34   : > { %v2448_v19 = vpack.c.bf16 %v2425_v17, %v2425_v17 }
 0xb36   : > { %9240 = vmatmul.mubr.msk.bf16.vlgmr.msra.gmra.mrb[32].mxu0 %vm1243_vm0, %v2448_v19  ;;  %9256 = vmatmul.mubr.msk.bf16.vlgmr.msra.gmra.mrb[40].mxu1 %vm1243_vm0, %v2448_v19 }
 0xb37   : > { %9244 = vmatpush3.bf16.msra.mxu0 %v9980_v18  ;;  %9247 = vmatprep.mubr.msk.bf16.mxu0 %vm10302_vm1, %v10301_v9 }
 0xb38   : > { %9245 = vmatprep.subr.bf16.mxu0 %v10301_v9  ;;  %9269 = vmatprep.mubr.msk.bf16.mxu1 %vm10302_vm1, %v10301_v9 }
 0xb3b   : > { %9246 = vmatpush3.bf16.msra.mxu0 %v9981_v20 }
 0xb3c   : > { %9259 = vmatprep.subr.bf16.mxu0 %v10301_v9 }
 0xb3e   : > { %9248 = vmatmul.mubr.msk.bf16.vlgmr.msra.gmra.mrb[36].mxu0 %vm1243_vm0, %v2448_v19 }
 0xb3f   : > { %9260 = vmatpush3.bf16.msra.mxu0 %v9982_v21  ;;  %9263 = vmatprep.mubr.msk.bf16.mxu0 %vm10302_vm1, %v10301_v9 }
 0xb40   : > { %9261 = vmatprep.subr.bf16.mxu0 %v10301_v9 }
 0xb43   : > { %9262 = vmatpush3.bf16.msra.mxu0 %v9983_v0 }
 0xb44   : > { %9273 = vmatprep.subr.bf16.mxu0 %v10301_v9 }
 0xb46   : > { %9264 = vmatmul.mubr.msk.bf16.vlgmr.msra.gmra.mrb[40].mxu0 %vm1243_vm0, %v2448_v19 }
 0xb47   : > { %9275 = vmatprep.mubr.msk.bf16.mxu0 %vm10302_vm1, %v10301_v9 }
 0xc09   : > { %v2522_v23 = vpop.f32.mrb[32].mxu0  ;;  %v2626_v24 = vpop.f32.mrb[40].mxu1 }
 0xc0a   : > { %v2523_v25 = vadd.f32 %v8499_v22, %v2522_v23  ;;  %v9241_v26 = vpop.f32.mrb[33].mxu0  ;;  %v9257_v27 = vpop.f32.mrb[41].mxu1  ;;  %v2627_v39 = vadd.f32 %v8501_v34, %v2626_v24 }
 0xc0b   : > { %v2525_v28 = vpop.f32.mrb[34].mxu0  ;;  %v2629_v29 = vpop.f32.mrb[42].mxu1 }
 0xc0c   : > { %v10797_v30 = vpack.c.bf16 %v2523_v25, %v2523_v25  ;;  %v9242_v31 = vpop.f32.mrb[35].mxu0  ;;  %v9258_v32 = vpop.f32.mrb[43].mxu1  ;;  %v10808_v45 = vpack.c.bf16 %v2627_v39, %v2627_v39  ;;  %v2691_v53 = vmul.f32 0.35355338, %v2523_v25  ;;  %v2693_v62 = vmul.f32 0.35355338, %v2627_v39 }
 0xc0e   : > { %2704 = vrot.lane.b32.xlu0 %v10797_v30, %s11710_s16  ;;  %v2695_v55 = vpack.c.bf16 %v2691_v53, %v2691_v53  ;;  %v2697_v3 = vpack.c.bf16 %v2693_v62, %v2693_v62 }
 0xc11   : > { %v2574_v35 = vpop.f32.mrb[36].mxu0 }
 0xc12   : > { %v2575_v36 = vadd.f32 %v8500_v33, %v2574_v35  ;;  %v9249_v37 = vpop.f32.mrb[37].mxu0 }
 0xc13   : > { %v2577_v38 = vpop.f32.mrb[38].mxu0 }
 0xc14   : > { %v10803_v40 = vpack.c.bf16 %v2575_v36, %v2575_v36  ;;  %v9250_v42 = vpop.f32.mrb[39].mxu0  ;;  %v2692_v59 = vmul.f32 0.35355338, %v2575_v36 }
 0xc16   : > { %2753 = vrot.lane.b32.xlu1 %v10803_v40, %s11710_s16  ;;  %v2696_v63 = vpack.c.bf16 %v2692_v59, %v2692_v59 }
 0xc19   : > { %v2678_v46 = vpop.f32.mrb[40].mxu0 }
 0xc1a   : > { %v2679_v47 = vadd.f32 %v8502_v43, %v2678_v46  ;;  %v9265_v48 = vpop.f32.mrb[41].mxu0  ;;  %2802 = vrot.lane.b32.xlu1 %v10808_v45, %s11710_s16 }
 0xc1b   : > { %v2681_v49 = vpop.f32.mrb[42].mxu0 }
 0xc1c   : > { %v10812_v51 = vpack.c.bf16 %v2679_v47, %v2679_v47  ;;  %v9266_v44 = vpop.f32.mrb[43].mxu0  ;;  %v2694_v4 = vmul.f32 0.35355338, %v2679_v47 }
 0xc1e   : > { %2851 = vrot.lane.b32.xlu0 %v10812_v51, %s11710_s16  ;;  %v2698_v5 = vpack.c.bf16 %v2694_v4, %v2694_v4  ;;  %s11801_s16 = sshll.u32 %s10566_s26, 3  ;;  %s11803_s26 = sld [smem:[#allocation21_spill]] }
 0xc80   : > { %v2705_v50 = vpop.permute.xlu0 %2704 }
 0xc81   : > { %v2710_v52 = vsel %vm1561_vm4, %v2705_v50, 0 }
 0xc82   : > { %9268 = vmatpush3.bf16.xpose.msra.mxu1 %v2710_v52 }
 0xc83   : > { %9279 = vmatprep.subr.bf16.mxu1 %v10301_v9 }
 0xc88   : > { %v2754_v56 = vpop.permute.xlu1 %2753 }
 0xc89   : > { %v2759_v58 = vsel %vm1561_vm4, %v2754_v56, 0  ;;  %9270 = vmatmul.mubr.msk.bf16.vlgmr.msra.gmra.mrb[44].mxu1 %vm1561_vm4, %v2695_v55 }
 0xc8a   : > { %9274 = vmatpush3.bf16.xpose.msra.mxu0 %v2759_v58  ;;  %9281 = vmatprep.mubr.msk.bf16.mxu1 %vm10302_vm1, %v10301_v9 }
 0xc8b   : > { %9285 = vmatprep.subr.bf16.mxu0 %v10301_v9 }
 0xc8c   : > { %v2803_v60 = vpop.permute.xlu1 %2802 }
 0xc8d   : > { %v2808_v61 = vsel %vm1561_vm4, %v2803_v60, 0 }
 0xc8e   : > { %9280 = vmatpush3.bf16.xpose.msra.mxu1 %v2808_v61 }
 0xc8f   : > { %9291 = vmatprep.subr.bf16.mxu1 %v10301_v9 }
 0xc90   : > { %v2852_v1 = vpop.permute.xlu0 %2851 }
 0xc91   : > { %v2857_v2 = vsel %vm1561_vm4, %v2852_v1, 0  ;;  %9276 = vmatmul.mubr.msk.bf16.vlgmr.msra.gmra.mrb[44].mxu0 %vm1561_vm4, %v2696_v63 }
 0xc92   : > { %9286 = vmatpush3.bf16.xpose.msra.mxu0 %v2857_v2  ;;  %9287 = vmatprep.mubr.msk.bf16.mxu0 %vm10302_vm1, %v10301_v9 }
 0xc93   : > { %9297 = vmatprep.subr.bf16.mxu0 %v10301_v9 }
 0xc95   : > { %9282 = vmatmul.mubr.msk.bf16.vlgmr.msra.gmra.mrb[48].mxu1 %vm1561_vm4, %v2697_v3 }
 0xc96   : > { %9293 = vmatprep.mubr.msk.bf16.mxu1 %vm10302_vm1, %v10301_v9 }
 0xc99   : > { %9288 = vmatmul.mubr.msk.bf16.vlgmr.msra.gmra.mrb[48].mxu0 %vm1561_vm4, %v2698_v5 }
 0xc9a   : > { %9299 = vmatprep.mubr.msk.bf16.mxu0 %vm10302_vm1, %v10301_v9 }
 0xd5c   : > { %v2746_v6 = vpop.f32.mrb[44].mxu1 }
 0xd5d   : > { %v2747_v7 = vadd.f32 %v10659_v13, %v2746_v6  ;;  %v9271_v57 = vpop.f32.mrb[45].mxu1 }
 0xd5e   : > { %v2749_v8 = vpop.f32.mrb[46].mxu1 }
 0xd5f   : > { %v9272_v10 = vpop.f32.mrb[47].mxu1  ;;  %v2899_v41 = vsel %vm1561_vm4, %v2747_v7, -inf }
 0xd60   : > { %2900 = vmax.xlane.f32.xlu1 %v2899_v41 }
 0xd64   : > { %v2795_v11 = vpop.f32.mrb[44].mxu0 }
 0xd65   : > { %v2796_v12 = vadd.f32 %v10659_v13, %v2795_v11  ;;  %v9277_v14 = vpop.f32.mrb[45].mxu0  ;;  %v8515_v11 = vld [vmem:[%s11786_s8 + $0x10] sm:$0xf] }
 0xd66   : > { %v2798_v15 = vpop.f32.mrb[46].mxu0  ;;  %v8516_v14 = vld [vmem:[%s11786_s8 + $0x14] sm:$0xf] }
 0xd67   : > { %v9278_v16 = vpop.f32.mrb[47].mxu0  ;;  %v2902_v17 = vsel %vm1561_vm4, %v2796_v12, -inf  ;;  %v3193_v15 = vsel %vm1808_vm5, %v8516_v14, 0 }
 0xd68   : > { %2903 = vmax.xlane.f32.xlu0 %v2902_v17  ;;  %v2844_v18 = vpop.f32.mrb[48].mxu1  ;;  %v8517_v16 = vld [vmem:[%s11786_s8 + $0x18] sm:$0xf] }
 0xd69   : > { %v2845_v19 = vadd.f32 %v10659_v13, %v2844_v18  ;;  %v9283_v20 = vpop.f32.mrb[49].mxu1 }
 0xd6a   : > { %v2847_v21 = vpop.f32.mrb[50].mxu1  ;;  %v3239_v20 = vsel %vm1808_vm5, %v8517_v16, 0 }
 0xd6b   : > { %v9284_v0 = vpop.f32.mrb[51].mxu1  ;;  %v2905_v22 = vsel %vm1561_vm4, %v2845_v19, -inf }
 0xd6c   : > { %v2893_v23 = vpop.f32.mrb[48].mxu0  ;;  %2906 = vmax.xlane.f32.xlu0 %v2905_v22  ;;  %v8518_v22 = vld [vmem:[%s11786_s8 + $0x1c] sm:$0xf]  ;;  %s11808_s8 = smov 112  }
 0xd6d   : > { %v2894_v24 = vadd.f32 %v10659_v13, %v2893_v23  ;;  %v9289_v25 = vpop.f32.mrb[49].mxu0 }
 0xd6e   : > { %v2896_v26 = vpop.f32.mrb[50].mxu0 }
 0xd6f   : > { %v9290_v27 = vpop.f32.mrb[51].mxu0  ;;  %v2908_v28 = vsel %vm1561_vm4, %v2894_v24, -inf  ;;  %v3285_v26 = vsel %vm1808_vm5, %v8518_v22, 0 }
 0xd70   : > { %2909 = vmax.xlane.f32.xlu1 %v2908_v28 }
 0xd81   : > { %2995 = vrot.lane.b32.xlu1 %v10803_v40, %s11708_s10 }
 0xd82   : > { %2947 = vrot.lane.b32.xlu0 %v10797_v30, %s11708_s10 }
 0xded   : > { %v2901_v29 = vpop.xlane.xlu1 %2900 }
 0xdee   : > { %v2911_v31 = vsub.f32 %v2747_v7, %v2901_v29 }
 0xdf0   : > { %v2915_v32 = vmul.f32 1.442695, %v2911_v31 }
 0xdf2   : > { %10078 = vpow2.f32 %v2915_v32 }
 0xdf5   : > { %v2904_v33 = vpop.xlane.xlu0 %2903 }
 0xdf6   : > { %v2912_v34 = vsub.f32 %v2796_v12, %v2904_v33  ;;  %v3147_v12 = vsel %vm1808_vm5, %v8515_v11, 0  ;;  %v9985_v11 = vld [vmem:[%s11777_s30 + $0x18] sm:$0xff]  }
 0xdf8   : > { %v2917_v35 = vmul.f32 1.442695, %v2912_v34 }
 0xdf9   : > { %v2907_v13 = vpop.xlane.xlu0 %2906 }
 0xdfa   : > { %10080 = vpow2.f32 %v2917_v35  ;;  %v2913_v36 = vsub.f32 %v2845_v19, %v2907_v13 }
 0xdfc   : > { %v10079_v37 = vpop.eup %10078  ;;  %v2919_v38 = vmul.f32 1.442695, %v2913_v36 }
 0xdfd   : > { %v2910_v39 = vpop.xlane.xlu1 %2909  ;;  %v2948_v42 = vpop.permute.xlu0 %2947  ;;  %v2923_v43 = vsel %vm1561_vm4, %v10079_v37, 0.0 }
 0xdfe   : > { %10082 = vpow2.f32 %v2919_v38  ;;  %v2914_v40 = vsub.f32 %v2894_v24, %v2910_v39  ;;  %v2953_v30 = vsel %vm1808_vm5, %v2948_v42, 0  ;;  %2924 = vadd.xlane.f32.xlu0 %v2923_v43 }
 0xdff   : > { %9292 = vmatpush3.bf16.msra.mxu1 %v2953_v30 }
 0xe00   : > { %v2921_v46 = vmul.f32 1.442695, %v2914_v40  ;;  %9303 = vmatprep.subr.bf16.mxu1 %v10301_v9 }
 0xe01   : > { %v2996_v47 = vpop.permute.xlu1 %2995 }
 0xe02   : > { %10084 = vpow2.f32 %v2921_v46  ;;  %v3001_v48 = vsel %vm1808_vm5, %v2996_v47, 0 }
 0xe03   : > { %9298 = vmatpush3.bf16.msra.mxu0 %v3001_v48 }
 0xe04   : > { %v10081_v49 = vpop.eup %10080  ;;  %9309 = vmatprep.subr.bf16.mxu0 %v10301_v9 }
 0xe05   : > { %v2926_v44 = vsel %vm1561_vm4, %v10081_v49, 0.0 }
 0xe06   : > { %2927 = vadd.xlane.f32.xlu1 %v2926_v44 }
 0xe08   : > { %v10083_v50 = vpop.eup %10082 }
 0xe09   : > { %v2929_v52 = vsel %vm1561_vm4, %v10083_v50, 0.0 }
 0xe0a   : > { %2930 = vadd.xlane.f32.xlu0 %v2929_v52 }
 0xe0c   : > { %v10085_v53 = vpop.eup %10084 }
 0xe0d   : > { %v2932_v55 = vsel %vm1561_vm4, %v10085_v53, 0.0 }
 0xe0e   : > { %2933 = vadd.xlane.f32.xlu1 %v2932_v55 }
 0xe1f   : > { %3043 = vrot.lane.b32.xlu1 %v10808_v45, %s11708_s10 }
 0xe20   : > { %3091 = vrot.lane.b32.xlu0 %v10812_v51, %s11708_s10  ;;  %s11800_s10 = sld [smem:[#allocation6_spill]] }
 0xe26   : > { %s1233_s3 = scalar_lea.vmem %s11800_s10, %s11801_s16  ;;  %s11804_s10 = sld [smem:[#allocation22_spill]] }
 0xe27   : > { %s11805_s16 = sld [smem:[#allocation24_spill]] }
 0xe8b   : > { %v2925_v56 = vpop.xlane.xlu0 %2924 }
 0xe8c   : > { %10086 = vrcp.f32 %v2925_v56 }
 0xe93   : > { %v2928_v58 = vpop.xlane.xlu1 %2927 }
 0xe94   : > { %10088 = vrcp.f32 %v2928_v58 }
 0xe96   : > { %v10087_v59 = vpop.eup %10086 }
 0xe97   : > { %v2939_v60 = vmul.f32 %v10087_v59, %v10079_v37  ;;  %v2931_v61 = vpop.xlane.xlu0 %2930 }
 0xe98   : > { %10090 = vrcp.f32 %v2931_v61  ;;  %v8532_v61 = vld [vmem:[%s11784_s14 + $0x1] ss:$0 sm:$0xff]  ;;  %s11811_s14 = sld [smem:[#allocation29_spill]] }
 0xe99   : > { %v2943_v62 = vpack.c.bf16 %v2939_v60, %v2939_v60 }
 0xe9b   : > { %v2934_v63 = vpop.xlane.xlu1 %2933  ;;  %9294 = vmatmul.mubr.msk.bf16.vlgmr.msra.gmra.mrb[52].mxu1 %vm1561_vm4, %v2943_v62  ;;  %v3092_v51 = vpop.permute.xlu0 %3091 }
 0xe9c   : > { %10092 = vrcp.f32 %v2934_v63  ;;  %9305 = vmatprep.mubr.msk.bf16.mxu1 %vm10302_vm1, %v10301_v9  ;;  %v3097_v7 = vsel %vm1808_vm5, %v3092_v51, 0 }
 0xe9e   : > { %v10089_v45 = vpop.eup %10088 }
 0xe9f   : > { %v2940_v1 = vmul.f32 %v10089_v45, %v10081_v49  ;;  %v3044_v2 = vpop.permute.xlu1 %3043 }
 0xea0   : > { %v3049_v3 = vsel %vm1808_vm5, %v3044_v2, 0 }
 0xea1   : > { %9304 = vmatpush3.bf16.msra.mxu1 %v3049_v3  ;;  %v2944_v4 = vpack.c.bf16 %v2940_v1, %v2940_v1 }
 0xea2   : > { %v10091_v5 = vpop.eup %10090  ;;  %9315 = vmatprep.subr.bf16.mxu1 %v10301_v9 }
 0xea3   : > { %v2941_v6 = vmul.f32 %v10091_v5, %v10083_v50  ;;  %9300 = vmatmul.mubr.msk.bf16.vlgmr.msra.gmra.mrb[52].mxu0 %vm1561_vm4, %v2944_v4 }
 0xea4   : > { %9310 = vmatpush3.bf16.msra.mxu0 %v3097_v7  ;;  %9311 = vmatprep.mubr.msk.bf16.mxu0 %vm10302_vm1, %v10301_v9 }
 0xea5   : > { %v2945_v57 = vpack.c.bf16 %v2941_v6, %v2941_v6  ;;  %9321 = vmatprep.subr.bf16.mxu0 %v10301_v9 }
 0xea6   : > { %v10093_v8 = vpop.eup %10092 }
 0xea7   : > { %v2942_v10 = vmul.f32 %v10093_v8, %v10085_v53  ;;  %9306 = vmatmul.mubr.msk.bf16.vlgmr.msra.gmra.mrb[56].mxu1 %vm1561_vm4, %v2945_v57  ;;  %v10914_v8 = vld [vmem:[%s1233_s3] sm:$0xff]  ;;  %s11802_s3 = sld [smem:[#allocation23_spill]] }
 0xea8   : > { %9317 = vmatprep.mubr.msk.bf16.mxu1 %vm10302_vm1, %v10301_v9  ;;  %9316 = vmatpush3.bf16.msra.mxu1 %v3147_v12 }
 0xea9   : > { %v2946_v41 = vpack.c.bf16 %v2942_v10, %v2942_v10  ;;  %9327 = vmatprep.subr.bf16.mxu1 %v10301_v9 }
 0xeab   : > { %9312 = vmatmul.mubr.msk.bf16.vlgmr.msra.gmra.mrb[56].mxu0 %vm1561_vm4, %v2946_v41  ;;  %v9984_v41 = vld [vmem:[%s11777_s30 + $0x10] sm:$0xff]   ;;  %s11821_s30 = sld [smem:[#allocation37_spill]] }
 0xeac   : > { %9323 = vmatprep.mubr.msk.bf16.mxu0 %vm10302_vm1, %v10301_v9  ;;  %9322 = vmatpush3.bf16.msra.mxu0 %v3193_v15 }
 0xead   : > { %9333 = vmatprep.subr.bf16.mxu0 %v10301_v9 }
 0xf6e   : > { %v2989_v17 = vpop.f32.mrb[52].mxu1 }
 0xf6f   : > { %v3139_v18 = vpack.c.bf16 %v2989_v17, %v2989_v17  ;;  %v9295_v19 = vpop.f32.mrb[53].mxu1 }
 0xf70   : > { %v2992_v21 = vpop.f32.mrb[54].mxu1 }
 0xf71   : > { %v9296_v0 = vpop.f32.mrb[55].mxu1  ;;  %9318 = vmatmul.mubr.msk.bf16.vlgmr.msra.gmra.mrb[60].mxu1 %vm1561_vm4, %v3139_v18 }
 0xf72   : > { %9328 = vmatpush3.bf16.msra.mxu1 %v3239_v20  ;;  %9329 = vmatprep.mubr.msk.bf16.mxu1 %vm10302_vm1, %v10301_v9 }
 0xf73   : > { %9339 = vmatprep.subr.bf16.mxu1 %v10301_v9 }
 0xf76   : > { %v3037_v23 = vpop.f32.mrb[52].mxu0 }
 0xf77   : > { %v3140_v24 = vpack.c.bf16 %v3037_v23, %v3037_v23  ;;  %v9301_v25 = vpop.f32.mrb[53].mxu0 }
 0xf78   : > { %v3040_v27 = vpop.f32.mrb[54].mxu0  ;;  %v8549_v25 = vld [vmem:[%s11783_s19 + $0x1] ss:$0 sm:$0xff]  ;;  %s11812_s19 = sld [smem:[#allocation27_spill]] }
 0xf79   : > { %v9302_v28 = vpop.f32.mrb[55].mxu0  ;;  %9324 = vmatmul.mubr.msk.bf16.vlgmr.msra.gmra.mrb[60].mxu0 %vm1561_vm4, %v3140_v24 }
 0xf7a   : > { %v3085_v29 = vpop.f32.mrb[56].mxu1  ;;  %9334 = vmatpush3.bf16.msra.mxu0 %v3285_v26  ;;  %9335 = vmatprep.mubr.msk.bf16.mxu0 %vm10302_vm1, %v10301_v9  ;;  %v8550_v28 = vld [vmem:[%s11780_s24 + $0x1] ss:$0 sm:$0xff]  ;;  %s11815_s24 = sld [smem:[#allocation31_spill]] }
 0xf7b   : > { %v3141_v31 = vpack.c.bf16 %v3085_v29, %v3085_v29  ;;  %v9307_v32 = vpop.f32.mrb[57].mxu1  ;;  %9347 = vmatprep.subr.bf16.mxu0 %v10301_v9 }
 0xf7c   : > { %v3088_v33 = vpop.f32.mrb[58].mxu1 }
 0xf7d   : > { %v9308_v34 = vpop.f32.mrb[59].mxu1  ;;  %9330 = vmatmul.mubr.msk.bf16.vlgmr.msra.gmra.mrb[64].mxu1 %vm1561_vm4, %v3141_v31  ;;  %v9986_v33 = vld [vmem:[%s11802_s3] sm:$0xff]  }
 0xf7e   : > { %v3133_v35 = vpop.f32.mrb[56].mxu0  ;;  %9343 = vmatprep.mubr.msk.bf16.mxu1 %vm10302_vm1, %v10301_v9  ;;  %9340 = vmatpush3.bf16.msra.mxu1 %v9984_v41  ;;  %v9987_v34 = vld [vmem:[%s11802_s3 + $0x8] sm:$0xff]  }
 0xf7f   : > { %v3142_v13 = vpack.c.bf16 %v3133_v35, %v3133_v35  ;;  %v9313_v36 = vpop.f32.mrb[57].mxu0  ;;  %9341 = vmatprep.subr.bf16.mxu1 %v10301_v9  ;;  %v9992_v35 = vld [vmem:[%s11785_s12 + $0x20] sm:$0xff]  }
 0xf80   : > { %v3136_v37 = vpop.f32.mrb[58].mxu0  ;;  %v9994_v36 = vld [vmem:[%s11785_s12 + $0x30] sm:$0xff]  }
 0xf81   : > { %v9314_v38 = vpop.f32.mrb[59].mxu0  ;;  %9336 = vmatmul.mubr.msk.bf16.vlgmr.msra.gmra.mrb[64].mxu0 %vm1561_vm4, %v3142_v13  ;;  %v9993_v13 = vld [vmem:[%s11785_s12 + $0x28] sm:$0xff]   ;;  %v9995_v37 = vld [vmem:[%s11785_s12 + $0x38] sm:$0xff]   ;;  %s11809_s12 = sld [smem:[#allocation25_spill]] }
 0xf82   : > { %9355 = vmatprep.mubr.msk.bf16.mxu0 %vm10302_vm1, %v10301_v9  ;;  %9342 = vmatpush3.bf16.msra.mxu1 %v9985_v11 }
 0xf83   : > { %9359 = vmatprep.subr.bf16.mxu1 %v10301_v9  ;;  %9348 = vmatpush3.bf16.msra.mxu0 %v9992_v35 }
 0xf84   : > { %9349 = vmatprep.subr.bf16.mxu0 %v10301_v9 }
 0xf87   : > { %9350 = vmatpush3.bf16.msra.mxu0 %v9993_v13 }
 0xf88   : > { %9351 = vmatprep.subr.bf16.mxu0 %v10301_v9 }
 0xf8b   : > { %9352 = vmatpush3.bf16.msra.mxu0 %v9994_v36 }
 0xf8c   : > { %9353 = vmatprep.subr.bf16.mxu0 %v10301_v9 }
 0xf8f   : > { %9354 = vmatpush3.bf16.msra.mxu0 %v9995_v37 }
 0xf90   : > { %9375 = vmatprep.subr.bf16.mxu0 %v10301_v9 }
0x1044   : > { %v3183_v39 = vpop.f32.mrb[60].mxu1 }
0x1045   : > { %v9319_v42 = vpop.f32.mrb[61].mxu1  ;;  %v3327_v46 = vsel %vm1243_vm0, %v3183_v39, 0.0 }
0x1046   : > { %v3186_v43 = vpop.f32.mrb[62].mxu1 }
0x1047   : > { %v9320_v40 = vpop.f32.mrb[63].mxu1 }
0x104c   : > { %v3229_v30 = vpop.f32.mrb[60].mxu0 }
0x104d   : > { %v3328_v47 = vsel %vm1243_vm0, %v3229_v30, 0.0  ;;  %v9325_v48 = vpop.f32.mrb[61].mxu0 }
0x104e   : > { %v3329_v49 = vadd.f32 %v3328_v47, %v3327_v46  ;;  %v3232_v44 = vpop.f32.mrb[62].mxu0  ;;  %v8563_v48 = vld [vmem:[%s11803_s26] ss:$0 sm:$0xff] }
0x104f   : > { %v9326_v50 = vpop.f32.mrb[63].mxu0 }
0x1050   : > { %v3275_v52 = vpop.f32.mrb[64].mxu1  ;;  %v8564_v50 = vld [vmem:[%s11804_s10] ss:$0 sm:$0xff] }
0x1051   : > { %v3330_v53 = vsel %vm1243_vm0, %v3275_v52, 0.0  ;;  %v9331_v55 = vpop.f32.mrb[65].mxu1 }
0x1052   : > { %v3331_v56 = vadd.f32 %v3330_v53, %v3329_v49  ;;  %v3278_v58 = vpop.f32.mrb[66].mxu1  ;;  %v9988_v55 = vld [vmem:[%s11802_s3 + $0x10] sm:$0xff]  }
0x1053   : > { %v9332_v59 = vpop.f32.mrb[67].mxu1  ;;  %v9989_v58 = vld [vmem:[%s11802_s3 + $0x18] sm:$0xff]  }
0x1054   : > { %v3321_v60 = vpop.f32.mrb[64].mxu0  ;;  %v9990_v59 = vld [vmem:[%s11802_s3 + $0x30] sm:$0xff]  }
0x1055   : > { %v3332_v62 = vsel %vm1243_vm0, %v3321_v60, 0.0  ;;  %v9337_v63 = vpop.f32.mrb[65].mxu0  ;;  %v9991_v60 = vld [vmem:[%s11802_s3 + $0x38] sm:$0xff]  }
0x1056   : > { %v3333_v45 = vadd.f32 %v3332_v62, %v3331_v56  ;;  %v3324_v1 = vpop.f32.mrb[66].mxu0 }
0x1057   : > { %v9338_v2 = vpop.f32.mrb[67].mxu0 }
0x1058   : > { %v3340_v51 = vadd.f32 %v8532_v61, %v3333_v45  ;;  %v8551_v61 = vld [vmem:[%s11787_s6 + $0x1] ss:$0 sm:$0xff]  ;;  %s11807_s6 = sld [smem:[#allocation8_spill]] }
0x105a   : > { %v10906_v3 = vadd.f32 %v3340_v51, %v10760_v54  ;;  %v3575_v54 = vsel %vm1243_vm0, %v10914_v8, 0.0 }
0x105c   : > { %v3364_v4 = vsel %vm1243_vm0, %v10906_v3, 0.0 }
0x105d   : > { %3365 = vadd.xlane.f32.xlu1 %v3364_v4  ;;  %v9996_v4 = vld [vmem:[%s11802_s3 + $0x20] sm:$0xff]  }
0x10ea   : > { %v3366_v5 = vpop.xlane.xlu1 %3365 }
0x10eb   : > { %v3367_v6 = vmul.f32 0.03125, %v3366_v5 }
0x10ed   : > { %v3368_v7 = vsub.f32 %v10906_v3, %v3367_v6  ;;  %v9997_v6 = vld [vmem:[%s11802_s3 + $0x28] sm:$0xff]  }
0x10ef   : > { %v3369_v57 = vmul.f32 %v3368_v7, %v3368_v7  ;;  %v3380_v26 = vmul.f32 %v8549_v25, %v3368_v7  ;;  %v8565_v7 = vld [vmem:[%s11805_s16] ss:$0 sm:$0xff] }
0x10f1   : > { %v3370_v10 = vsel %vm1243_vm0, %v3369_v57, 0.0 }
0x10f2   : > { %3371 = vadd.xlane.f32.xlu0 %v3370_v10 }
0x10f6   : > { %3576 = vadd.xlane.f32.xlu0 %v3575_v54 }
0x117f   : > { %v3372_v12 = vpop.xlane.xlu0 %3371 }
0x1180   : > { %v3373_v14 = vmul.f32 0.032258064, %v3372_v12 }
0x1182   : > { %10094 = vrsqrt.f32 %v3373_v14  ;;  %vm3383_vm11 = vcmp.eq.f32.partialorder %v3373_v14, inf  ;;  %v3386_v0 = vand.u32 2147483648, %v3373_v14  ;;  %vm3385_vm12 = vcmp.eq.f32.partialorder %v3373_v14, 0.0 }
0x1183   : > { %v3577_v15 = vpop.xlane.xlu0 %3576 }
0x1184   : > { %v3578_v16 = vmul.f32 0.03125, %v3577_v15 }
0x1186   : > { %v3579_v17 = vsub.f32 %v10914_v8, %v3578_v16 }
0x1188   : > { %v3580_v18 = vmul.f32 %v3579_v17, %v3579_v17  ;;  %v3591_v49 = vmul.f32 %v8563_v48, %v3579_v17 }
0x118a   : > { %v3581_v19 = vsel %vm1243_vm0, %v3580_v18, 0.0 }
0x118b   : > { %3582 = vadd.xlane.f32.xlu1 %v3581_v19 }
0x118c   : > { %v10095_v20 = vpop.eup %10094 }
0x118d   : > { %v3382_v21 = vmul.f32 %v10095_v20, %v3373_v14 }
0x118f   : > { %v3384_v22 = vsel %vm3383_vm11, %v3373_v14, %v3382_v21  ;;  %v8566_v14 = vld [vmem:[%s11805_s16 + $0x1] ss:$0 sm:$0xff]  ;;  %v8568_v21 = vld [vmem:[%s11805_s16 + $0x3] ss:$0 sm:$0xff] }
0x1190   : > { %v3387_v23 = vsel %vm3385_vm12, %v3386_v0, %v3384_v22 }
0x1191   : > { %v3388_v24 = vadd.f32 1e-06, %v3387_v23 }
0x1193   : > { %10096 = vrcp.f32 %v3388_v24 }
0x119d   : > { %v10097_v27 = vpop.eup %10096 }
0x119e   : > { %v3390_v29 = vmul.f32 %v10097_v27, %v3380_v26 }
0x11a0   : > { %v3397_v31 = vadd.f32 %v8550_v28, %v3390_v29 }
0x11a2   : > { %v3398_v32 = vpack.c.bf16 %v3397_v31, %v3397_v31 }
0x11a4   : > { %9344 = vmatmul.mubr.msk.bf16.vlgmr.msra.gmra.mrb[68].mxu1 %vm1243_vm0, %v3398_v32  ;;  %v8567_v32 = vld [vmem:[%s11805_s16 + $0x2] ss:$0 sm:$0xff] }
0x11a5   : > { %9363 = vmatprep.mubr.msk.bf16.mxu1 %vm10302_vm1, %v10301_v9  ;;  %9360 = vmatpush3.bf16.msra.mxu1 %v9986_v33 }
0x11a6   : > { %9361 = vmatprep.subr.bf16.mxu1 %v10301_v9 }
0x11a9   : > { %9362 = vmatpush3.bf16.msra.mxu1 %v9987_v34 }
0x11aa   : > { %9367 = vmatprep.subr.bf16.mxu1 %v10301_v9 }
0x1218   : > { %v3583_v38 = vpop.xlane.xlu1 %3582 }
0x1219   : > { %v3584_v39 = vmul.f32 0.032258064, %v3583_v38 }
0x121b   : > { %10098 = vrsqrt.f32 %v3584_v39  ;;  %vm3594_vm13 = vcmp.eq.f32.partialorder %v3584_v39, inf  ;;  %v3597_v43 = vand.u32 2147483648, %v3584_v39  ;;  %vm3596_vm14 = vcmp.eq.f32.partialorder %v3584_v39, 0.0 }
0x1225   : > { %v10099_v42 = vpop.eup %10098 }
0x1226   : > { %v3593_v40 = vmul.f32 %v10099_v42, %v3584_v39 }
0x1228   : > { %v3595_v30 = vsel %vm3594_vm13, %v3584_v39, %v3593_v40 }
0x1229   : > { %v3598_v46 = vsel %vm3596_vm14, %v3597_v43, %v3595_v30 }
0x122a   : > { %v3599_v47 = vadd.f32 1e-06, %v3598_v46 }
0x122c   : > { %10100 = vrcp.f32 %v3599_v47 }
0x1236   : > { %v10101_v44 = vpop.eup %10100 }
0x1237   : > { %v3601_v52 = vmul.f32 %v10101_v44, %v3591_v49 }
0x1239   : > { %v3608_v53 = vadd.f32 %v8564_v50, %v3601_v52 }
0x123b   : > { %v3629_v56 = vpack.c.bf16 %v3608_v53, %v3608_v53 }
0x123d   : > { %9364 = vmatmul.mubr.msk.bf16.vlgmr.msra.gmra.mrb[72].mxu1 %vm1243_vm0, %v3629_v56 }
0x123e   : > { %9368 = vmatpush3.bf16.msra.mxu1 %v9988_v55  ;;  %9371 = vmatprep.mubr.msk.bf16.mxu1 %vm10302_vm1, %v10301_v9 }
0x123f   : > { %9369 = vmatprep.subr.bf16.mxu1 %v10301_v9 }
0x1242   : > { %9370 = vmatpush3.bf16.msra.mxu1 %v9989_v58  ;;  %v1239_v58 = vld [vmem:[%s11807_s6] sm:$0xff] }
0x1243   : > { %9383 = vmatprep.subr.bf16.mxu1 %v10301_v9 }
0x1245   : > { %9372 = vmatmul.mubr.msk.bf16.vlgmr.msra.gmra.mrb[76].mxu1 %vm1243_vm0, %v3629_v56 }
0x1246   : > { %9384 = vmatpush3.bf16.msra.mxu1 %v9990_v59  ;;  %9387 = vmatprep.mubr.msk.bf16.mxu1 %vm10302_vm1, %v10301_v9 }
0x1247   : > { %9385 = vmatprep.subr.bf16.mxu1 %v10301_v9 }
0x124a   : > { %9386 = vmatpush3.bf16.msra.mxu1 %v9991_v60 }
0x124b   : > { %9397 = vmatprep.subr.bf16.mxu1 %v10301_v9 }
0x124d   : > { %9388 = vmatmul.mubr.msk.bf16.vlgmr.msra.gmra.mrb[80].mxu1 %vm1243_vm0, %v3629_v56 }
0x124e   : > { %9399 = vmatprep.mubr.msk.bf16.mxu1 %vm10302_vm1, %v10301_v9 }
0x1277   : > { %v3454_v62 = vpop.f32.mrb[68].mxu1 }
0x1278   : > { %v3455_v63 = vadd.f32 %v8551_v61, %v3454_v62  ;;  %v9345_v45 = vpop.f32.mrb[69].mxu1 }
0x1279   : > { %v3457_v1 = vpop.f32.mrb[70].mxu1 }
0x127a   : > { %v3460_v2 = vmax.f32 %v3455_v63, 0.0  ;;  %v9346_v51 = vpop.f32.mrb[71].mxu1 }
0x127c   : > { %v3461_v5 = vpack.c.bf16 %v3460_v2, %v3460_v2 }
0x127e   : > { %9356 = vmatmul.mubr.msk.bf16.vlgmr.msra.gmra.mrb[68].mxu0 %vm2343_vm8, %v3461_v5 }
0x127f   : > { %9376 = vmatpush3.bf16.msra.mxu0 %v9996_v4  ;;  %9379 = vmatprep.mubr.msk.bf16.mxu0 %vm10302_vm1, %v10301_v9 }
0x1280   : > { %9377 = vmatprep.subr.bf16.mxu0 %v10301_v9 }
0x1283   : > { %9378 = vmatpush3.bf16.msra.mxu0 %v9997_v6 }
0x1284   : > { %9391 = vmatprep.subr.bf16.mxu0 %v10301_v9 }
0x1286   : > { %9380 = vmatmul.mubr.msk.bf16.vlgmr.msra.gmra.mrb[72].mxu0 %vm1243_vm0, %v3629_v56 }
0x1287   : > { %9393 = vmatprep.mubr.msk.bf16.mxu0 %vm10302_vm1, %v10301_v9 }
0x1310   : > { %v3703_v57 = vpop.f32.mrb[72].mxu1 }
0x1311   : > { %v3704_v10 = vadd.f32 %v8565_v7, %v3703_v57  ;;  %v9365_v54 = vpop.f32.mrb[73].mxu1 }
0x1312   : > { %v3706_v41 = vpop.f32.mrb[74].mxu1 }
0x1313   : > { %v10973_v11 = vpack.c.bf16 %v3704_v10, %v3704_v10  ;;  %v9366_v12 = vpop.f32.mrb[75].mxu1  ;;  %v3870_v42 = vmul.f32 0.35355338, %v3704_v10 }
0x1315   : > { %3883 = vrot.lane.b32.xlu0 %v10973_v11, %s11806_s5  ;;  %v3874_v43 = vpack.c.bf16 %v3870_v42, %v3870_v42 }
0x1318   : > { %v3755_v15 = vpop.f32.mrb[76].mxu1 }
0x1319   : > { %v3756_v16 = vadd.f32 %v8566_v14, %v3755_v15  ;;  %v9373_v17 = vpop.f32.mrb[77].mxu1 }
0x131a   : > { %v3758_v18 = vpop.f32.mrb[78].mxu1 }
0x131b   : > { %v10978_v19 = vpack.c.bf16 %v3756_v16, %v3756_v16  ;;  %v9374_v20 = vpop.f32.mrb[79].mxu1  ;;  %v3871_v46 = vmul.f32 0.35355338, %v3756_v16 }
0x131d   : > { %3932 = vrot.lane.b32.xlu1 %v10978_v19, %s11806_s5  ;;  %v3875_v47 = vpack.c.bf16 %v3871_v46, %v3871_v46 }
0x1320   : > { %v3859_v0 = vpop.f32.mrb[80].mxu1 }
0x1321   : > { %v3860_v22 = vadd.f32 %v8568_v21, %v3859_v0  ;;  %v9389_v23 = vpop.f32.mrb[81].mxu1 }
0x1322   : > { %v3862_v24 = vpop.f32.mrb[82].mxu1 }
0x1323   : > { %v10983_v25 = vpack.c.bf16 %v3860_v22, %v3860_v22  ;;  %v9390_v26 = vpop.f32.mrb[83].mxu1  ;;  %v3873_v44 = vmul.f32 0.35355338, %v3860_v22 }
0x1325   : > { %4030 = vrot.lane.b32.xlu0 %v10983_v25, %s11806_s5  ;;  %v3877_v50 = vpack.c.bf16 %v3873_v44, %v3873_v44 }
0x1351   : > { %v10987_v27 = vpop.f32.mrb[68].mxu0 }
0x1352   : > { %v9357_v28 = vpop.f32.mrb[69].mxu0 }
0x1353   : > { %v3532_v29 = vpop.f32.mrb[70].mxu0 }
0x1354   : > { %v9358_v31 = vpop.f32.mrb[71].mxu0 }
0x1359   : > { %v3807_v33 = vpop.f32.mrb[72].mxu0 }
0x135a   : > { %v3808_v34 = vadd.f32 %v8567_v32, %v3807_v33  ;;  %v9381_v35 = vpop.f32.mrb[73].mxu0 }
0x135b   : > { %v3810_v13 = vpop.f32.mrb[74].mxu0 }
0x135c   : > { %v10990_v36 = vpack.c.bf16 %v3808_v34, %v3808_v34  ;;  %v9382_v37 = vpop.f32.mrb[75].mxu0  ;;  %v3872_v55 = vmul.f32 0.35355338, %v3808_v34 }
0x135e   : > { %3981 = vrot.lane.b32.xlu1 %v10990_v36, %s11806_s5  ;;  %v3876_v56 = vpack.c.bf16 %v3872_v55, %v3872_v55 }
0x1387   : > { %v3884_v38 = vpop.permute.xlu0 %3883 }
0x1388   : > { %v3889_v39 = vsel %vm1561_vm4, %v3884_v38, 0 }
0x1389   : > { %9392 = vmatpush3.bf16.xpose.msra.mxu0 %v3889_v39 }
0x138a   : > { %9403 = vmatprep.subr.bf16.mxu0 %v10301_v9 }
0x138f   : > { %v3933_v40 = vpop.permute.xlu1 %3932 }
0x1390   : > { %v3938_v30 = vsel %vm1561_vm4, %v3933_v40, 0  ;;  %9394 = vmatmul.mubr.msk.bf16.vlgmr.msra.gmra.mrb[76].mxu0 %vm1561_vm4, %v3874_v43 }
0x1391   : > { %9398 = vmatpush3.bf16.xpose.msra.mxu1 %v3938_v30  ;;  %9405 = vmatprep.mubr.msk.bf16.mxu0 %vm10302_vm1, %v10301_v9  ;;  %v8555_v30 = vld [vmem:[%s11782_s20 + $0x1] ss:$0 sm:$0xff]  ;;  %s11813_s20 = sld [smem:[#allocation28_spill]] }
0x1392   : > { %9409 = vmatprep.subr.bf16.mxu1 %v10301_v9 }
0x1397   : > { %v4031_v48 = vpop.permute.xlu0 %4030 }
0x1398   : > { %v4036_v49 = vsel %vm1561_vm4, %v4031_v48, 0  ;;  %9400 = vmatmul.mubr.msk.bf16.vlgmr.msra.gmra.mrb[84].mxu1 %vm1561_vm4, %v3875_v47 }
0x1399   : > { %9410 = vmatpush3.bf16.xpose.msra.mxu1 %v4036_v49  ;;  %9411 = vmatprep.mubr.msk.bf16.mxu1 %vm10302_vm1, %v10301_v9 }
0x139a   : > { %9421 = vmatprep.subr.bf16.mxu1 %v10301_v9 }
0x13a0   : > { %9412 = vmatmul.mubr.msk.bf16.vlgmr.msra.gmra.mrb[88].mxu1 %vm1561_vm4, %v3877_v50 }
0x13a1   : > { %9423 = vmatprep.mubr.msk.bf16.mxu1 %vm10302_vm1, %v10301_v9 }
0x13d0   : > { %v3982_v52 = vpop.permute.xlu1 %3981 }
0x13d1   : > { %v3987_v53 = vsel %vm1561_vm4, %v3982_v52, 0 }
0x13d2   : > { %9404 = vmatpush3.bf16.xpose.msra.mxu0 %v3987_v53 }
0x13d3   : > { %9415 = vmatprep.subr.bf16.mxu0 %v10301_v9 }
0x13d9   : > { %9406 = vmatmul.mubr.msk.bf16.vlgmr.msra.gmra.mrb[80].mxu0 %vm1561_vm4, %v3876_v56 }
0x13da   : > { %9417 = vmatprep.mubr.msk.bf16.mxu0 %vm10302_vm1, %v10301_v9 }
0x1463   : > { %v3925_v59 = vpop.f32.mrb[76].mxu0 }
0x1464   : > { %v3926_v60 = vadd.f32 %v3925_v59, %v1239_v58  ;;  %v9395_v61 = vpop.f32.mrb[77].mxu0 }
0x1465   : > { %v3928_v62 = vpop.f32.mrb[78].mxu0 }
0x1466   : > { %v9396_v63 = vpop.f32.mrb[79].mxu0  ;;  %v4078_v45 = vsel %vm1561_vm4, %v3926_v60, -inf }
0x1467   : > { %4079 = vmax.xlane.f32.xlu1 %v4078_v45 }
0x146b   : > { %v3974_v1 = vpop.f32.mrb[84].mxu1 }
0x146c   : > { %v3975_v2 = vadd.f32 %v3974_v1, %v1239_v58  ;;  %v9401_v51 = vpop.f32.mrb[85].mxu1 }
0x146d   : > { %v3977_v4 = vpop.f32.mrb[86].mxu1 }
0x146e   : > { %v9402_v5 = vpop.f32.mrb[87].mxu1  ;;  %v4081_v6 = vsel %vm1561_vm4, %v3975_v2, -inf }
0x146f   : > { %4082 = vmax.xlane.f32.xlu0 %v4081_v6  ;;  %v3865_v5 = vld [vmem:[%s11809_s12] sm:$0xf] }
0x1470   : > { %v4326_v6 = vsel %vm1808_vm5, %v3865_v5, 0 }
0x1473   : > { %v4072_v7 = vpop.f32.mrb[88].mxu1 }
0x1474   : > { %v4073_v57 = vadd.f32 %v4072_v7, %v1239_v58  ;;  %v9413_v10 = vpop.f32.mrb[89].mxu1  ;;  %v3866_v7 = vld [vmem:[%s11809_s12 + $0x4] sm:$0xf] }
0x1475   : > { %v4075_v54 = vpop.f32.mrb[90].mxu1  ;;  %v3867_v10 = vld [vmem:[%s11809_s12 + $0x8] sm:$0xf] }
0x1476   : > { %v9414_v41 = vpop.f32.mrb[91].mxu1  ;;  %v4087_v12 = vsel %vm1561_vm4, %v4073_v57, -inf }
0x1477   : > { %4088 = vmax.xlane.f32.xlu1 %v4087_v12 }
0x14ac   : > { %v4023_v14 = vpop.f32.mrb[80].mxu0 }
0x14ad   : > { %v4024_v15 = vadd.f32 %v4023_v14, %v1239_v58  ;;  %v9407_v16 = vpop.f32.mrb[81].mxu0  ;;  %v4418_v14 = vsel %vm1808_vm5, %v3867_v10, 0  ;;  %v10000_v10 = vld [vmem:[%s11811_s14 + $0x8] sm:$0xff]  }
0x14ae   : > { %v4026_v17 = vpop.f32.mrb[82].mxu0 }
0x14af   : > { %v9408_v18 = vpop.f32.mrb[83].mxu0  ;;  %v4084_v20 = vsel %vm1561_vm4, %v4024_v15, -inf  ;;  %v3868_v17 = vld [vmem:[%s11809_s12 + $0xc] sm:$0xf] }
0x14b0   : > { %4085 = vmax.xlane.f32.xlu0 %v4084_v20 }
0x14f4   : > { %v4080_v21 = vpop.xlane.xlu1 %4079 }
0x14f5   : > { %v4090_v0 = vsub.f32 %v3926_v60, %v4080_v21 }
0x14f7   : > { %v4094_v22 = vmul.f32 1.442695, %v4090_v0  ;;  %v4464_v0 = vsel %vm1808_vm5, %v3868_v17, 0 }
0x14f9   : > { %10102 = vpow2.f32 %v4094_v22 }
0x14fc   : > { %v4083_v23 = vpop.xlane.xlu0 %4082 }
0x14fd   : > { %v4091_v24 = vsub.f32 %v3975_v2, %v4083_v23 }
0x14ff   : > { %v4096_v26 = vmul.f32 1.442695, %v4091_v24 }
0x1501   : > { %10104 = vpow2.f32 %v4096_v26 }
0x1503   : > { %v10103_v28 = vpop.eup %10102 }
0x1504   : > { %v4089_v29 = vpop.xlane.xlu1 %4088  ;;  %v4102_v31 = vsel %vm1561_vm4, %v10103_v28, 0.0 }
0x1505   : > { %v4093_v32 = vsub.f32 %v4073_v57, %v4089_v29  ;;  %4103 = vadd.xlane.f32.xlu0 %v4102_v31  ;;  %v4372_v57 = vsel %vm1808_vm5, %v3866_v7, 0  ;;  %v9998_v7 = vld [vmem:[%s11811_s14] sm:$0xff]  }
0x1507   : > { %v4100_v33 = vmul.f32 1.442695, %v4093_v32 }
0x1509   : > { %10106 = vpow2.f32 %v4100_v33 }
0x150b   : > { %v10105_v34 = vpop.eup %10104 }
0x150c   : > { %v4105_v35 = vsel %vm1561_vm4, %v10105_v34, 0.0 }
0x150d   : > { %4106 = vadd.xlane.f32.xlu1 %v4105_v35 }
0x1513   : > { %v10107_v13 = vpop.eup %10106 }
0x1514   : > { %v4111_v37 = vsel %vm1561_vm4, %v10107_v13, 0.0 }
0x1515   : > { %4112 = vadd.xlane.f32.xlu1 %v4111_v37 }
0x151b   : > { %4126 = vrot.lane.b32.xlu0 %v10973_v11, %s11808_s8  ;;  %v3530_v11 = vadd.f32 %v8555_v30, %v10987_v27 }
0x151d   : > { %v11034_v46 = vadd.f32 %v3530_v11, %v10906_v3 }
0x1526   : > { %4174 = vrot.lane.b32.xlu1 %v10978_v19, %s11808_s8  ;;  %v3538_v19 = vsel %vm1243_vm0, %v11034_v46, 0.0 }
0x152a   : > { %4222 = vrot.lane.b32.xlu1 %v10990_v36, %s11808_s8 }
0x153d   : > { %v4086_v38 = vpop.xlane.xlu0 %4085 }
0x153e   : > { %v4092_v39 = vsub.f32 %v4024_v15, %v4086_v38 }
0x1540   : > { %v4098_v42 = vmul.f32 1.442695, %v4092_v39 }
0x1542   : > { %10108 = vpow2.f32 %v4098_v42 }
0x154c   : > { %v10109_v43 = vpop.eup %10108 }
0x154d   : > { %v4108_v40 = vsel %vm1561_vm4, %v10109_v43, 0.0 }
0x154e   : > { %4109 = vadd.xlane.f32.xlu0 %v4108_v40 }
0x1564   : > { %4270 = vrot.lane.b32.xlu0 %v10983_v25, %s11808_s8 }
0x1583   : > { %3539 = vadd.xlane.f32.xlu0 %v3538_v19 }
0x1592   : > { %v4104_v36 = vpop.xlane.xlu0 %4103 }
0x1593   : > { %10110 = vrcp.f32 %v4104_v36 }
0x1596   : > { %v4127_v47 = vpop.permute.xlu0 %4126 }
0x1597   : > { %v4132_v48 = vsel %vm1808_vm5, %v4127_v47, 0 }
0x1598   : > { %9416 = vmatpush3.bf16.msra.mxu0 %v4132_v48 }
0x1599   : > { %9427 = vmatprep.subr.bf16.mxu0 %v10301_v9 }
0x159a   : > { %v4107_v49 = vpop.xlane.xlu1 %4106 }
0x159b   : > { %10112 = vrcp.f32 %v4107_v49 }
0x159d   : > { %v10111_v25 = vpop.eup %10110 }
0x159e   : > { %v4118_v44 = vmul.f32 %v10111_v25, %v10103_v28 }
0x15a0   : > { %v4122_v27 = vpack.c.bf16 %v4118_v44, %v4118_v44 }
0x15a2   : > { %9418 = vmatmul.mubr.msk.bf16.vlgmr.msra.gmra.mrb[84].mxu0 %vm1561_vm4, %v4122_v27  ;;  %v4113_v3 = vpop.xlane.xlu1 %4112 }
0x15a3   : > { %9429 = vmatprep.mubr.msk.bf16.mxu0 %vm10302_vm1, %v10301_v9  ;;  %10114 = vrcp.f32 %v4113_v3 }
0x15a5   : > { %v10113_v50 = vpop.eup %10112 }
0x15a6   : > { %v4119_v52 = vmul.f32 %v10113_v50, %v10105_v34  ;;  %v4175_v53 = vpop.permute.xlu1 %4174 }
0x15a7   : > { %v4180_v55 = vsel %vm1808_vm5, %v4175_v53, 0 }
0x15a8   : > { %9422 = vmatpush3.bf16.msra.mxu1 %v4180_v55  ;;  %v4123_v56 = vpack.c.bf16 %v4119_v52, %v4119_v52 }
0x15a9   : > { %9433 = vmatprep.subr.bf16.mxu1 %v10301_v9 }
0x15aa   : > { %v4223_v58 = vpop.permute.xlu1 %4222 }
0x15ab   : > { %v4228_v59 = vsel %vm1808_vm5, %v4223_v58, 0  ;;  %9424 = vmatmul.mubr.msk.bf16.vlgmr.msra.gmra.mrb[92].mxu1 %vm1561_vm4, %v4123_v56 }
0x15ac   : > { %9428 = vmatpush3.bf16.msra.mxu0 %v4228_v59  ;;  %9435 = vmatprep.mubr.msk.bf16.mxu1 %vm10302_vm1, %v10301_v9  ;;  %v8593_v59 = vld [vmem:[%s11810_s13] ss:$0 sm:$0xff] }
0x15ad   : > { %9439 = vmatprep.subr.bf16.mxu0 %v10301_v9  ;;  %v10115_v60 = vpop.eup %10114 }
0x15ae   : > { %v4121_v62 = vmul.f32 %v10115_v60, %v10107_v13 }
0x15b0   : > { %v4125_v1 = vpack.c.bf16 %v4121_v62, %v4121_v62 }
0x15db   : > { %v4110_v61 = vpop.xlane.xlu0 %4109 }
0x15dc   : > { %10116 = vrcp.f32 %v4110_v61 }
0x15df   : > { %v4271_v63 = vpop.permute.xlu0 %4270 }
0x15e0   : > { %v4276_v45 = vsel %vm1808_vm5, %v4271_v63, 0 }
0x15e1   : > { %9434 = vmatpush3.bf16.msra.mxu1 %v4276_v45 }
0x15e2   : > { %9445 = vmatprep.subr.bf16.mxu1 %v10301_v9 }
0x15e4   : > { %9436 = vmatmul.mubr.msk.bf16.vlgmr.msra.gmra.mrb[96].mxu1 %vm1561_vm4, %v4125_v1 }
0x15e5   : > { %9447 = vmatprep.mubr.msk.bf16.mxu1 %vm10302_vm1, %v10301_v9  ;;  %9446 = vmatpush3.bf16.msra.mxu1 %v4372_v57  ;;  %v9999_v57 = vld [vmem:[%s11811_s14 + $0x10] sm:$0xff]  }
0x15e6   : > { %v10117_v2 = vpop.eup %10116  ;;  %9457 = vmatprep.subr.bf16.mxu1 %v10301_v9 }
0x15e7   : > { %v4120_v51 = vmul.f32 %v10117_v2, %v10109_v43 }
0x15e9   : > { %v4124_v4 = vpack.c.bf16 %v4120_v51, %v4120_v51 }
0x15eb   : > { %9430 = vmatmul.mubr.msk.bf16.vlgmr.msra.gmra.mrb[88].mxu0 %vm1561_vm4, %v4124_v4 }
0x15ec   : > { %9441 = vmatprep.mubr.msk.bf16.mxu0 %vm10302_vm1, %v10301_v9  ;;  %9440 = vmatpush3.bf16.msra.mxu0 %v4326_v6 }
0x15ed   : > { %9451 = vmatprep.subr.bf16.mxu0 %v10301_v9 }
0x1610   : > { %v3540_v27 = vpop.xlane.xlu0 %3539 }
0x1611   : > { %v3541_v53 = vmul.f32 0.03125, %v3540_v27  ;;  %v10010_v27 = vld [vmem:[%s11815_s24 + $0x20] sm:$0xff]  }
0x1613   : > { %v11088_v62 = vsub.f32 %v11034_v46, %v3541_v53  ;;  %v10013_v53 = vld [vmem:[%s11815_s24 + $0x38] sm:$0xff]  }
0x1615   : > { %v3543_v2 = vmul.f32 %v11088_v62, %v11088_v62 }
0x1617   : > { %v3544_v51 = vsel %vm1243_vm0, %v3543_v2, 0.0 }
0x1675   : > { %v4168_v54 = vpop.f32.mrb[84].mxu0 }
0x1676   : > { %v4318_v41 = vpack.c.bf16 %v4168_v54, %v4168_v54  ;;  %v9419_v12 = vpop.f32.mrb[85].mxu0  ;;  %v10001_v54 = vld [vmem:[%s11811_s14 + $0x18] sm:$0xff]  }
0x1677   : > { %v4171_v15 = vpop.f32.mrb[86].mxu0 }
0x1678   : > { %v9420_v16 = vpop.f32.mrb[87].mxu0  ;;  %9442 = vmatmul.mubr.msk.bf16.vlgmr.msra.gmra.mrb[92].mxu0 %vm1561_vm4, %v4318_v41 }
0x1679   : > { %9452 = vmatpush3.bf16.msra.mxu0 %v4418_v14  ;;  %9453 = vmatprep.mubr.msk.bf16.mxu0 %vm10302_vm1, %v10301_v9 }
0x167a   : > { %9463 = vmatprep.subr.bf16.mxu0 %v10301_v9 }
0x167e   : > { %v4216_v18 = vpop.f32.mrb[92].mxu1 }
0x167f   : > { %v4319_v20 = vpack.c.bf16 %v4216_v18, %v4216_v18  ;;  %v9425_v21 = vpop.f32.mrb[93].mxu1 }
0x1680   : > { %v4219_v22 = vpop.f32.mrb[94].mxu1 }
0x1681   : > { %v9426_v23 = vpop.f32.mrb[95].mxu1  ;;  %9448 = vmatmul.mubr.msk.bf16.vlgmr.msra.gmra.mrb[100].mxu1 %vm1561_vm4, %v4319_v20 }
0x1682   : > { %9458 = vmatpush3.bf16.msra.mxu1 %v4464_v0  ;;  %9459 = vmatprep.mubr.msk.bf16.mxu1 %vm10302_vm1, %v10301_v9 }
0x1683   : > { %9471 = vmatprep.subr.bf16.mxu1 %v10301_v9 }
0x16b7   : > { %v4312_v24 = vpop.f32.mrb[96].mxu1 }
0x16b8   : > { %v4321_v26 = vpack.c.bf16 %v4312_v24, %v4312_v24  ;;  %v9437_v28 = vpop.f32.mrb[97].mxu1 }
0x16b9   : > { %v4315_v29 = vpop.f32.mrb[98].mxu1 }
0x16ba   : > { %v9438_v31 = vpop.f32.mrb[99].mxu1  ;;  %9460 = vmatmul.mubr.msk.bf16.vlgmr.msra.gmra.mrb[104].mxu1 %vm1561_vm4, %v4321_v26  ;;  %v8594_v29 = vld [vmem:[%s11812_s19] ss:$0 sm:$0xff] }
0x16bb   : > { %9475 = vmatprep.mubr.msk.bf16.mxu1 %vm10302_vm1, %v10301_v9  ;;  %9472 = vmatpush3.bf16.msra.mxu1 %v9999_v57 }
0x16bc   : > { %9473 = vmatprep.subr.bf16.mxu1 %v10301_v9 }
0x16be   : > { %v4264_v32 = vpop.f32.mrb[88].mxu0 }
0x16bf   : > { %v4320_v33 = vpack.c.bf16 %v4264_v32, %v4264_v32  ;;  %v9431_v34 = vpop.f32.mrb[89].mxu0  ;;  %9474 = vmatpush3.bf16.msra.mxu1 %v10001_v54 }
0x16c0   : > { %v4267_v35 = vpop.f32.mrb[90].mxu0  ;;  %9487 = vmatprep.subr.bf16.mxu1 %v10301_v9  ;;  %v8595_v34 = vld [vmem:[%s11813_s20] ss:$0 sm:$0xff] }
0x16c1   : > { %v9432_v13 = vpop.f32.mrb[91].mxu0  ;;  %9454 = vmatmul.mubr.msk.bf16.vlgmr.msra.gmra.mrb[96].mxu0 %vm1561_vm4, %v4320_v33 }
0x16c2   : > { %9467 = vmatprep.mubr.msk.bf16.mxu0 %vm10302_vm1, %v10301_v9  ;;  %9464 = vmatpush3.bf16.msra.mxu0 %v9998_v7 }
0x16c3   : > { %9465 = vmatprep.subr.bf16.mxu0 %v10301_v9 }
0x16c6   : > { %9466 = vmatpush3.bf16.msra.mxu0 %v10000_v10 }
0x16c7   : > { %9479 = vmatprep.subr.bf16.mxu0 %v10301_v9 }
0x174b   : > { %v4362_v37 = vpop.f32.mrb[92].mxu0 }
0x174c   : > { %v9443_v38 = vpop.f32.mrb[93].mxu0  ;;  %v4506_v40 = vsel %vm1243_vm0, %v4362_v37, 0.0  ;;  %v10002_v37 = vld [vmem:[%s11811_s14 + $0x20] sm:$0xff]  }
0x174d   : > { %v4365_v39 = vpop.f32.mrb[94].mxu0  ;;  %v10003_v38 = vld [vmem:[%s11811_s14 + $0x30] sm:$0xff]  }
0x174e   : > { %v9444_v42 = vpop.f32.mrb[95].mxu0 }
0x174f   : > { %v8561_v42 = vld [vmem:[%s11814_s21] ss:$0 sm:$0xff]  ;;  %s11817_s21 = sld [smem:[#allocation32_spill]] }
0x1754   : > { %v4408_v43 = vpop.f32.mrb[100].mxu1 }
0x1755   : > { %v4507_v30 = vsel %vm1243_vm0, %v4408_v43, 0.0  ;;  %v9449_v11 = vpop.f32.mrb[101].mxu1  ;;  %v10004_v43 = vld [vmem:[%s11811_s14 + $0x28] sm:$0xff]   ;;  %v8612_v7 = vld [vmem:[%s11817_s21] ss:$0 sm:$0xff] }
0x1756   : > { %v4508_v19 = vadd.f32 %v4507_v30, %v4506_v40  ;;  %v4411_v36 = vpop.f32.mrb[102].mxu1  ;;  %v10005_v40 = vld [vmem:[%s11811_s14 + $0x38] sm:$0xff]   ;;  %v3554_v11 = vmul.f32 %v8561_v42, %v11088_v62  ;;  %v8613_v57 = vld [vmem:[%s11817_s21 + $0x1] ss:$0 sm:$0xff] }
0x1757   : > { %v9450_v47 = vpop.f32.mrb[103].mxu1  ;;  %v10007_v36 = vld [vmem:[%s11815_s24 + $0x10] sm:$0xff]  }
0x178d   : > { %v4500_v48 = vpop.f32.mrb[104].mxu1 }
0x178e   : > { %v9461_v49 = vpop.f32.mrb[105].mxu1  ;;  %v4511_v58 = vsel %vm1243_vm0, %v4500_v48, 0.0  ;;  %v8562_v48 = vld [vmem:[%s11816_s4] ss:$0 sm:$0xff]  ;;  %s11818_s4 = sld [smem:[#allocation30_spill]] }
0x178f   : > { %v4503_v25 = vpop.f32.mrb[106].mxu1  ;;  %v10008_v49 = vld [vmem:[%s11815_s24 + $0x8] sm:$0xff]  }
0x1790   : > { %v9462_v44 = vpop.f32.mrb[107].mxu1  ;;  %v10009_v25 = vld [vmem:[%s11815_s24 + $0x18] sm:$0xff]  }
0x1794   : > { %v4454_v3 = vpop.f32.mrb[96].mxu0  ;;  %v8596_v10 = vld [vmem:[%s11818_s4] ss:$0 sm:$0xff]  ;;  %v8597_v54 = vld [vmem:[%s11818_s4 + $0x1] ss:$0 sm:$0xff] }
0x1795   : > { %v4509_v50 = vsel %vm1243_vm0, %v4454_v3, 0.0  ;;  %v9455_v52 = vpop.f32.mrb[97].mxu0  ;;  %v10011_v3 = vld [vmem:[%s11815_s24 + $0x30] sm:$0xff]  }
0x1796   : > { %v4510_v55 = vadd.f32 %v4509_v50, %v4508_v19  ;;  %v4457_v56 = vpop.f32.mrb[98].mxu0  ;;  %v10006_v19 = vld [vmem:[%s11815_s24] sm:$0xff]   ;;  %v10012_v52 = vld [vmem:[%s11815_s24 + $0x28] sm:$0xff]  }
0x1797   : > { %v9456_v60 = vpop.f32.mrb[99].mxu0 }
0x1798   : > { %v4512_v61 = vadd.f32 %v4511_v58, %v4510_v55 }
0x179a   : > { %v4519_v63 = vadd.f32 %v8593_v59, %v4512_v61 }
0x179c   : > { %v11091_v45 = vadd.f32 %v4519_v63, %v10914_v8 }
0x179e   : > { %v4523_v1 = vsel %vm1243_vm0, %v11091_v45, 0.0 }
0x179f   : > { %4524 = vadd.xlane.f32.xlu1 %v4523_v1 }
0x17a3   : > { %3545 = vadd.xlane.f32.xlu1 %v3544_v51 }
0x182c   : > { %v4525_v4 = vpop.xlane.xlu1 %4524 }
0x182d   : > { %v4526_v5 = vmul.f32 0.03125, %v4525_v4 }
0x182f   : > { %v4527_v46 = vsub.f32 %v11091_v45, %v4526_v5 }
0x1830   : > { %v3546_v41 = vpop.xlane.xlu1 %3545 }
0x1831   : > { %v4528_v6 = vmul.f32 %v4527_v46, %v4527_v46  ;;  %v3547_v12 = vmul.f32 0.032258064, %v3546_v41  ;;  %v4539_v32 = vmul.f32 %v8594_v29, %v4527_v46 }
0x1833   : > { %v4529_v8 = vsel %vm1243_vm0, %v4528_v6, 0.0  ;;  %10118 = vrsqrt.f32 %v3547_v12  ;;  %vm3557_vm3 = vcmp.eq.f32.partialorder %v3547_v12, inf  ;;  %v3560_v26 = vand.u32 2147483648, %v3547_v12 }
0x1834   : > { %4530 = vadd.xlane.f32.xlu0 %v4529_v8  ;;  %vm3559_vm6 = vcmp.eq.f32.partialorder %v3547_v12, 0.0 }
0x183d   : > { %v10119_v16 = vpop.eup %10118 }
0x183e   : > { %v3556_v21 = vmul.f32 %v10119_v16, %v3547_v12 }
0x1840   : > { %v3558_v24 = vsel %vm3557_vm3, %v3547_v12, %v3556_v21 }
0x1841   : > { %v3561_v28 = vsel %vm3559_vm6, %v3560_v26, %v3558_v24 }
0x1842   : > { %v3562_v31 = vadd.f32 1e-06, %v3561_v28 }
0x18c1   : > { %v4531_v14 = vpop.xlane.xlu0 %4530 }
0x18c2   : > { %v4532_v15 = vmul.f32 0.032258064, %v4531_v14 }
0x18c4   : > { %10120 = vrsqrt.f32 %v4532_v15  ;;  %vm4542_vm15 = vcmp.eq.f32.partialorder %v4532_v15, inf  ;;  %v4545_v20 = vand.u32 2147483648, %v4532_v15  ;;  %vm4544_vm2 = vcmp.eq.f32.partialorder %v4532_v15, 0.0 }
0x18ce   : > { %v10121_v17 = vpop.eup %10120 }
0x18cf   : > { %v4541_v18 = vmul.f32 %v10121_v17, %v4532_v15 }
0x18d1   : > { %v4543_v0 = vsel %vm4542_vm15, %v4532_v15, %v4541_v18 }
0x18d2   : > { %v4546_v22 = vsel %vm4544_vm2, %v4545_v20, %v4543_v0 }
0x18d3   : > { %v4547_v23 = vadd.f32 1e-06, %v4546_v22 }
0x18d5   : > { %10122 = vrcp.f32 %v4547_v23 }
0x18d6   : > { %10124 = vrcp.f32 %v3562_v31  ;;  %v8614_v31 = vld [vmem:[%s11817_s21 + $0x2] ss:$0 sm:$0xff] }
0x18df   : > { %v10123_v33 = vpop.eup %10122 }
0x18e0   : > { %v4549_v35 = vmul.f32 %v10123_v33, %v4539_v32  ;;  %v10125_v30 = vpop.eup %10124 }
0x18e1   : > { %v3564_v47 = vmul.f32 %v10125_v30, %v3554_v11 }
0x18e2   : > { %v4556_v13 = vadd.f32 %v8595_v34, %v4549_v35  ;;  %v8615_v34 = vld [vmem:[%s11817_s21 + $0x3] ss:$0 sm:$0xff]  ;;  %v8598_v35 = vld [vmem:[%s11818_s4 + $0x2] ss:$0 sm:$0xff] }
0x18e3   : > { %v3571_v44 = vadd.f32 %v8562_v48, %v3564_v47 }
0x18e4   : > { %v4577_v39 = vpack.c.bf16 %v4556_v13, %v4556_v13  ;;  %v8599_v13 = vld [vmem:[%s11818_s4 + $0x3] ss:$0 sm:$0xff] }
0x18e5   : > { %v11141_v50 = vpack.c.bf16 %v3571_v44, %v3571_v44 }
0x18e6   : > { %9468 = vmatmul.mubr.msk.bf16.vlgmr.msra.gmra.mrb[100].mxu0 %vm1243_vm0, %v4577_v39  ;;  %9476 = vmatmul.mubr.msk.bf16.vlgmr.msra.gmra.mrb[108].mxu1 %vm1243_vm0, %v4577_v39 }
0x18e7   : > { %9480 = vmatpush3.bf16.msra.mxu0 %v10002_v37  ;;  %9488 = vmatpush3.bf16.msra.mxu1 %v10003_v38 }
0x18e8   : > { %9481 = vmatprep.subr.bf16.mxu0 %v10301_v9  ;;  %9489 = vmatprep.subr.bf16.mxu1 %v10301_v9 }
0x18e9   : > { %9483 = vmatprep.mubr.msk.bf16.mxu0 %vm10302_vm1, %v10301_v9  ;;  %9491 = vmatprep.mubr.msk.bf16.mxu1 %vm10302_vm1, %v10301_v9 }
0x18eb   : > { %9482 = vmatpush3.bf16.msra.mxu0 %v10004_v43  ;;  %9490 = vmatpush3.bf16.msra.mxu1 %v10005_v40 }
0x18ec   : > { %9495 = vmatprep.subr.bf16.mxu0 %v10301_v9  ;;  %9503 = vmatprep.subr.bf16.mxu1 %v10301_v9 }
0x18ee   : > { %9484 = vmatmul.mubr.msk.bf16.vlgmr.msra.gmra.mrb[104].mxu0 %vm1243_vm0, %v4577_v39  ;;  %9492 = vmatmul.mubr.msk.bf16.vlgmr.msra.gmra.mrb[112].mxu1 %vm1243_vm0, %v4577_v39 }
0x18ef   : > { %9496 = vmatpush3.bf16.msra.mxu0 %v10006_v19  ;;  %9504 = vmatpush3.bf16.msra.mxu1 %v10007_v36 }
0x18f0   : > { %9497 = vmatprep.subr.bf16.mxu0 %v10301_v9  ;;  %9505 = vmatprep.subr.bf16.mxu1 %v10301_v9 }
0x18f1   : > { %9499 = vmatprep.mubr.msk.bf16.mxu0 %vm10302_vm1, %v10301_v9  ;;  %9507 = vmatprep.mubr.msk.bf16.mxu1 %vm10302_vm1, %v10301_v9 }
0x18f3   : > { %9498 = vmatpush3.bf16.msra.mxu0 %v10008_v49  ;;  %9506 = vmatpush3.bf16.msra.mxu1 %v10009_v25 }
0x18f4   : > { %9511 = vmatprep.subr.bf16.mxu0 %v10301_v9  ;;  %9519 = vmatprep.subr.bf16.mxu1 %v10301_v9 }
0x18f6   : > { %9500 = vmatmul.mubr.msk.bf16.vlgmr.msra.gmra.mrb[108].mxu0 %vm1243_vm0, %v11141_v50  ;;  %9508 = vmatmul.mubr.msk.bf16.vlgmr.msra.gmra.mrb[116].mxu1 %vm1243_vm0, %v11141_v50 }
0x18f7   : > { %9512 = vmatpush3.bf16.msra.mxu0 %v10010_v27  ;;  %9520 = vmatpush3.bf16.msra.mxu1 %v10011_v3 }
0x18f8   : > { %9513 = vmatprep.subr.bf16.mxu0 %v10301_v9  ;;  %9521 = vmatprep.subr.bf16.mxu1 %v10301_v9 }
0x18f9   : > { %9515 = vmatprep.mubr.msk.bf16.mxu0 %vm10302_vm1, %v10301_v9  ;;  %9523 = vmatprep.mubr.msk.bf16.mxu1 %vm10302_vm1, %v10301_v9 }
0x18fb   : > { %9514 = vmatpush3.bf16.msra.mxu0 %v10012_v52  ;;  %9522 = vmatpush3.bf16.msra.mxu1 %v10013_v53 }
0x18fc   : > { %9527 = vmatprep.subr.bf16.mxu0 %v10301_v9  ;;  %9533 = vmatprep.subr.bf16.mxu1 %v10301_v9 }
0x18fe   : > { %9516 = vmatmul.mubr.msk.bf16.vlgmr.msra.gmra.mrb[112].mxu0 %vm1243_vm0, %v11141_v50  ;;  %9524 = vmatmul.mubr.msk.bf16.vlgmr.msra.gmra.mrb[120].mxu1 %vm1243_vm0, %v11141_v50 }
0x18ff   : > { %9529 = vmatprep.mubr.msk.bf16.mxu0 %vm10302_vm1, %v10301_v9  ;;  %9535 = vmatprep.mubr.msk.bf16.mxu1 %vm10302_vm1, %v10301_v9 }
0x19b9   : > { %v4651_v55 = vpop.f32.mrb[100].mxu0  ;;  %v4703_v56 = vpop.f32.mrb[108].mxu1 }
0x19ba   : > { %v9469_v58 = vpop.f32.mrb[101].mxu0  ;;  %v9477_v59 = vpop.f32.mrb[109].mxu1  ;;  %v4652_v18 = vadd.f32 %v8596_v10, %v4651_v55  ;;  %v4704_v20 = vadd.f32 %v8597_v54, %v4703_v56 }
0x19bb   : > { %v4654_v60 = vpop.f32.mrb[102].mxu0  ;;  %v4706_v61 = vpop.f32.mrb[110].mxu1 }
0x19bc   : > { %v9470_v62 = vpop.f32.mrb[103].mxu0  ;;  %v9478_v63 = vpop.f32.mrb[111].mxu1  ;;  %v5074_v32 = vmul.f32 0.35355338, %v4652_v18  ;;  %v5075_v33 = vmul.f32 0.35355338, %v4704_v20 }
0x19bd   : > { %v10194_v61 = vld [vmem:[%s10656_s15] ss:$0 sm:$0xff] }
0x19be   : > { %v5078_v30 = vpack.c.bf16 %v5074_v32, %v5074_v32  ;;  %v5079_v11 = vpack.c.bf16 %v5075_v33, %v5075_v33 }
0x19c1   : > { %v4755_v1 = vpop.f32.mrb[104].mxu0  ;;  %v4807_v2 = vpop.f32.mrb[112].mxu1 }
0x19c2   : > { %v9485_v51 = vpop.f32.mrb[105].mxu0  ;;  %v9493_v4 = vpop.f32.mrb[113].mxu1  ;;  %v4756_v47 = vadd.f32 %v8598_v35, %v4755_v1  ;;  %v4808_v48 = vadd.f32 %v8599_v13, %v4807_v2 }
0x19c3   : > { %v4758_v5 = vpop.f32.mrb[106].mxu0  ;;  %v4810_v46 = vpop.f32.mrb[114].mxu1 }
0x19c4   : > { %v9486_v6 = vpop.f32.mrb[107].mxu0  ;;  %v9494_v8 = vpop.f32.mrb[115].mxu1  ;;  %v5076_v53 = vmul.f32 0.35355338, %v4756_v47  ;;  %v5077_v55 = vmul.f32 0.35355338, %v4808_v48 }
0x19c6   : > { %v5080_v56 = vpack.c.bf16 %v5076_v53, %v5076_v53  ;;  %v5081_v58 = vpack.c.bf16 %v5077_v55, %v5077_v55 }
0x19c9   : > { %v4907_v41 = vpop.f32.mrb[108].mxu0  ;;  %v4959_v12 = vpop.f32.mrb[116].mxu1 }
0x19ca   : > { %v4908_v14 = vadd.f32 %v8612_v7, %v4907_v41  ;;  %v4960_v15 = vadd.f32 %v8613_v57, %v4959_v12  ;;  %v9501_v16 = vpop.f32.mrb[109].mxu0  ;;  %v9509_v17 = vpop.f32.mrb[117].mxu1 }
0x19cb   : > { %v4910_v21 = vpop.f32.mrb[110].mxu0  ;;  %v4962_v0 = vpop.f32.mrb[118].mxu1 }
0x19cc   : > { %v11171_v22 = vpack.c.bf16 %v4908_v14, %v4908_v14  ;;  %v11173_v23 = vpack.c.bf16 %v4960_v15, %v4960_v15  ;;  %v9502_v24 = vpop.f32.mrb[111].mxu0  ;;  %v9510_v26 = vpop.f32.mrb[119].mxu1 }
0x19ce   : > { %v5090_v28 = vsel %vm1561_vm4, %v11171_v22, 0  ;;  %v5136_v29 = vsel %vm1561_vm4, %v11173_v23, 0 }
0x19cf   : > { %9528 = vmatpush3.bf16.xpose.msra.mxu0 %v5090_v28  ;;  %9534 = vmatpush3.bf16.xpose.msra.mxu1 %v5136_v29 }
0x19d0   : > { %9539 = vmatprep.subr.bf16.mxu0 %v10301_v9  ;;  %9545 = vmatprep.subr.bf16.mxu1 %v10301_v9 }
0x19d1   : > { %v5011_v37 = vpop.f32.mrb[112].mxu0  ;;  %v5063_v38 = vpop.f32.mrb[120].mxu1 }
0x19d2   : > { %v5012_v39 = vadd.f32 %v8614_v31, %v5011_v37  ;;  %v5064_v42 = vadd.f32 %v8615_v34, %v5063_v38  ;;  %v9517_v43 = vpop.f32.mrb[113].mxu0  ;;  %v9525_v40 = vpop.f32.mrb[121].mxu1 }
0x19d3   : > { %v5014_v19 = vpop.f32.mrb[114].mxu0  ;;  %v5066_v36 = vpop.f32.mrb[122].mxu1 }
0x19d4   : > { %v11185_v49 = vpack.c.bf16 %v5012_v39, %v5012_v39  ;;  %v11187_v25 = vpack.c.bf16 %v5064_v42, %v5064_v42  ;;  %v9518_v44 = vpop.f32.mrb[115].mxu0  ;;  %v9526_v27 = vpop.f32.mrb[123].mxu1 }
0x19d6   : > { %v5182_v3 = vsel %vm1561_vm4, %v11185_v49, 0  ;;  %v5228_v52 = vsel %vm1561_vm4, %v11187_v25, 0  ;;  %9530 = vmatmul.mubr.msk.bf16.vlgmr.msra.gmra.mrb[116].mxu0 %vm1561_vm4, %v5078_v30  ;;  %9536 = vmatmul.mubr.msk.bf16.vlgmr.msra.gmra.mrb[124].mxu1 %vm1561_vm4, %v5079_v11 }
0x19d7   : > { %9540 = vmatpush3.bf16.xpose.msra.mxu0 %v5182_v3  ;;  %9546 = vmatpush3.bf16.xpose.msra.mxu1 %v5228_v52 }
0x19d8   : > { %9541 = vmatprep.mubr.msk.bf16.mxu0 %vm10302_vm1, %v10301_v9  ;;  %9547 = vmatprep.mubr.msk.bf16.mxu1 %vm10302_vm1, %v10301_v9 }
0x19d9   : > { %9551 = vmatprep.subr.bf16.mxu0 %v10301_v9  ;;  %9557 = vmatprep.subr.bf16.mxu1 %v10301_v9 }
0x19de   : > { %9542 = vmatmul.mubr.msk.bf16.vlgmr.msra.gmra.mrb[120].mxu0 %vm1561_vm4, %v5080_v56  ;;  %9548 = vmatmul.mubr.msk.bf16.vlgmr.msra.gmra.mrb[128].mxu1 %vm1561_vm4, %v5081_v58 }
0x19df   : > { %9553 = vmatprep.mubr.msk.bf16.mxu0 %vm10302_vm1, %v10301_v9  ;;  %9559 = vmatprep.mubr.msk.bf16.mxu1 %vm10302_vm1, %v10301_v9 }
0x1aa9   : > { %v5126_v59 = vpop.f32.mrb[116].mxu0  ;;  %v5172_v60 = vpop.f32.mrb[124].mxu1 }
0x1aaa   : > { %v5127_v62 = vadd.f32 %v10194_v61, %v5126_v59  ;;  %v5173_v63 = vadd.f32 %v10194_v61, %v5172_v60  ;;  %v9531_v1 = vpop.f32.mrb[117].mxu0  ;;  %v9537_v2 = vpop.f32.mrb[125].mxu1 }
0x1aab   : > { %v5129_v51 = vpop.f32.mrb[118].mxu0  ;;  %v5175_v4 = vpop.f32.mrb[126].mxu1  ;;  %v5070_v2 = vld [vmem:[%s11819_s25 + $0x4] sm:$0xf] }
0x1aac   : > { %v9532_v5 = vpop.f32.mrb[119].mxu0  ;;  %v9538_v46 = vpop.f32.mrb[127].mxu1  ;;  %v5270_v6 = vsel %vm1561_vm4, %v5127_v62, -inf  ;;  %v5273_v8 = vsel %vm1561_vm4, %v5173_v63, -inf }
0x1aad   : > { %5271 = vmax.xlane.f32.xlu0 %v5270_v6  ;;  %5274 = vmax.xlane.f32.xlu1 %v5273_v8  ;;  %v5568_v6 = vsel %vm1808_vm5, %v5070_v2, 0  ;;  %v5071_v8 = vld [vmem:[%s11819_s25 + $0x8] sm:$0xf] }
0x1ab1   : > { %v5218_v7 = vpop.f32.mrb[120].mxu0  ;;  %v5264_v57 = vpop.f32.mrb[128].mxu1 }
0x1ab2   : > { %v5219_v10 = vadd.f32 %v10194_v61, %v5218_v7  ;;  %v5265_v54 = vadd.f32 %v10194_v61, %v5264_v57  ;;  %v9543_v41 = vpop.f32.mrb[121].mxu0  ;;  %v9549_v12 = vpop.f32.mrb[129].mxu1  ;;  %v5072_v7 = vld [vmem:[%s11819_s25 + $0xc] sm:$0xf] }
0x1ab3   : > { %v5221_v14 = vpop.f32.mrb[122].mxu0  ;;  %v5267_v15 = vpop.f32.mrb[130].mxu1  ;;  %v5614_v12 = vsel %vm1808_vm5, %v5071_v8, 0 }
0x1ab4   : > { %v9544_v16 = vpop.f32.mrb[123].mxu0  ;;  %v9550_v17 = vpop.f32.mrb[131].mxu1  ;;  %v5276_v18 = vsel %vm1561_vm4, %v5219_v10, -inf  ;;  %v5279_v20 = vsel %vm1561_vm4, %v5265_v54, -inf }
0x1ab5   : > { %5277 = vmax.xlane.f32.xlu0 %v5276_v18  ;;  %5280 = vmax.xlane.f32.xlu1 %v5279_v20  ;;  %v5660_v17 = vsel %vm1808_vm5, %v5072_v7, 0 }
0x1ac6   : > { %5368 = vrot.lane.b32.xlu1 %v11173_v23, %s11806_s5 }
0x1acb   : > { %5319 = vrot.lane.b32.xlu0 %v11171_v22, %s11806_s5 }
0x1b3a   : > { %v5272_v21 = vpop.xlane.xlu0 %5271  ;;  %v5275_v0 = vpop.xlane.xlu1 %5274 }
0x1b3b   : > { %v5282_v24 = vsub.f32 %v5127_v62, %v5272_v21  ;;  %v5283_v26 = vsub.f32 %v5173_v63, %v5275_v0  ;;  %v5069_v62 = vld [vmem:[%s11819_s25] sm:$0xf] }
0x1b3c   : > { %v5522_v5 = vsel %vm1808_vm5, %v5069_v62, 0 }
0x1b3d   : > { %v5286_v28 = vmul.f32 1.442695, %v5282_v24  ;;  %v5288_v29 = vmul.f32 1.442695, %v5283_v26 }
0x1b3f   : > { %10126 = vpow2.f32 %v5286_v28 }
0x1b40   : > { %10128 = vpow2.f32 %v5288_v29 }
0x1b42   : > { %v5278_v31 = vpop.xlane.xlu0 %5277  ;;  %v5281_v32 = vpop.xlane.xlu1 %5280 }
0x1b43   : > { %v5284_v33 = vsub.f32 %v5219_v10, %v5278_v31  ;;  %v5285_v34 = vsub.f32 %v5265_v54, %v5281_v32 }
0x1b45   : > { %v5290_v35 = vmul.f32 1.442695, %v5284_v33  ;;  %v5292_v13 = vmul.f32 1.442695, %v5285_v34 }
0x1b46   : > { %v5320_v37 = vpop.permute.xlu0 %5319  ;;  %v5369_v38 = vpop.permute.xlu1 %5368 }
0x1b47   : > { %10130 = vpow2.f32 %v5290_v35  ;;  %v5325_v23 = vsel %vm1808_vm5, %v5320_v37, 0  ;;  %v5374_v22 = vsel %vm1808_vm5, %v5369_v38, 0 }
0x1b48   : > { %10132 = vpow2.f32 %v5292_v13  ;;  %9552 = vmatpush3.bf16.msra.mxu0 %v5325_v23  ;;  %9558 = vmatpush3.bf16.msra.mxu1 %v5374_v22 }
0x1b49   : > { %v10127_v39 = vpop.eup %10126  ;;  %9563 = vmatprep.subr.bf16.mxu0 %v10301_v9  ;;  %9569 = vmatprep.subr.bf16.mxu1 %v10301_v9 }
0x1b4a   : > { %v10129_v42 = vpop.eup %10128  ;;  %v5294_v43 = vsel %vm1561_vm4, %v10127_v39, 0.0 }
0x1b4b   : > { %5295 = vadd.xlane.f32.xlu0 %v5294_v43  ;;  %v5297_v40 = vsel %vm1561_vm4, %v10129_v42, 0.0 }
0x1b4c   : > { %5298 = vadd.xlane.f32.xlu1 %v5297_v40 }
0x1b51   : > { %v10131_v30 = vpop.eup %10130 }
0x1b52   : > { %v10133_v11 = vpop.eup %10132  ;;  %v5300_v19 = vsel %vm1561_vm4, %v10131_v30, 0.0 }
0x1b53   : > { %5301 = vadd.xlane.f32.xlu0 %v5300_v19  ;;  %v5303_v36 = vsel %vm1561_vm4, %v10133_v11, 0.0 }
0x1b54   : > { %5304 = vadd.xlane.f32.xlu1 %v5303_v36 }
0x1b65   : > { %5417 = vrot.lane.b32.xlu1 %v11185_v49, %s11806_s5 }
0x1b69   : > { %5466 = vrot.lane.b32.xlu0 %v11187_v25, %s11806_s5 }
0x1bd8   : > { %v5296_v47 = vpop.xlane.xlu0 %5295 }
0x1bd9   : > { %10134 = vrcp.f32 %v5296_v47  ;;  %v5299_v48 = vpop.xlane.xlu1 %5298 }
0x1bda   : > { %10136 = vrcp.f32 %v5299_v48 }
0x1be0   : > { %v5302_v44 = vpop.xlane.xlu0 %5301 }
0x1be1   : > { %10138 = vrcp.f32 %v5302_v44  ;;  %v5305_v27 = vpop.xlane.xlu1 %5304 }
0x1be2   : > { %10140 = vrcp.f32 %v5305_v27 }
0x1be3   : > { %v10135_v3 = vpop.eup %10134 }
0x1be4   : > { %v10137_v52 = vpop.eup %10136  ;;  %v5310_v53 = vmul.f32 %v10135_v3, %v10127_v39  ;;  %v5467_v58 = vpop.permute.xlu0 %5466 }
0x1be5   : > { %v5311_v55 = vmul.f32 %v10137_v52, %v10129_v42  ;;  %v5418_v56 = vpop.permute.xlu1 %5417  ;;  %v5472_v60 = vsel %vm1808_vm5, %v5467_v58, 0  ;;  %v8640_v52 = vld [vmem:[%s11820_s29] ss:$0 sm:$0xff] }
0x1be6   : > { %v5314_v59 = vpack.c.bf16 %v5310_v53, %v5310_v53  ;;  %v5423_v25 = vsel %vm1808_vm5, %v5418_v56, 0 }
0x1be7   : > { %v5315_v49 = vpack.c.bf16 %v5311_v55, %v5311_v55 }
0x1be8   : > { %9554 = vmatmul.mubr.msk.bf16.vlgmr.msra.gmra.mrb[124].mxu0 %vm1561_vm4, %v5314_v59 }
0x1be9   : > { %9560 = vmatmul.mubr.msk.bf16.vlgmr.msra.gmra.mrb[132].mxu1 %vm1561_vm4, %v5315_v49  ;;  %9564 = vmatpush3.bf16.msra.mxu0 %v5423_v25 }
0x1bea   : > { %9570 = vmatpush3.bf16.msra.mxu1 %v5472_v60  ;;  %9565 = vmatprep.mubr.msk.bf16.mxu0 %vm10302_vm1, %v10301_v9 }
0x1beb   : > { %v10139_v61 = vpop.eup %10138  ;;  %9571 = vmatprep.mubr.msk.bf16.mxu1 %vm10302_vm1, %v10301_v9  ;;  %9575 = vmatprep.subr.bf16.mxu0 %v10301_v9 }
0x1bec   : > { %v10141_v63 = vpop.eup %10140  ;;  %v5312_v1 = vmul.f32 %v10139_v61, %v10131_v30  ;;  %9581 = vmatprep.subr.bf16.mxu1 %v10301_v9 }
0x1bed   : > { %v5313_v51 = vmul.f32 %v10141_v63, %v10133_v11 }
0x1bee   : > { %v5316_v4 = vpack.c.bf16 %v5312_v1, %v5312_v1 }
0x1bef   : > { %v5317_v46 = vpack.c.bf16 %v5313_v51, %v5313_v51  ;;  %v10014_v51 = vld [vmem:[%s11821_s30] sm:$0xff]  }
0x1bf0   : > { %9566 = vmatmul.mubr.msk.bf16.vlgmr.msra.gmra.mrb[128].mxu0 %vm1561_vm4, %v5316_v4  ;;  %v10015_v4 = vld [vmem:[%s11821_s30 + $0x8] sm:$0xff]  }
0x1bf1   : > { %9572 = vmatmul.mubr.msk.bf16.vlgmr.msra.gmra.mrb[136].mxu1 %vm1561_vm4, %v5317_v46  ;;  %9576 = vmatpush3.bf16.msra.mxu0 %v5522_v5  ;;  %v10017_v5 = vld [vmem:[%s11822_s18 + $0x8] sm:$0xff]  }
0x1bf2   : > { %9582 = vmatpush3.bf16.msra.mxu1 %v5568_v6  ;;  %9577 = vmatprep.mubr.msk.bf16.mxu0 %vm10302_vm1, %v10301_v9 }
0x1bf3   : > { %9583 = vmatprep.mubr.msk.bf16.mxu1 %vm10302_vm1, %v10301_v9  ;;  %9587 = vmatprep.subr.bf16.mxu0 %v10301_v9 }
0x1bf4   : > { %9593 = vmatprep.subr.bf16.mxu1 %v10301_v9 }
0x1cbb   : > { %v5361_v57 = vpop.f32.mrb[124].mxu0 }
0x1cbc   : > { %v5514_v10 = vpack.c.bf16 %v5361_v57, %v5361_v57  ;;  %v5410_v54 = vpop.f32.mrb[132].mxu1  ;;  %v9555_v41 = vpop.f32.mrb[125].mxu0 }
0x1cbd   : > { %v5515_v14 = vpack.c.bf16 %v5410_v54, %v5410_v54  ;;  %v9561_v15 = vpop.f32.mrb[133].mxu1  ;;  %v5364_v16 = vpop.f32.mrb[126].mxu0 }
0x1cbe   : > { %v5413_v18 = vpop.f32.mrb[134].mxu1  ;;  %v9556_v20 = vpop.f32.mrb[127].mxu0  ;;  %9578 = vmatmul.mubr.msk.bf16.vlgmr.msra.gmra.mrb[132].mxu0 %vm1561_vm4, %v5514_v10  ;;  %v8642_v16 = vld [vmem:[%s11825_s23] ss:$0 sm:$0xff] }
0x1cbf   : > { %v9562_v21 = vpop.f32.mrb[135].mxu1  ;;  %9584 = vmatmul.mubr.msk.bf16.vlgmr.msra.gmra.mrb[140].mxu1 %vm1561_vm4, %v5515_v14  ;;  %9588 = vmatpush3.bf16.msra.mxu0 %v5614_v12  ;;  %v8641_v12 = vld [vmem:[%s11823_s2] ss:$0 sm:$0xff] }
0x1cc0   : > { %9594 = vmatpush3.bf16.msra.mxu1 %v5660_v17  ;;  %9589 = vmatprep.mubr.msk.bf16.mxu0 %vm10302_vm1, %v10301_v9  ;;  %v10018_v21 = vld [vmem:[%s11822_s18 + $0x10] sm:$0xff]  }
0x1cc1   : > { %9595 = vmatprep.mubr.msk.bf16.mxu1 %vm10302_vm1, %v10301_v9  ;;  %9599 = vmatprep.subr.bf16.mxu0 %v10301_v9 }
0x1cc2   : > { %9607 = vmatprep.subr.bf16.mxu1 %v10301_v9 }
0x1cc3   : > { %v5459_v0 = vpop.f32.mrb[128].mxu0 }
0x1cc4   : > { %v5516_v24 = vpack.c.bf16 %v5459_v0, %v5459_v0  ;;  %v5508_v26 = vpop.f32.mrb[136].mxu1  ;;  %v9567_v28 = vpop.f32.mrb[129].mxu0  ;;  %v10019_v0 = vld [vmem:[%s11822_s18 + $0x18] sm:$0xff]  }
0x1cc5   : > { %v5517_v29 = vpack.c.bf16 %v5508_v26, %v5508_v26  ;;  %v9573_v31 = vpop.f32.mrb[137].mxu1  ;;  %v5462_v32 = vpop.f32.mrb[130].mxu0 }
0x1cc6   : > { %v5511_v33 = vpop.f32.mrb[138].mxu1  ;;  %v9568_v34 = vpop.f32.mrb[131].mxu0  ;;  %9590 = vmatmul.mubr.msk.bf16.vlgmr.msra.gmra.mrb[136].mxu0 %vm1561_vm4, %v5516_v24  ;;  %v8643_v24 = vld [vmem:[%s11826_s28] ss:$0 sm:$0xff] }
0x1cc7   : > { %v9574_v35 = vpop.f32.mrb[139].mxu1  ;;  %9596 = vmatmul.mubr.msk.bf16.vlgmr.msra.gmra.mrb[144].mxu1 %vm1561_vm4, %v5517_v29  ;;  %9603 = vmatprep.mubr.msk.bf16.mxu0 %vm10302_vm1, %v10301_v9 }
0x1cc8   : > { %9615 = vmatprep.mubr.msk.bf16.mxu1 %vm10302_vm1, %v10301_v9  ;;  %9600 = vmatpush3.bf16.msra.mxu0 %v10014_v51  ;;  %v8647_v35 = vld [vmem:[%s11828_s7] ss:$0 sm:$0xff]  ;;  %v10025_v51 = vld [vmem:[%s11802_s3 + $0x58] sm:$0xff]   ;;  %s8836_s7 = sshll.u32 %s10537_s0, 7  ;;  %s10305_s0 = smov [#allocation2]  }
0x1cc9   : > { %9601 = vmatprep.subr.bf16.mxu0 %v10301_v9 }
0x1ccc   : > { %9602 = vmatpush3.bf16.msra.mxu0 %v10015_v4  ;;  %v10026_v4 = vld [vmem:[%s11802_s3 + $0x70] sm:$0xff]  }
0x1ccd   : > { %9619 = vmatprep.subr.bf16.mxu0 %v10301_v9 }
0x1d91   : > { %v5558_v13 = vpop.f32.mrb[132].mxu0 }
0x1d92   : > { %v5702_v37 = vsel %vm1243_vm0, %v5558_v13, 0.0  ;;  %v5604_v38 = vpop.f32.mrb[140].mxu1  ;;  %v9579_v23 = vpop.f32.mrb[133].mxu0 }
0x1d93   : > { %v5703_v22 = vsel %vm1243_vm0, %v5604_v38, 0.0  ;;  %v9585_v39 = vpop.f32.mrb[141].mxu1  ;;  %v5561_v42 = vpop.f32.mrb[134].mxu0 }
0x1d94   : > { %v5704_v43 = vadd.f32 %v5703_v22, %v5702_v37  ;;  %v5607_v40 = vpop.f32.mrb[142].mxu1  ;;  %v9580_v30 = vpop.f32.mrb[135].mxu0 }
0x1d95   : > { %v9586_v11 = vpop.f32.mrb[143].mxu1 }
0x1d99   : > { %v5650_v19 = vpop.f32.mrb[136].mxu0 }
0x1d9a   : > { %v5705_v36 = vsel %vm1243_vm0, %v5650_v19, 0.0  ;;  %v5696_v47 = vpop.f32.mrb[144].mxu1  ;;  %v9591_v48 = vpop.f32.mrb[137].mxu0 }
0x1d9b   : > { %v5706_v44 = vadd.f32 %v5705_v36, %v5704_v43  ;;  %v9597_v27 = vpop.f32.mrb[145].mxu1  ;;  %v5653_v3 = vpop.f32.mrb[138].mxu0  ;;  %v5707_v53 = vsel %vm1243_vm0, %v5696_v47, 0.0  ;;  %v10020_v36 = vld [vmem:[%s11802_s3 + $0x40] sm:$0xff]   ;;  %v10022_v48 = vld [vmem:[%s11802_s3 + $0x48] sm:$0xff]  }
0x1d9c   : > { %v5699_v55 = vpop.f32.mrb[146].mxu1  ;;  %v9592_v56 = vpop.f32.mrb[139].mxu0  ;;  %v10021_v47 = vld [vmem:[%s11802_s3 + $0x60] sm:$0xff]  }
0x1d9d   : > { %v5708_v58 = vadd.f32 %v5707_v53, %v5706_v44  ;;  %v9598_v59 = vpop.f32.mrb[147].mxu1  ;;  %v10023_v44 = vld [vmem:[%s11802_s3 + $0x68] sm:$0xff]  }
0x1d9f   : > { %v5715_v49 = vadd.f32 %v8640_v52, %v5708_v58 }
0x1da1   : > { %v11274_v25 = vadd.f32 %v5715_v49, %v11091_v45  ;;  %v10016_v45 = vld [vmem:[%s11822_s18] sm:$0xff]  }
0x1da2   : > { %9608 = vmatpush3.bf16.msra.mxu1 %v10016_v45  ;;  %v8655_v49 = vld [vmem:[%s11803_s26 + $0x1] ss:$0 sm:$0xff]  ;;  %v10027_v45 = vld [vmem:[%s11802_s3 + $0x78] sm:$0xff]  }
0x1da3   : > { %v5733_v60 = vsel %vm1243_vm0, %v11274_v25, 0.0  ;;  %9609 = vmatprep.subr.bf16.mxu1 %v10301_v9 }
0x1da4   : > { %5734 = vadd.xlane.f32.xlu1 %v5733_v60 }
0x1da6   : > { %9610 = vmatpush3.bf16.msra.mxu1 %v10017_v5  ;;  %v8677_v5 = vld [vmem:[%s11805_s16 + $0x4] ss:$0 sm:$0xff] }
0x1da7   : > { %9611 = vmatprep.subr.bf16.mxu1 %v10301_v9 }
0x1daa   : > { %9612 = vmatpush3.bf16.msra.mxu1 %v10018_v21 }
0x1dab   : > { %9613 = vmatprep.subr.bf16.mxu1 %v10301_v9 }
0x1dae   : > { %9614 = vmatpush3.bf16.msra.mxu1 %v10019_v0 }
0x1daf   : > { %9635 = vmatprep.subr.bf16.mxu1 %v10301_v9 }
0x1e31   : > { %v5735_v61 = vpop.xlane.xlu1 %5734 }
0x1e32   : > { %v5736_v62 = vmul.f32 0.03125, %v5735_v61  ;;  %v8656_v61 = vld [vmem:[%s11804_s10 + $0x1] ss:$0 sm:$0xff] }
0x1e34   : > { %v5737_v63 = vsub.f32 %v11274_v25, %v5736_v62 }
0x1e36   : > { %v5738_v1 = vmul.f32 %v5737_v63, %v5737_v63  ;;  %v5749_v14 = vmul.f32 %v8641_v12, %v5737_v63 }
0x1e38   : > { %v5739_v2 = vsel %vm1243_vm0, %v5738_v1, 0.0  ;;  %v10024_v1 = vld [vmem:[%s11802_s3 + $0x50] sm:$0xff]  }
0x1e39   : > { %5740 = vadd.xlane.f32.xlu0 %v5739_v2 }
0x1ec6   : > { %v5741_v46 = vpop.xlane.xlu0 %5740 }
0x1ec7   : > { %v5742_v6 = vmul.f32 0.032258064, %v5741_v46 }
0x1ec9   : > { %10142 = vrsqrt.f32 %v5742_v6  ;;  %vm5752_vm7 = vcmp.eq.f32.partialorder %v5742_v6, inf  ;;  %v5755_v57 = vand.u32 2147483648, %v5742_v6  ;;  %vm5754_vm9 = vcmp.eq.f32.partialorder %v5742_v6, 0.0 }
0x1ed3   : > { %v10143_v8 = vpop.eup %10142 }
0x1ed4   : > { %v5751_v7 = vmul.f32 %v10143_v8, %v5742_v6 }
0x1ed6   : > { %v5753_v10 = vsel %vm5752_vm7, %v5742_v6, %v5751_v7 }
0x1ed7   : > { %v5756_v54 = vsel %vm5754_vm9, %v5755_v57, %v5753_v10 }
0x1ed8   : > { %v5757_v41 = vadd.f32 1e-06, %v5756_v54 }
0x1eda   : > { %10144 = vrcp.f32 %v5757_v41 }
0x1ee4   : > { %v10145_v15 = vpop.eup %10144 }
0x1ee5   : > { %v5759_v17 = vmul.f32 %v10145_v15, %v5749_v14  ;;  %v8678_v15 = vld [vmem:[%s11805_s16 + $0x5] ss:$0 sm:$0xff] }
0x1ee7   : > { %v5766_v18 = vadd.f32 %v8642_v16, %v5759_v17  ;;  %v8679_v16 = vld [vmem:[%s11805_s16 + $0x6] ss:$0 sm:$0xff] }
0x1ee9   : > { %v5767_v20 = vpack.c.bf16 %v5766_v18, %v5766_v18 }
0x1eeb   : > { %9604 = vmatmul.mubr.msk.bf16.vlgmr.msra.gmra.mrb[140].mxu0 %vm1243_vm0, %v5767_v20 }
0x1eec   : > { %9623 = vmatprep.mubr.msk.bf16.mxu0 %vm10302_vm1, %v10301_v9  ;;  %9620 = vmatpush3.bf16.msra.mxu0 %v10020_v36 }
0x1eed   : > { %9621 = vmatprep.subr.bf16.mxu0 %v10301_v9 }
0x1ef0   : > { %9622 = vmatpush3.bf16.msra.mxu0 %v10022_v48 }
0x1ef1   : > { %9627 = vmatprep.subr.bf16.mxu0 %v10301_v9 }
0x1fbe   : > { %v5823_v26 = vpop.f32.mrb[140].mxu0 }
0x1fbf   : > { %v5824_v28 = vadd.f32 %v8643_v24, %v5823_v26  ;;  %v9605_v29 = vpop.f32.mrb[141].mxu0 }
0x1fc0   : > { %v5826_v31 = vpop.f32.mrb[142].mxu0 }
0x1fc1   : > { %v5829_v32 = vmax.f32 %v5824_v28, 0.0  ;;  %v9606_v33 = vpop.f32.mrb[143].mxu0  ;;  %v8680_v28 = vld [vmem:[%s11805_s16 + $0x7] ss:$0 sm:$0xff] }
0x1fc3   : > { %v5830_v34 = vpack.c.bf16 %v5829_v32, %v5829_v32 }
0x1fc5   : > { %9616 = vmatmul.mubr.msk.bf16.vlgmr.msra.gmra.mrb[148].mxu1 %vm2343_vm8, %v5830_v34 }
0x1fc6   : > { %9639 = vmatprep.mubr.msk.bf16.mxu1 %vm10302_vm1, %v10301_v9  ;;  %9636 = vmatpush3.bf16.msra.mxu1 %v10021_v47 }
0x1fc7   : > { %9637 = vmatprep.subr.bf16.mxu1 %v10301_v9 }
0x1fca   : > { %9638 = vmatpush3.bf16.msra.mxu1 %v10023_v44 }
0x1fcb   : > { %9651 = vmatprep.subr.bf16.mxu1 %v10301_v9 }
0x2098   : > { %v5898_v13 = vpop.f32.mrb[148].mxu1 }
0x2099   : > { %v5899_v37 = vadd.f32 %v8647_v35, %v5898_v13  ;;  %v9617_v38 = vpop.f32.mrb[149].mxu1 }
0x209a   : > { %v5901_v23 = vpop.f32.mrb[150].mxu1 }
0x209b   : > { %v11303_v22 = vadd.f32 %v5899_v37, %v11274_v25  ;;  %v9618_v39 = vpop.f32.mrb[151].mxu1 }
0x209d   : > { %v5909_v42 = vsel %vm1243_vm0, %v11303_v22, 0.0 }
0x209e   : > { %5910 = vadd.xlane.f32.xlu0 %v5909_v42 }
0x212b   : > { %v5911_v43 = vpop.xlane.xlu0 %5910 }
0x212c   : > { %v5912_v40 = vmul.f32 0.03125, %v5911_v43 }
0x212e   : > { %v5913_v30 = vsub.f32 %v11303_v22, %v5912_v40 }
0x2130   : > { %v5914_v11 = vmul.f32 %v5913_v30, %v5913_v30  ;;  %v5925_v25 = vmul.f32 %v8655_v49, %v5913_v30 }
0x2132   : > { %v5915_v19 = vsel %vm1243_vm0, %v5914_v11, 0.0 }
0x2133   : > { %5916 = vadd.xlane.f32.xlu1 %v5915_v19 }
0x21c0   : > { %v5917_v27 = vpop.xlane.xlu1 %5916 }
0x21c1   : > { %v5918_v3 = vmul.f32 0.032258064, %v5917_v27 }
0x21c3   : > { %10146 = vrsqrt.f32 %v5918_v3  ;;  %vm5928_vm10 = vcmp.eq.f32.partialorder %v5918_v3, inf  ;;  %v5931_v55 = vand.u32 2147483648, %v5918_v3  ;;  %vm5930_vm11 = vcmp.eq.f32.partialorder %v5918_v3, 0.0 }
0x21cd   : > { %v10147_v52 = vpop.eup %10146 }
0x21ce   : > { %v5927_v53 = vmul.f32 %v10147_v52, %v5918_v3 }
0x21d0   : > { %v5929_v56 = vsel %vm5928_vm10, %v5918_v3, %v5927_v53  ;;  %v10195_v53 = vld [vmem:[%s11807_s6] sm:$0xff] }
0x21d1   : > { %v5932_v58 = vsel %vm5930_vm11, %v5931_v55, %v5929_v56 }
0x21d2   : > { %v5933_v59 = vadd.f32 1e-06, %v5932_v58 }
0x21d4   : > { %10148 = vrcp.f32 %v5933_v59 }
0x21de   : > { %v10149_v60 = vpop.eup %10148 }
0x21df   : > { %v5935_v62 = vmul.f32 %v10149_v60, %v5925_v25 }
0x21e1   : > { %v5942_v63 = vadd.f32 %v8656_v61, %v5935_v62 }
0x21e3   : > { %v5965_v2 = vpack.c.bf16 %v5942_v63, %v5942_v63 }
0x21e5   : > { %9624 = vmatmul.mubr.msk.bf16.vlgmr.msra.gmra.mrb[144].mxu0 %vm1243_vm0, %v5965_v2  ;;  %9640 = vmatmul.mubr.msk.bf16.vlgmr.msra.gmra.mrb[152].mxu1 %vm1243_vm0, %v5965_v2 }
0x21e6   : > { %9628 = vmatpush3.bf16.msra.mxu0 %v10024_v1  ;;  %9631 = vmatprep.mubr.msk.bf16.mxu0 %vm10302_vm1, %v10301_v9 }
0x21e7   : > { %9629 = vmatprep.subr.bf16.mxu0 %v10301_v9  ;;  %9653 = vmatprep.mubr.msk.bf16.mxu1 %vm10302_vm1, %v10301_v9 }
0x21ea   : > { %9630 = vmatpush3.bf16.msra.mxu0 %v10025_v51 }
0x21eb   : > { %9643 = vmatprep.subr.bf16.mxu0 %v10301_v9 }
0x21ed   : > { %9632 = vmatmul.mubr.msk.bf16.vlgmr.msra.gmra.mrb[148].mxu0 %vm1243_vm0, %v5965_v2 }
0x21ee   : > { %9644 = vmatpush3.bf16.msra.mxu0 %v10026_v4  ;;  %9647 = vmatprep.mubr.msk.bf16.mxu0 %vm10302_vm1, %v10301_v9 }
0x21ef   : > { %9645 = vmatprep.subr.bf16.mxu0 %v10301_v9 }
0x21f2   : > { %9646 = vmatpush3.bf16.msra.mxu0 %v10027_v45 }
0x21f3   : > { %9657 = vmatprep.subr.bf16.mxu0 %v10301_v9 }
0x21f5   : > { %9648 = vmatmul.mubr.msk.bf16.vlgmr.msra.gmra.mrb[152].mxu0 %vm1243_vm0, %v5965_v2 }
0x21f6   : > { %9659 = vmatprep.mubr.msk.bf16.mxu0 %vm10302_vm1, %v10301_v9 }
0x22b8   : > { %v6039_v46 = vpop.f32.mrb[144].mxu0  ;;  %v6143_v6 = vpop.f32.mrb[152].mxu1 }
0x22b9   : > { %v6040_v8 = vadd.f32 %v8677_v5, %v6039_v46  ;;  %v9625_v7 = vpop.f32.mrb[145].mxu0  ;;  %v9641_v57 = vpop.f32.mrb[153].mxu1  ;;  %v6144_v0 = vadd.f32 %v8679_v16, %v6143_v6 }
0x22ba   : > { %v6042_v10 = vpop.f32.mrb[146].mxu0  ;;  %v6146_v54 = vpop.f32.mrb[154].mxu1 }
0x22bb   : > { %v11340_v41 = vpack.c.bf16 %v6040_v8, %v6040_v8  ;;  %v9626_v12 = vpop.f32.mrb[147].mxu0  ;;  %v9642_v14 = vpop.f32.mrb[155].mxu1  ;;  %v11351_v29 = vpack.c.bf16 %v6144_v0, %v6144_v0  ;;  %v6208_v23 = vmul.f32 0.35355338, %v6040_v8  ;;  %v6210_v19 = vmul.f32 0.35355338, %v6144_v0 }
0x22bd   : > { %6221 = vrot.lane.b32.xlu0 %v11340_v41, %s11806_s5  ;;  %v6212_v39 = vpack.c.bf16 %v6208_v23, %v6208_v23  ;;  %v6214_v44 = vpack.c.bf16 %v6210_v19, %v6210_v19 }
0x22c0   : > { %v6091_v17 = vpop.f32.mrb[148].mxu0 }
0x22c1   : > { %v6092_v18 = vadd.f32 %v8678_v15, %v6091_v17  ;;  %v9633_v20 = vpop.f32.mrb[149].mxu0 }
0x22c2   : > { %v6094_v21 = vpop.f32.mrb[150].mxu0 }
0x22c3   : > { %v11346_v24 = vpack.c.bf16 %v6092_v18, %v6092_v18  ;;  %v9634_v26 = vpop.f32.mrb[151].mxu0  ;;  %v6209_v40 = vmul.f32 0.35355338, %v6092_v18 }
0x22c5   : > { %6270 = vrot.lane.b32.xlu1 %v11346_v24, %s11806_s5  ;;  %v6213_v36 = vpack.c.bf16 %v6209_v40, %v6209_v40 }
0x22c8   : > { %v6195_v31 = vpop.f32.mrb[152].mxu0 }
0x22c9   : > { %v6196_v32 = vadd.f32 %v8680_v28, %v6195_v31  ;;  %v9649_v33 = vpop.f32.mrb[153].mxu0  ;;  %6319 = vrot.lane.b32.xlu1 %v11351_v29, %s11806_s5 }
0x22ca   : > { %v6198_v34 = vpop.f32.mrb[154].mxu0 }
0x22cb   : > { %v11355_v35 = vpack.c.bf16 %v6196_v32, %v6196_v32  ;;  %v9650_v13 = vpop.f32.mrb[155].mxu0  ;;  %v6211_v27 = vmul.f32 0.35355338, %v6196_v32 }
0x22cd   : > { %6368 = vrot.lane.b32.xlu0 %v11355_v35, %s11806_s5  ;;  %v6215_v3 = vpack.c.bf16 %v6211_v27, %v6211_v27 }
0x232f   : > { %v6222_v37 = vpop.permute.xlu0 %6221 }
0x2330   : > { %v6227_v38 = vsel %vm1561_vm4, %v6222_v37, 0 }
0x2331   : > { %9652 = vmatpush3.bf16.xpose.msra.mxu1 %v6227_v38 }
0x2332   : > { %9663 = vmatprep.subr.bf16.mxu1 %v10301_v9 }
0x2337   : > { %v6271_v42 = vpop.permute.xlu1 %6270 }
0x2338   : > { %v6276_v43 = vsel %vm1561_vm4, %v6271_v42, 0  ;;  %9654 = vmatmul.mubr.msk.bf16.vlgmr.msra.gmra.mrb[156].mxu1 %vm1561_vm4, %v6212_v39 }
0x2339   : > { %9658 = vmatpush3.bf16.xpose.msra.mxu0 %v6276_v43  ;;  %9665 = vmatprep.mubr.msk.bf16.mxu1 %vm10302_vm1, %v10301_v9 }
0x233a   : > { %9669 = vmatprep.subr.bf16.mxu0 %v10301_v9 }
0x233b   : > { %v6320_v30 = vpop.permute.xlu1 %6319 }
0x233c   : > { %v6325_v11 = vsel %vm1561_vm4, %v6320_v30, 0 }
0x233d   : > { %9664 = vmatpush3.bf16.xpose.msra.mxu1 %v6325_v11 }
0x233e   : > { %9675 = vmatprep.subr.bf16.mxu1 %v10301_v9 }
0x233f   : > { %v6369_v47 = vpop.permute.xlu0 %6368 }
0x2340   : > { %v6374_v48 = vsel %vm1561_vm4, %v6369_v47, 0  ;;  %9660 = vmatmul.mubr.msk.bf16.vlgmr.msra.gmra.mrb[156].mxu0 %vm1561_vm4, %v6213_v36 }
0x2341   : > { %9670 = vmatpush3.bf16.xpose.msra.mxu0 %v6374_v48  ;;  %9671 = vmatprep.mubr.msk.bf16.mxu0 %vm10302_vm1, %v10301_v9 }
0x2342   : > { %9681 = vmatprep.subr.bf16.mxu0 %v10301_v9 }
0x2344   : > { %9666 = vmatmul.mubr.msk.bf16.vlgmr.msra.gmra.mrb[160].mxu1 %vm1561_vm4, %v6214_v44 }
0x2345   : > { %9677 = vmatprep.mubr.msk.bf16.mxu1 %vm10302_vm1, %v10301_v9 }
0x2348   : > { %9672 = vmatmul.mubr.msk.bf16.vlgmr.msra.gmra.mrb[160].mxu0 %vm1561_vm4, %v6215_v3 }
0x2349   : > { %9683 = vmatprep.mubr.msk.bf16.mxu0 %vm10302_vm1, %v10301_v9 }
0x240b   : > { %v6263_v52 = vpop.f32.mrb[156].mxu1 }
0x240c   : > { %v6264_v55 = vadd.f32 %v10195_v53, %v6263_v52  ;;  %v9655_v56 = vpop.f32.mrb[157].mxu1 }
0x240d   : > { %v6266_v58 = vpop.f32.mrb[158].mxu1 }
0x240e   : > { %v9656_v59 = vpop.f32.mrb[159].mxu1  ;;  %v6416_v49 = vsel %vm1561_vm4, %v6264_v55, -inf }
0x240f   : > { %6417 = vmax.xlane.f32.xlu1 %v6416_v49 }
0x2413   : > { %v6312_v25 = vpop.f32.mrb[156].mxu0 }
0x2414   : > { %v6313_v60 = vadd.f32 %v10195_v53, %v6312_v25  ;;  %v9661_v61 = vpop.f32.mrb[157].mxu0 }
0x2415   : > { %v6315_v62 = vpop.f32.mrb[158].mxu0 }
0x2416   : > { %v9662_v63 = vpop.f32.mrb[159].mxu0  ;;  %v6419_v1 = vsel %vm1561_vm4, %v6313_v60, -inf  ;;  %v8694_v62 = vld [vmem:[%s11809_s12 + $0x14] sm:$0xf] }
0x2417   : > { %6420 = vmax.xlane.f32.xlu0 %v6419_v1  ;;  %v6361_v2 = vpop.f32.mrb[160].mxu1  ;;  %v6710_v63 = vsel %vm1808_vm5, %v8694_v62, 0  ;;  %v8695_v1 = vld [vmem:[%s11809_s12 + $0x18] sm:$0xf] }
0x2418   : > { %v6362_v51 = vadd.f32 %v10195_v53, %v6361_v2  ;;  %v9667_v4 = vpop.f32.mrb[161].mxu1  ;;  %v10031_v62 = vld [vmem:[%s11811_s14 + $0x58] sm:$0xff]  }
0x2419   : > { %v6364_v45 = vpop.f32.mrb[162].mxu1 }
0x241a   : > { %v9668_v5 = vpop.f32.mrb[163].mxu1  ;;  %v6422_v46 = vsel %vm1561_vm4, %v6362_v51, -inf  ;;  %v6756_v45 = vsel %vm1808_vm5, %v8695_v1, 0 }
0x241b   : > { %v6410_v6 = vpop.f32.mrb[160].mxu0  ;;  %6423 = vmax.xlane.f32.xlu0 %v6422_v46 }
0x241c   : > { %v6411_v8 = vadd.f32 %v10195_v53, %v6410_v6  ;;  %v9673_v7 = vpop.f32.mrb[161].mxu0  ;;  %v8696_v6 = vld [vmem:[%s11809_s12 + $0x1c] sm:$0xf] }
0x241d   : > { %v6413_v57 = vpop.f32.mrb[162].mxu0 }
0x241e   : > { %v9674_v10 = vpop.f32.mrb[163].mxu0  ;;  %v6425_v54 = vsel %vm1561_vm4, %v6411_v8, -inf }
0x241f   : > { %6426 = vmax.xlane.f32.xlu1 %v6425_v54  ;;  %v6802_v10 = vsel %vm1808_vm5, %v8696_v6, 0 }
0x2430   : > { %6512 = vrot.lane.b32.xlu1 %v11346_v24, %s11808_s8 }
0x2431   : > { %6464 = vrot.lane.b32.xlu0 %v11340_v41, %s11808_s8 }
0x249c   : > { %v6418_v12 = vpop.xlane.xlu1 %6417 }
0x249d   : > { %v6428_v14 = vsub.f32 %v6264_v55, %v6418_v12 }
0x249f   : > { %v6432_v15 = vmul.f32 1.442695, %v6428_v14 }
0x24a1   : > { %10150 = vpow2.f32 %v6432_v15 }
0x24a4   : > { %v6421_v16 = vpop.xlane.xlu0 %6420 }
0x24a5   : > { %v6429_v17 = vsub.f32 %v6313_v60, %v6421_v16  ;;  %v8693_v60 = vld [vmem:[%s11809_s12 + $0x10] sm:$0xf] }
0x24a6   : > { %v6664_v61 = vsel %vm1808_vm5, %v8693_v60, 0  ;;  %v10029_v60 = vld [vmem:[%s11811_s14 + $0x50] sm:$0xff]  }
0x24a7   : > { %v6434_v18 = vmul.f32 1.442695, %v6429_v17 }
0x24a8   : > { %v6424_v20 = vpop.xlane.xlu0 %6423 }
0x24a9   : > { %10152 = vpow2.f32 %v6434_v18  ;;  %v6430_v21 = vsub.f32 %v6362_v51, %v6424_v20 }
0x24ab   : > { %v10151_v0 = vpop.eup %10150  ;;  %v6436_v26 = vmul.f32 1.442695, %v6430_v21 }
0x24ac   : > { %v6427_v28 = vpop.xlane.xlu1 %6426  ;;  %v6465_v31 = vpop.permute.xlu0 %6464  ;;  %v6440_v32 = vsel %vm1561_vm4, %v10151_v0, 0.0 }
0x24ad   : > { %10154 = vpow2.f32 %v6436_v26  ;;  %v6431_v24 = vsub.f32 %v6411_v8, %v6427_v28  ;;  %v6470_v41 = vsel %vm1808_vm5, %v6465_v31, 0  ;;  %6441 = vadd.xlane.f32.xlu0 %v6440_v32 }
0x24ae   : > { %9676 = vmatpush3.bf16.msra.mxu1 %v6470_v41 }
0x24af   : > { %v6438_v33 = vmul.f32 1.442695, %v6431_v24  ;;  %9687 = vmatprep.subr.bf16.mxu1 %v10301_v9 }
0x24b0   : > { %v6513_v34 = vpop.permute.xlu1 %6512 }
0x24b1   : > { %10156 = vpow2.f32 %v6438_v33  ;;  %v6518_v13 = vsel %vm1808_vm5, %v6513_v34, 0 }
0x24b2   : > { %9682 = vmatpush3.bf16.msra.mxu0 %v6518_v13 }
0x24b3   : > { %v10153_v37 = vpop.eup %10152  ;;  %9693 = vmatprep.subr.bf16.mxu0 %v10301_v9 }
0x24b4   : > { %v6443_v38 = vsel %vm1561_vm4, %v10153_v37, 0.0 }
0x24b5   : > { %6444 = vadd.xlane.f32.xlu1 %v6443_v38 }
0x24b7   : > { %v10155_v23 = vpop.eup %10154 }
0x24b8   : > { %v6446_v39 = vsel %vm1561_vm4, %v10155_v23, 0.0 }
0x24b9   : > { %6447 = vadd.xlane.f32.xlu0 %v6446_v39 }
0x24bb   : > { %v10157_v42 = vpop.eup %10156 }
0x24bc   : > { %v6449_v43 = vsel %vm1561_vm4, %v10157_v42, 0.0 }
0x24bd   : > { %6450 = vadd.xlane.f32.xlu1 %v6449_v43 }
0x24ce   : > { %6560 = vrot.lane.b32.xlu1 %v11351_v29, %s11808_s8 }
0x24cf   : > { %6608 = vrot.lane.b32.xlu0 %v11355_v35, %s11808_s8  ;;  %s1223_s8 = sand.u32 1, %s10251_s1  }
0x24d0   : > { %s8428_s28 = sshll.u32 %s1223_s8, 3  ;;  %s8291_s6 = scalar_lea.sflag [#allocation3], %s1223_s8 }
0x253a   : > { %v6442_v40 = vpop.xlane.xlu0 %6441 }
0x253b   : > { %10158 = vrcp.f32 %v6442_v40 }
0x2542   : > { %v6445_v30 = vpop.xlane.xlu1 %6444 }
0x2543   : > { %10160 = vrcp.f32 %v6445_v30 }
0x2545   : > { %v10159_v11 = vpop.eup %10158 }
0x2546   : > { %v6456_v19 = vmul.f32 %v10159_v11, %v10151_v0  ;;  %v6448_v36 = vpop.xlane.xlu0 %6447 }
0x2547   : > { %10162 = vrcp.f32 %v6448_v36 }
0x2548   : > { %v6460_v47 = vpack.c.bf16 %v6456_v19, %v6456_v19 }
0x254a   : > { %v6451_v48 = vpop.xlane.xlu1 %6450  ;;  %9678 = vmatmul.mubr.msk.bf16.vlgmr.msra.gmra.mrb[164].mxu1 %vm1561_vm4, %v6460_v47  ;;  %v6609_v35 = vpop.permute.xlu0 %6608  ;;  %v8710_v47 = vld [vmem:[%s11810_s13 + $0x1] ss:$0 sm:$0xff] }
0x254b   : > { %10164 = vrcp.f32 %v6451_v48  ;;  %9689 = vmatprep.mubr.msk.bf16.mxu1 %vm10302_vm1, %v10301_v9  ;;  %v6614_v56 = vsel %vm1808_vm5, %v6609_v35, 0 }
0x254d   : > { %v10161_v29 = vpop.eup %10160 }
0x254e   : > { %v6457_v44 = vmul.f32 %v10161_v29, %v10153_v37  ;;  %v6561_v27 = vpop.permute.xlu1 %6560 }
0x254f   : > { %v6566_v3 = vsel %vm1808_vm5, %v6561_v27, 0 }
0x2550   : > { %9688 = vmatpush3.bf16.msra.mxu1 %v6566_v3  ;;  %v6461_v52 = vpack.c.bf16 %v6457_v44, %v6457_v44 }
0x2551   : > { %v10163_v53 = vpop.eup %10162  ;;  %9699 = vmatprep.subr.bf16.mxu1 %v10301_v9 }
0x2552   : > { %v6458_v55 = vmul.f32 %v10163_v53, %v10155_v23  ;;  %9684 = vmatmul.mubr.msk.bf16.vlgmr.msra.gmra.mrb[164].mxu0 %vm1561_vm4, %v6461_v52 }
0x2553   : > { %9694 = vmatpush3.bf16.msra.mxu0 %v6614_v56  ;;  %9695 = vmatprep.mubr.msk.bf16.mxu0 %vm10302_vm1, %v10301_v9 }
0x2554   : > { %v6462_v58 = vpack.c.bf16 %v6458_v55, %v6458_v55  ;;  %9705 = vmatprep.subr.bf16.mxu0 %v10301_v9 }
0x2555   : > { %v10165_v59 = vpop.eup %10164 }
0x2556   : > { %v6459_v49 = vmul.f32 %v10165_v59, %v10157_v42  ;;  %9690 = vmatmul.mubr.msk.bf16.vlgmr.msra.gmra.mrb[168].mxu1 %vm1561_vm4, %v6462_v58 }
0x2557   : > { %9701 = vmatprep.mubr.msk.bf16.mxu1 %vm10302_vm1, %v10301_v9  ;;  %9700 = vmatpush3.bf16.msra.mxu1 %v6664_v61  ;;  %v10030_v61 = vld [vmem:[%s11811_s14 + $0x48] sm:$0xff]  }
0x2558   : > { %v6463_v25 = vpack.c.bf16 %v6459_v49, %v6459_v49  ;;  %9711 = vmatprep.subr.bf16.mxu1 %v10301_v9 }
0x255a   : > { %9696 = vmatmul.mubr.msk.bf16.vlgmr.msra.gmra.mrb[168].mxu0 %vm1561_vm4, %v6463_v25  ;;  %v10028_v25 = vld [vmem:[%s11811_s14 + $0x40] sm:$0xff]  }
0x255b   : > { %9707 = vmatprep.mubr.msk.bf16.mxu0 %vm10302_vm1, %v10301_v9  ;;  %9706 = vmatpush3.bf16.msra.mxu0 %v6710_v63 }
0x255c   : > { %9717 = vmatprep.subr.bf16.mxu0 %v10301_v9 }
0x261d   : > { %v6506_v2 = vpop.f32.mrb[164].mxu1 }
0x261e   : > { %v6656_v51 = vpack.c.bf16 %v6506_v2, %v6506_v2  ;;  %v9679_v4 = vpop.f32.mrb[165].mxu1 }
0x261f   : > { %v6509_v5 = vpop.f32.mrb[166].mxu1 }
0x2620   : > { %v9680_v46 = vpop.f32.mrb[167].mxu1  ;;  %9702 = vmatmul.mubr.msk.bf16.vlgmr.msra.gmra.mrb[172].mxu1 %vm1561_vm4, %v6656_v51 }
0x2621   : > { %9712 = vmatpush3.bf16.msra.mxu1 %v6756_v45  ;;  %9713 = vmatprep.mubr.msk.bf16.mxu1 %vm10302_vm1, %v10301_v9  ;;  %v8713_v46 = vld [vmem:[%s11812_s19 + $0x1] ss:$0 sm:$0xff] }
0x2622   : > { %9723 = vmatprep.subr.bf16.mxu1 %v10301_v9 }
0x2625   : > { %v6554_v8 = vpop.f32.mrb[164].mxu0 }
0x2626   : > { %v6657_v7 = vpack.c.bf16 %v6554_v8, %v6554_v8  ;;  %v9685_v57 = vpop.f32.mrb[165].mxu0 }
0x2627   : > { %v6557_v54 = vpop.f32.mrb[166].mxu0 }
0x2628   : > { %v9686_v12 = vpop.f32.mrb[167].mxu0  ;;  %9708 = vmatmul.mubr.msk.bf16.vlgmr.msra.gmra.mrb[172].mxu0 %vm1561_vm4, %v6657_v7  ;;  %v8714_v7 = vld [vmem:[%s11813_s20 + $0x1] ss:$0 sm:$0xff] }
0x2629   : > { %v6602_v14 = vpop.f32.mrb[168].mxu1  ;;  %9718 = vmatpush3.bf16.msra.mxu0 %v6802_v10  ;;  %9719 = vmatprep.mubr.msk.bf16.mxu0 %vm10302_vm1, %v10301_v9  ;;  %v10032_v54 = vld [vmem:[%s11811_s14 + $0x60] sm:$0xff]   ;;  %v10033_v12 = vld [vmem:[%s11811_s14 + $0x70] sm:$0xff]  }
0x262a   : > { %v6658_v15 = vpack.c.bf16 %v6602_v14, %v6602_v14  ;;  %v9691_v16 = vpop.f32.mrb[169].mxu1  ;;  %9731 = vmatprep.subr.bf16.mxu0 %v10301_v9 }
0x262b   : > { %v6605_v17 = vpop.f32.mrb[170].mxu1  ;;  %v10035_v16 = vld [vmem:[%s11811_s14 + $0x78] sm:$0xff]  }
0x262c   : > { %v9692_v18 = vpop.f32.mrb[171].mxu1  ;;  %9714 = vmatmul.mubr.msk.bf16.vlgmr.msra.gmra.mrb[176].mxu1 %vm1561_vm4, %v6658_v15  ;;  %v10034_v15 = vld [vmem:[%s11811_s14 + $0x68] sm:$0xff]   ;;  %v10036_v17 = vld [vmem:[%s11815_s24 + $0x40] sm:$0xff]  }
0x262d   : > { %v6650_v20 = vpop.f32.mrb[168].mxu0  ;;  %9727 = vmatprep.mubr.msk.bf16.mxu1 %vm10302_vm1, %v10301_v9  ;;  %9724 = vmatpush3.bf16.msra.mxu1 %v10028_v25  ;;  %v10037_v18 = vld [vmem:[%s11815_s24 + $0x50] sm:$0xff]  }
0x262e   : > { %v6659_v21 = vpack.c.bf16 %v6650_v20, %v6650_v20  ;;  %v9697_v0 = vpop.f32.mrb[169].mxu0  ;;  %9725 = vmatprep.subr.bf16.mxu1 %v10301_v9  ;;  %v10038_v20 = vld [vmem:[%s11815_s24 + $0x48] sm:$0xff]  }
0x262f   : > { %v6653_v26 = vpop.f32.mrb[170].mxu0  ;;  %v10040_v0 = vld [vmem:[%s11815_s24 + $0x60] sm:$0xff]  }
0x2630   : > { %v9698_v28 = vpop.f32.mrb[171].mxu0  ;;  %9720 = vmatmul.mubr.msk.bf16.vlgmr.msra.gmra.mrb[176].mxu0 %vm1561_vm4, %v6659_v21  ;;  %v10039_v21 = vld [vmem:[%s11815_s24 + $0x58] sm:$0xff]   ;;  %v10041_v26 = vld [vmem:[%s11815_s24 + $0x70] sm:$0xff]  }
0x2631   : > { %9735 = vmatprep.mubr.msk.bf16.mxu0 %vm10302_vm1, %v10301_v9  ;;  %9732 = vmatpush3.bf16.msra.mxu0 %v10029_v60  ;;  %v10042_v28 = vld [vmem:[%s11815_s24 + $0x68] sm:$0xff]  }
0x2632   : > { %9733 = vmatprep.subr.bf16.mxu0 %v10301_v9  ;;  %9726 = vmatpush3.bf16.msra.mxu1 %v10030_v61 }
0x2633   : > { %9739 = vmatprep.subr.bf16.mxu1 %v10301_v9 }
0x2635   : > { %9734 = vmatpush3.bf16.msra.mxu0 %v10031_v62 }
0x2636   : > { %9747 = vmatprep.subr.bf16.mxu0 %v10301_v9 }
0x26f3   : > { %v6700_v31 = vpop.f32.mrb[172].mxu1 }
0x26f4   : > { %v9703_v32 = vpop.f32.mrb[173].mxu1  ;;  %v6844_v34 = vsel %vm1243_vm0, %v6700_v31, 0.0  ;;  %v10043_v31 = vld [vmem:[%s11815_s24 + $0x78] sm:$0xff]  }
0x26f5   : > { %v6703_v24 = vpop.f32.mrb[174].mxu1 }
0x26f6   : > { %v9704_v41 = vpop.f32.mrb[175].mxu1 }
0x26fb   : > { %v6746_v33 = vpop.f32.mrb[172].mxu0 }
0x26fc   : > { %v6845_v13 = vsel %vm1243_vm0, %v6746_v33, 0.0  ;;  %v9709_v37 = vpop.f32.mrb[173].mxu0 }
0x26fd   : > { %v6846_v38 = vadd.f32 %v6845_v13, %v6844_v34  ;;  %v6749_v23 = vpop.f32.mrb[174].mxu0 }
0x26fe   : > { %v9710_v39 = vpop.f32.mrb[175].mxu0 }
0x26ff   : > { %v6792_v42 = vpop.f32.mrb[176].mxu1 }
0x2700   : > { %v6847_v43 = vsel %vm1243_vm0, %v6792_v42, 0.0  ;;  %v9715_v40 = vpop.f32.mrb[177].mxu1 }
0x2701   : > { %v6848_v30 = vadd.f32 %v6847_v43, %v6846_v38  ;;  %v6795_v11 = vpop.f32.mrb[178].mxu1 }
0x2702   : > { %v9716_v19 = vpop.f32.mrb[179].mxu1 }
0x2703   : > { %v6838_v36 = vpop.f32.mrb[176].mxu0  ;;  %v8771_v19 = vld [vmem:[%s11817_s21 + $0x4] ss:$0 sm:$0xff] }
0x2704   : > { %v6849_v48 = vsel %vm1243_vm0, %v6838_v36, 0.0  ;;  %v9721_v29 = vpop.f32.mrb[177].mxu0  ;;  %v8772_v36 = vld [vmem:[%s11817_s21 + $0x5] ss:$0 sm:$0xff] }
0x2705   : > { %v6850_v44 = vadd.f32 %v6849_v48, %v6848_v30  ;;  %v6841_v27 = vpop.f32.mrb[178].mxu0  ;;  %v8736_v48 = vld [vmem:[%s11818_s4 + $0x5] ss:$0 sm:$0xff] }
0x2706   : > { %v9722_v35 = vpop.f32.mrb[179].mxu0 }
0x2707   : > { %v6857_v3 = vadd.f32 %v8710_v47, %v6850_v44  ;;  %v8735_v47 = vld [vmem:[%s11818_s4 + $0x4] ss:$0 sm:$0xff] }
0x2709   : > { %v11446_v52 = vadd.f32 %v6857_v3, %v11303_v22 }
0x270b   : > { %v6863_v53 = vsel %vm1243_vm0, %v11446_v52, 0.0 }
0x270c   : > { %6864 = vadd.xlane.f32.xlu1 %v6863_v53 }
0x2799   : > { %v6865_v55 = vpop.xlane.xlu1 %6864 }
0x279a   : > { %v6866_v56 = vmul.f32 0.03125, %v6865_v55 }
0x279c   : > { %v6867_v58 = vsub.f32 %v11446_v52, %v6866_v56 }
0x279e   : > { %v6868_v59 = vmul.f32 %v6867_v58, %v6867_v58  ;;  %v6879_v6 = vmul.f32 %v8713_v46, %v6867_v58 }
0x27a0   : > { %v6869_v49 = vsel %vm1243_vm0, %v6868_v59, 0.0 }
0x27a1   : > { %6870 = vadd.xlane.f32.xlu0 %v6869_v49 }
0x282e   : > { %v6871_v22 = vpop.xlane.xlu0 %6870 }
0x282f   : > { %v6872_v63 = vmul.f32 0.032258064, %v6871_v22 }
0x2831   : > { %10166 = vrsqrt.f32 %v6872_v63  ;;  %vm6882_vm12 = vcmp.eq.f32.partialorder %v6872_v63, inf  ;;  %v6885_v51 = vand.u32 2147483648, %v6872_v63  ;;  %vm6884_vm13 = vcmp.eq.f32.partialorder %v6872_v63, 0.0 }
0x283b   : > { %v10167_v1 = vpop.eup %10166 }
0x283c   : > { %v6881_v2 = vmul.f32 %v10167_v1, %v6872_v63 }
0x283e   : > { %v6883_v4 = vsel %vm6882_vm12, %v6872_v63, %v6881_v2  ;;  %v8773_v63 = vld [vmem:[%s11817_s21 + $0x6] ss:$0 sm:$0xff] }
0x283f   : > { %v6886_v45 = vsel %vm6884_vm13, %v6885_v51, %v6883_v4  ;;  %v8774_v51 = vld [vmem:[%s11817_s21 + $0x7] ss:$0 sm:$0xff]  ;;  %v8737_v4 = vld [vmem:[%s11818_s4 + $0x6] ss:$0 sm:$0xff] }
0x2840   : > { %v6887_v5 = vadd.f32 1e-06, %v6886_v45  ;;  %v8738_v45 = vld [vmem:[%s11818_s4 + $0x7] ss:$0 sm:$0xff] }
0x2842   : > { %10168 = vrcp.f32 %v6887_v5 }
0x284c   : > { %v10169_v8 = vpop.eup %10168 }
0x284d   : > { %v6889_v57 = vmul.f32 %v10169_v8, %v6879_v6 }
0x284f   : > { %v6896_v10 = vadd.f32 %v8714_v7, %v6889_v57 }
0x2851   : > { %v6919_v14 = vpack.c.bf16 %v6896_v10, %v6896_v10 }
0x2853   : > { %9728 = vmatmul.mubr.msk.bf16.vlgmr.msra.gmra.mrb[180].mxu1 %vm1243_vm0, %v6919_v14  ;;  %9736 = vmatmul.mubr.msk.bf16.vlgmr.msra.gmra.mrb[180].mxu0 %vm1243_vm0, %v6919_v14 }
0x2854   : > { %9740 = vmatpush3.bf16.msra.mxu1 %v10032_v54  ;;  %9748 = vmatpush3.bf16.msra.mxu0 %v10033_v12 }
0x2855   : > { %9741 = vmatprep.subr.bf16.mxu1 %v10301_v9  ;;  %9749 = vmatprep.subr.bf16.mxu0 %v10301_v9 }
0x2856   : > { %9743 = vmatprep.mubr.msk.bf16.mxu1 %vm10302_vm1, %v10301_v9  ;;  %9751 = vmatprep.mubr.msk.bf16.mxu0 %vm10302_vm1, %v10301_v9 }
0x2858   : > { %9742 = vmatpush3.bf16.msra.mxu1 %v10034_v15  ;;  %9750 = vmatpush3.bf16.msra.mxu0 %v10035_v16 }
0x2859   : > { %9755 = vmatprep.subr.bf16.mxu1 %v10301_v9  ;;  %9763 = vmatprep.subr.bf16.mxu0 %v10301_v9 }
0x285b   : > { %9744 = vmatmul.mubr.msk.bf16.vlgmr.msra.gmra.mrb[184].mxu1 %vm1243_vm0, %v6919_v14  ;;  %9752 = vmatmul.mubr.msk.bf16.vlgmr.msra.gmra.mrb[184].mxu0 %vm1243_vm0, %v6919_v14 }
0x285c   : > { %9756 = vmatpush3.bf16.msra.mxu1 %v10036_v17  ;;  %9764 = vmatpush3.bf16.msra.mxu0 %v10037_v18 }
0x285d   : > { %9757 = vmatprep.subr.bf16.mxu1 %v10301_v9  ;;  %9765 = vmatprep.subr.bf16.mxu0 %v10301_v9 }
0x285e   : > { %9759 = vmatprep.mubr.msk.bf16.mxu1 %vm10302_vm1, %v10301_v9  ;;  %9767 = vmatprep.mubr.msk.bf16.mxu0 %vm10302_vm1, %v10301_v9 }
0x2860   : > { %9758 = vmatpush3.bf16.msra.mxu1 %v10038_v20  ;;  %9766 = vmatpush3.bf16.msra.mxu0 %v10039_v21 }
0x2861   : > { %9771 = vmatprep.subr.bf16.mxu1 %v10301_v9  ;;  %9779 = vmatprep.subr.bf16.mxu0 %v10301_v9 }
0x2863   : > { %9760 = vmatmul.mubr.msk.bf16.vlgmr.msra.gmra.mrb[188].mxu1 %vm1243_vm0, %v11141_v50  ;;  %9768 = vmatmul.mubr.msk.bf16.vlgmr.msra.gmra.mrb[188].mxu0 %vm1243_vm0, %v11141_v50 }
0x2864   : > { %9772 = vmatpush3.bf16.msra.mxu1 %v10040_v0  ;;  %9780 = vmatpush3.bf16.msra.mxu0 %v10041_v26 }
0x2865   : > { %9773 = vmatprep.subr.bf16.mxu1 %v10301_v9  ;;  %9781 = vmatprep.subr.bf16.mxu0 %v10301_v9 }
0x2866   : > { %9775 = vmatprep.mubr.msk.bf16.mxu1 %vm10302_vm1, %v10301_v9  ;;  %9783 = vmatprep.mubr.msk.bf16.mxu0 %vm10302_vm1, %v10301_v9 }
0x2868   : > { %9774 = vmatpush3.bf16.msra.mxu1 %v10042_v28  ;;  %9782 = vmatpush3.bf16.msra.mxu0 %v10043_v31 }
0x2869   : > { %9787 = vmatprep.subr.bf16.mxu1 %v10301_v9  ;;  %9793 = vmatprep.subr.bf16.mxu0 %v10301_v9 }
0x286b   : > { %9776 = vmatmul.mubr.msk.bf16.vlgmr.msra.gmra.mrb[192].mxu1 %vm1243_vm0, %v11141_v50  ;;  %9784 = vmatmul.mubr.msk.bf16.vlgmr.msra.gmra.mrb[192].mxu0 %vm1243_vm0, %v11141_v50 }
0x286c   : > { %9789 = vmatprep.mubr.msk.bf16.mxu1 %vm10302_vm1, %v10301_v9  ;;  %9795 = vmatprep.mubr.msk.bf16.mxu0 %vm10302_vm1, %v10301_v9 }
0x2926   : > { %v6993_v32 = vpop.f32.mrb[180].mxu1  ;;  %v7045_v24 = vpop.f32.mrb[180].mxu0 }
0x2927   : > { %v9729_v41 = vpop.f32.mrb[181].mxu1  ;;  %v9737_v33 = vpop.f32.mrb[181].mxu0  ;;  %v6994_v55 = vadd.f32 %v8735_v47, %v6993_v32  ;;  %v7046_v56 = vadd.f32 %v8736_v48, %v7045_v24 }
0x2928   : > { %v6996_v34 = vpop.f32.mrb[182].mxu1  ;;  %v7048_v13 = vpop.f32.mrb[182].mxu0 }
0x2929   : > { %v9730_v37 = vpop.f32.mrb[183].mxu1  ;;  %v9738_v38 = vpop.f32.mrb[183].mxu0  ;;  %v7416_v1 = vmul.f32 0.35355338, %v6994_v55  ;;  %v7417_v2 = vmul.f32 0.35355338, %v7046_v56 }
0x292a   : > { %v10196_v34 = vld [vmem:[%s10656_s15] ss:$0 sm:$0xff]  ;;  %s1225_s15 = scalar_lea.vmem [#allocation2], %s8428_s28  ;;  %s10201_s28 = sshll.u32 %s10305_s0, 4  ;;  %s10202_s28 = int_to_ptr.vmem [resolvable:$false] %s10201_s28 }
0x292b   : > { %v7420_v10 = vpack.c.bf16 %v7416_v1, %v7416_v1  ;;  %v7421_v54 = vpack.c.bf16 %v7417_v2, %v7417_v2  ;;  %s8304_s3 = sshll.u32 %s1225_s15, 4  ;;  %s11648_s3 = int_to_ptr.vmem [resolvable:$true] %s8304_s3 }
0x292c   : > { %s10197_s10 = scalar_lea.vmem %s11648_s3, 128  ;;  %p10204_p0 = scmp.lt.s32.totalorder %s11648_s3, %s10202_s28 }
0x292d   : > { %p10198_p11 = scmp.ne.s32.totalorder %s11648_s3, %s10197_s10 }
0x292e   : > { %v7097_v23 = vpop.f32.mrb[184].mxu1  ;;  %v7149_v50 = vpop.f32.mrb[184].mxu0 }
0x292f   : > { %v9745_v39 = vpop.f32.mrb[185].mxu1  ;;  %v9753_v42 = vpop.f32.mrb[185].mxu0  ;;  %v7098_v15 = vadd.f32 %v8737_v4, %v7097_v23  ;;  %v7150_v16 = vadd.f32 %v8738_v45, %v7149_v50  ;;  %p10199_p12 = pnand %p10198_p11, %p10554_p5 }
0x2930   : > { %v7100_v43 = vpop.f32.mrb[186].mxu1  ;;  %v7152_v40 = vpop.f32.mrb[186].mxu0 }
0x2931   : > { %v9746_v30 = vpop.f32.mrb[187].mxu1  ;;  %v9754_v11 = vpop.f32.mrb[187].mxu0  ;;  %v7418_v28 = vmul.f32 0.35355338, %v7098_v15  ;;  %v7419_v31 = vmul.f32 0.35355338, %v7150_v16  ;;  %p10200_p13 = pneg %p10199_p12 }
0x2933   : > { %v7422_v32 = vpack.c.bf16 %v7418_v28, %v7418_v28  ;;  %v7423_v24 = vpack.c.bf16 %v7419_v31, %v7419_v31 }
0x2936   : > { %v7247_v29 = vpop.f32.mrb[188].mxu1  ;;  %v7299_v44 = vpop.f32.mrb[188].mxu0 }
0x2937   : > { %v7248_v27 = vadd.f32 %v8771_v19, %v7247_v29  ;;  %v7300_v35 = vadd.f32 %v8772_v36, %v7299_v44  ;;  %v9761_v3 = vpop.f32.mrb[189].mxu1  ;;  %v9769_v53 = vpop.f32.mrb[189].mxu0 }
0x2938   : > { %v7250_v58 = vpop.f32.mrb[190].mxu1  ;;  %v7302_v59 = vpop.f32.mrb[190].mxu0 }
0x2939   : > { %v11518_v49 = vpack.c.bf16 %v7248_v27, %v7248_v27  ;;  %v11520_v25 = vpack.c.bf16 %v7300_v35, %v7300_v35  ;;  %v9762_v60 = vpop.f32.mrb[191].mxu1  ;;  %v9770_v61 = vpop.f32.mrb[191].mxu0 }
0x293b   : > { %v7432_v62 = vsel %vm1561_vm4, %v11518_v49, 0  ;;  %v7478_v22 = vsel %vm1561_vm4, %v11520_v25, 0 }
0x293c   : > { %9788 = vmatpush3.bf16.xpose.msra.mxu1 %v7432_v62  ;;  %9794 = vmatpush3.bf16.xpose.msra.mxu0 %v7478_v22 }
0x293d   : > { %9799 = vmatprep.subr.bf16.mxu1 %v10301_v9  ;;  %9805 = vmatprep.subr.bf16.mxu0 %v10301_v9 }
0x293e   : > { %v7351_v5 = vpop.f32.mrb[192].mxu1  ;;  %v7403_v46 = vpop.f32.mrb[192].mxu0 }
0x293f   : > { %v7352_v6 = vadd.f32 %v8773_v63, %v7351_v5  ;;  %v7404_v8 = vadd.f32 %v8774_v51, %v7403_v46  ;;  %v9777_v7 = vpop.f32.mrb[193].mxu1  ;;  %v9785_v57 = vpop.f32.mrb[193].mxu0 }
0x2940   : > { %v7354_v12 = vpop.f32.mrb[194].mxu1  ;;  %v7406_v14 = vpop.f32.mrb[194].mxu0 }
0x2941   : > { %v11532_v17 = vpack.c.bf16 %v7352_v6, %v7352_v6  ;;  %v11534_v18 = vpack.c.bf16 %v7404_v8, %v7404_v8  ;;  %v9778_v20 = vpop.f32.mrb[195].mxu1  ;;  %v9786_v21 = vpop.f32.mrb[195].mxu0 }
0x2943   : > { %v7524_v0 = vsel %vm1561_vm4, %v11532_v17, 0  ;;  %v7570_v26 = vsel %vm1561_vm4, %v11534_v18, 0  ;;  %9790 = vmatmul.mubr.msk.bf16.vlgmr.msra.gmra.mrb[196].mxu1 %vm1561_vm4, %v7420_v10  ;;  %9796 = vmatmul.mubr.msk.bf16.vlgmr.msra.gmra.mrb[196].mxu0 %vm1561_vm4, %v7421_v54 }
0x2944   : > { %9800 = vmatpush3.bf16.xpose.msra.mxu1 %v7524_v0  ;;  %9806 = vmatpush3.bf16.xpose.msra.mxu0 %v7570_v26 }
0x2945   : > { %9801 = vmatprep.mubr.msk.bf16.mxu1 %vm10302_vm1, %v10301_v9  ;;  %9807 = vmatprep.mubr.msk.bf16.mxu0 %vm10302_vm1, %v10301_v9 }
0x2946   : > { %9811 = vmatprep.subr.bf16.mxu1 %v10301_v9  ;;  %9817 = vmatprep.subr.bf16.mxu0 %v10301_v9 }
0x294b   : > { %9802 = vmatmul.mubr.msk.bf16.vlgmr.msra.gmra.mrb[200].mxu1 %vm1561_vm4, %v7422_v32  ;;  %9808 = vmatmul.mubr.msk.bf16.vlgmr.msra.gmra.mrb[200].mxu0 %vm1561_vm4, %v7423_v24 }
0x294c   : > { %9813 = vmatprep.mubr.msk.bf16.mxu1 %vm10302_vm1, %v10301_v9  ;;  %9819 = vmatprep.mubr.msk.bf16.mxu0 %vm10302_vm1, %v10301_v9 }
0x2a16   : > { %v7468_v41 = vpop.f32.mrb[196].mxu1  ;;  %v7514_v33 = vpop.f32.mrb[196].mxu0 }
0x2a17   : > { %v7469_v13 = vadd.f32 %v10196_v34, %v7468_v41  ;;  %v7515_v37 = vadd.f32 %v10196_v34, %v7514_v33  ;;  %v9791_v38 = vpop.f32.mrb[197].mxu1  ;;  %v9797_v23 = vpop.f32.mrb[197].mxu0 }
0x2a18   : > { %v7471_v50 = vpop.f32.mrb[198].mxu1  ;;  %v7517_v39 = vpop.f32.mrb[198].mxu0  ;;  %v8787_v38 = vld [vmem:[%s11819_s25 + $0x10] sm:$0xf] }
0x2a19   : > { %v9792_v42 = vpop.f32.mrb[199].mxu1  ;;  %v9798_v43 = vpop.f32.mrb[199].mxu0  ;;  %v7615_v40 = vsel %vm1561_vm4, %v7515_v37, -inf  ;;  %v7612_v30 = vsel %vm1561_vm4, %v7469_v13, -inf }
0x2a1a   : > { %7616 = vmax.xlane.f32.xlu1 %v7615_v40  ;;  %7613 = vmax.xlane.f32.xlu0 %v7612_v30  ;;  %v7864_v43 = vsel %vm1808_vm5, %v8787_v38, 0  ;;  %v8790_v40 = vld [vmem:[%s11819_s25 + $0x1c] sm:$0xf]  ;;  %v8789_v30 = vld [vmem:[%s11819_s25 + $0x18] sm:$0xf]  ;;  %v10044_v38 = vld [vmem:[%s11821_s30 + $0x10] sm:$0xff]  }
0x2a1e   : > { %v7560_v11 = vpop.f32.mrb[200].mxu1  ;;  %v7606_v19 = vpop.f32.mrb[200].mxu0 }
0x2a1f   : > { %v7561_v36 = vadd.f32 %v10196_v34, %v7560_v11  ;;  %v7607_v47 = vadd.f32 %v10196_v34, %v7606_v19  ;;  %v9803_v48 = vpop.f32.mrb[201].mxu1  ;;  %v9809_v29 = vpop.f32.mrb[201].mxu0  ;;  %v8788_v34 = vld [vmem:[%s11819_s25 + $0x14] sm:$0xf] }
0x2a20   : > { %v7563_v44 = vpop.f32.mrb[202].mxu1  ;;  %v7609_v27 = vpop.f32.mrb[202].mxu0  ;;  %v7910_v39 = vsel %vm1808_vm5, %v8788_v34, 0  ;;  %v8002_v48 = vsel %vm1808_vm5, %v8790_v40, 0 }
0x2a21   : > { %v9804_v35 = vpop.f32.mrb[203].mxu1  ;;  %v9810_v3 = vpop.f32.mrb[203].mxu0  ;;  %v7621_v53 = vsel %vm1561_vm4, %v7607_v47, -inf  ;;  %v7618_v55 = vsel %vm1561_vm4, %v7561_v36, -inf }
0x2a22   : > { %7622 = vmax.xlane.f32.xlu1 %v7621_v53  ;;  %7619 = vmax.xlane.f32.xlu0 %v7618_v55  ;;  %v7956_v35 = vsel %vm1808_vm5, %v8789_v30, 0 }
0x2a33   : > { %7710 = vrot.lane.b32.xlu1 %v11520_v25, %s11806_s5 }
0x2a38   : > { %7661 = vrot.lane.b32.xlu0 %v11518_v49, %s11806_s5 }
0x2aa7   : > { %v7617_v56 = vpop.xlane.xlu1 %7616  ;;  %v7614_v58 = vpop.xlane.xlu0 %7613 }
0x2aa8   : > { %v7625_v59 = vsub.f32 %v7515_v37, %v7617_v56  ;;  %v7624_v60 = vsub.f32 %v7469_v13, %v7614_v58 }
0x2aaa   : > { %v7630_v61 = vmul.f32 1.442695, %v7625_v59  ;;  %v7628_v62 = vmul.f32 1.442695, %v7624_v60 }
0x2aac   : > { %10170 = vpow2.f32 %v7630_v61 }
0x2aad   : > { %10172 = vpow2.f32 %v7628_v62 }
0x2aaf   : > { %v7623_v22 = vpop.xlane.xlu1 %7622  ;;  %v7620_v63 = vpop.xlane.xlu0 %7619 }
0x2ab0   : > { %v7627_v1 = vsub.f32 %v7607_v47, %v7623_v22  ;;  %v7626_v2 = vsub.f32 %v7561_v36, %v7620_v63 }
0x2ab2   : > { %v7634_v51 = vmul.f32 1.442695, %v7627_v1  ;;  %v7632_v4 = vmul.f32 1.442695, %v7626_v2 }
0x2ab3   : > { %v7711_v45 = vpop.permute.xlu1 %7710  ;;  %v7662_v5 = vpop.permute.xlu0 %7661 }
0x2ab4   : > { %10174 = vpow2.f32 %v7634_v51  ;;  %v7716_v25 = vsel %vm1808_vm5, %v7711_v45, 0  ;;  %v7667_v49 = vsel %vm1808_vm5, %v7662_v5, 0 }
0x2ab5   : > { %10176 = vpow2.f32 %v7632_v4  ;;  %9812 = vmatpush3.bf16.msra.mxu1 %v7667_v49  ;;  %9818 = vmatpush3.bf16.msra.mxu0 %v7716_v25 }
0x2ab6   : > { %v10171_v46 = vpop.eup %10170  ;;  %9823 = vmatprep.subr.bf16.mxu1 %v10301_v9  ;;  %9829 = vmatprep.subr.bf16.mxu0 %v10301_v9 }
0x2ab7   : > { %v10173_v6 = vpop.eup %10172  ;;  %v7639_v8 = vsel %vm1561_vm4, %v10171_v46, 0.0 }
0x2ab8   : > { %7640 = vadd.xlane.f32.xlu1 %v7639_v8  ;;  %v7636_v7 = vsel %vm1561_vm4, %v10173_v6, 0.0 }
0x2ab9   : > { %7637 = vadd.xlane.f32.xlu0 %v7636_v7 }
0x2abe   : > { %v10175_v57 = vpop.eup %10174 }
0x2abf   : > { %v10177_v10 = vpop.eup %10176  ;;  %v7645_v54 = vsel %vm1561_vm4, %v10175_v57, 0.0 }
0x2ac0   : > { %7646 = vadd.xlane.f32.xlu1 %v7645_v54  ;;  %v7642_v12 = vsel %vm1561_vm4, %v10177_v10, 0.0 }
0x2ac1   : > { %7643 = vadd.xlane.f32.xlu0 %v7642_v12 }
0x2ad1   : > { %7759 = vrot.lane.b32.xlu1 %v11532_v17, %s11806_s5 }
0x2ad7   : > { %7808 = vrot.lane.b32.xlu0 %v11534_v18, %s11806_s5  ;;  %s11831_s5 = sld [smem:[#allocation44_spill]] }
0x2add   : > { %s11646_s4 = scalar_lea.hbm %s11831_s5, %s8836_s7 }
0x2b45   : > { %v7641_v14 = vpop.xlane.xlu1 %7640 }
0x2b46   : > { %10178 = vrcp.f32 %v7641_v14  ;;  %v7638_v15 = vpop.xlane.xlu0 %7637 }
0x2b47   : > { %10180 = vrcp.f32 %v7638_v15 }
0x2b4d   : > { %v7647_v16 = vpop.xlane.xlu1 %7646 }
0x2b4e   : > { %10182 = vrcp.f32 %v7647_v16  ;;  %v7644_v20 = vpop.xlane.xlu0 %7643 }
0x2b4f   : > { %10184 = vrcp.f32 %v7644_v20 }
0x2b50   : > { %v10179_v21 = vpop.eup %10178 }
0x2b51   : > { %v10181_v0 = vpop.eup %10180  ;;  %v7653_v26 = vmul.f32 %v10179_v21, %v10171_v46  ;;  %v7760_v32 = vpop.permute.xlu1 %7759 }
0x2b52   : > { %v7652_v28 = vmul.f32 %v10181_v0, %v10173_v6  ;;  %v7809_v31 = vpop.permute.xlu0 %7808  ;;  %v7765_v41 = vsel %vm1808_vm5, %v7760_v32, 0 }
0x2b53   : > { %v7657_v17 = vpack.c.bf16 %v7653_v26, %v7653_v26  ;;  %v7814_v18 = vsel %vm1808_vm5, %v7809_v31, 0  ;;  %v8804_v26 = vld [vmem:[%s11820_s29 + $0x1] ss:$0 sm:$0xff] }
0x2b54   : > { %v7656_v24 = vpack.c.bf16 %v7652_v28, %v7652_v28 }
0x2b55   : > { %9820 = vmatmul.mubr.msk.bf16.vlgmr.msra.gmra.mrb[204].mxu0 %vm1561_vm4, %v7657_v17 }
0x2b56   : > { %9814 = vmatmul.mubr.msk.bf16.vlgmr.msra.gmra.mrb[204].mxu1 %vm1561_vm4, %v7656_v24  ;;  %9830 = vmatpush3.bf16.msra.mxu0 %v7814_v18 }
0x2b57   : > { %9824 = vmatpush3.bf16.msra.mxu1 %v7765_v41  ;;  %9825 = vmatprep.mubr.msk.bf16.mxu1 %vm10302_vm1, %v10301_v9 }
0x2b58   : > { %v10183_v33 = vpop.eup %10182  ;;  %9831 = vmatprep.mubr.msk.bf16.mxu0 %vm10302_vm1, %v10301_v9  ;;  %9835 = vmatprep.subr.bf16.mxu1 %v10301_v9 }
0x2b59   : > { %v10185_v13 = vpop.eup %10184  ;;  %v7655_v37 = vmul.f32 %v10183_v33, %v10175_v57  ;;  %9841 = vmatprep.subr.bf16.mxu0 %v10301_v9 }
0x2b5a   : > { %v7654_v23 = vmul.f32 %v10185_v13, %v10177_v10 }
0x2b5b   : > { %v7659_v50 = vpack.c.bf16 %v7655_v37, %v7655_v37 }
0x2b5c   : > { %v7658_v42 = vpack.c.bf16 %v7654_v23, %v7654_v23  ;;  %v10045_v23 = vld [vmem:[%s11821_s30 + $0x18] sm:$0xff]  }
0x2b5d   : > { %9832 = vmatmul.mubr.msk.bf16.vlgmr.msra.gmra.mrb[208].mxu0 %vm1561_vm4, %v7659_v50  ;;  %v10046_v50 = vld [vmem:[%s11822_s18 + $0x20] sm:$0xff]  }
0x2b5e   : > { %9826 = vmatmul.mubr.msk.bf16.vlgmr.msra.gmra.mrb[208].mxu1 %vm1561_vm4, %v7658_v42  ;;  %9842 = vmatpush3.bf16.msra.mxu0 %v7910_v39 }
0x2b5f   : > { %9836 = vmatpush3.bf16.msra.mxu1 %v7864_v43  ;;  %9837 = vmatprep.mubr.msk.bf16.mxu1 %vm10302_vm1, %v10301_v9 }
0x2b60   : > { %9843 = vmatprep.mubr.msk.bf16.mxu0 %vm10302_vm1, %v10301_v9  ;;  %9847 = vmatprep.subr.bf16.mxu1 %v10301_v9 }
0x2b61   : > { %9853 = vmatprep.subr.bf16.mxu0 %v10301_v9 }
0x2c28   : > { %v7752_v11 = vpop.f32.mrb[204].mxu0 }
0x2c29   : > { %v7703_v19 = vpop.f32.mrb[204].mxu1  ;;  %v7857_v36 = vpack.c.bf16 %v7752_v11, %v7752_v11  ;;  %v9821_v47 = vpop.f32.mrb[205].mxu0 }
0x2c2a   : > { %v7856_v29 = vpack.c.bf16 %v7703_v19, %v7703_v19  ;;  %v9815_v44 = vpop.f32.mrb[205].mxu1  ;;  %v7755_v27 = vpop.f32.mrb[206].mxu0  ;;  %v8821_v47 = vld [vmem:[%s11824_s11 + $0x1] ss:$0 sm:$0xff] }
0x2c2b   : > { %v7706_v3 = vpop.f32.mrb[206].mxu1  ;;  %v9822_v53 = vpop.f32.mrb[207].mxu0  ;;  %9844 = vmatmul.mubr.msk.bf16.vlgmr.msra.gmra.mrb[212].mxu0 %vm1561_vm4, %v7857_v36  ;;  %v8822_v44 = vld [vmem:[%s11825_s23 + $0x1] ss:$0 sm:$0xff] }
0x2c2c   : > { %v9816_v55 = vpop.f32.mrb[207].mxu1  ;;  %9838 = vmatmul.mubr.msk.bf16.vlgmr.msra.gmra.mrb[212].mxu1 %vm1561_vm4, %v7856_v29  ;;  %9854 = vmatpush3.bf16.msra.mxu0 %v8002_v48  ;;  %v10048_v53 = vld [vmem:[%s11822_s18 + $0x30] sm:$0xff]  }
0x2c2d   : > { %9848 = vmatpush3.bf16.msra.mxu1 %v7956_v35  ;;  %9849 = vmatprep.mubr.msk.bf16.mxu1 %vm10302_vm1, %v10301_v9  ;;  %v10049_v55 = vld [vmem:[%s11822_s18 + $0x38] sm:$0xff]  }
0x2c2e   : > { %9855 = vmatprep.mubr.msk.bf16.mxu0 %vm10302_vm1, %v10301_v9  ;;  %9859 = vmatprep.subr.bf16.mxu1 %v10301_v9 }
0x2c2f   : > { %9867 = vmatprep.subr.bf16.mxu0 %v10301_v9 }
0x2c30   : > { %v7850_v56 = vpop.f32.mrb[208].mxu0 }
0x2c31   : > { %v7801_v58 = vpop.f32.mrb[208].mxu1  ;;  %v7859_v59 = vpack.c.bf16 %v7850_v56, %v7850_v56  ;;  %v9833_v60 = vpop.f32.mrb[209].mxu0  ;;  %v8823_v56 = vld [vmem:[%s11827_s22 + $0x1] ss:$0 sm:$0xff] }
0x2c32   : > { %v7858_v61 = vpack.c.bf16 %v7801_v58, %v7801_v58  ;;  %v9827_v62 = vpop.f32.mrb[209].mxu1  ;;  %v7853_v22 = vpop.f32.mrb[210].mxu0 }
0x2c33   : > { %v7804_v63 = vpop.f32.mrb[210].mxu1  ;;  %v9834_v1 = vpop.f32.mrb[211].mxu0  ;;  %9856 = vmatmul.mubr.msk.bf16.vlgmr.msra.gmra.mrb[216].mxu0 %vm1561_vm4, %v7859_v59 }
0x2c34   : > { %v9828_v2 = vpop.f32.mrb[211].mxu1  ;;  %9850 = vmatmul.mubr.msk.bf16.vlgmr.msra.gmra.mrb[216].mxu1 %vm1561_vm4, %v7858_v61  ;;  %9875 = vmatprep.mubr.msk.bf16.mxu0 %vm10302_vm1, %v10301_v9  ;;  %v8827_v1 = vld [vmem:[%s11829_s27 + $0x1] ss:$0 sm:$0xff] }
0x2c35   : > { %9863 = vmatprep.mubr.msk.bf16.mxu1 %vm10302_vm1, %v10301_v9  ;;  %9860 = vmatpush3.bf16.msra.mxu1 %v10044_v38 }
0x2c36   : > { %9861 = vmatprep.subr.bf16.mxu1 %v10301_v9  ;;  %9868 = vmatpush3.bf16.msra.mxu0 %v10046_v50 }
0x2c37   : > { %9869 = vmatprep.subr.bf16.mxu0 %v10301_v9 }
0x2c39   : > { %9862 = vmatpush3.bf16.msra.mxu1 %v10045_v23 }
0x2cfe   : > { %v7946_v51 = vpop.f32.mrb[212].mxu0 }
0x2cff   : > { %v7900_v4 = vpop.f32.mrb[212].mxu1  ;;  %v8045_v45 = vsel %vm1243_vm0, %v7946_v51, 0.0  ;;  %v9845_v5 = vpop.f32.mrb[213].mxu0 }
0x2d00   : > { %v8044_v25 = vsel %vm1243_vm0, %v7900_v4, 0.0  ;;  %v9839_v49 = vpop.f32.mrb[213].mxu1  ;;  %v7949_v46 = vpop.f32.mrb[214].mxu0 }
0x2d01   : > { %v8046_v6 = vadd.f32 %v8045_v45, %v8044_v25  ;;  %v7903_v8 = vpop.f32.mrb[214].mxu1  ;;  %v9846_v7 = vpop.f32.mrb[215].mxu0 }
0x2d02   : > { %v9840_v57 = vpop.f32.mrb[215].mxu1 }
0x2d06   : > { %v8038_v10 = vpop.f32.mrb[216].mxu0 }
0x2d07   : > { %v7992_v54 = vpop.f32.mrb[216].mxu1  ;;  %v9857_v12 = vpop.f32.mrb[217].mxu0  ;;  %v8049_v28 = vsel %vm1243_vm0, %v8038_v10, 0.0 }
0x2d08   : > { %v8047_v14 = vsel %vm1243_vm0, %v7992_v54, 0.0  ;;  %v9851_v15 = vpop.f32.mrb[217].mxu1  ;;  %v8041_v16 = vpop.f32.mrb[218].mxu0 }
0x2d09   : > { %v8048_v20 = vadd.f32 %v8047_v14, %v8046_v6  ;;  %v7995_v21 = vpop.f32.mrb[218].mxu1  ;;  %v9858_v0 = vpop.f32.mrb[219].mxu0 }
0x2d0a   : > { %v9852_v31 = vpop.f32.mrb[219].mxu1  ;;  %v8833_v21 = vld [vmem:[%s10504_s17] ss:$0 sm:$0xff] }
0x2d0b   : > { %v8050_v32 = vadd.f32 %v8049_v28, %v8048_v20  ;;  %v8834_v28 = vld [vmem:[%s11830_s9] ss:$0 sm:$0xff]  ;;  %s10203_s9 = scalar_lea.vmem %s10202_s28, 256 }
0x2d0c   : > { %p10205_p1 = scmp.lt.s32.totalorder %s10203_s9, %s10197_s10 }
0x2d0d   : > { %v8057_v17 = vadd.f32 %v8804_v26, %v8050_v32 }
0x2d0e   : > { %p10206_p2 = por %p10205_p1, %p10204_p0 }
0x2d0f   : > { %v8058_v24 = vadd.f32 %v8057_v17, %v11446_v52  ;;  %v10047_v52 = vld [vmem:[%s11822_s18 + $0x28] sm:$0xff]  }
0x2d10   : > { %9870 = vmatpush3.bf16.msra.mxu0 %v10047_v52  ;;  %p10207_p3 = pnand %p10206_p2, %p10200_p13 }
0x2d11   : > { %v8081_v18 = vsel %vm1243_vm0, %v8058_v24, 0.0  ;;  %9871 = vmatprep.subr.bf16.mxu0 %v10301_v9 }
0x2d12   : > { %8082 = vadd.xlane.f32.xlu1 %v8081_v18 }
0x2d14   : > { %9872 = vmatpush3.bf16.msra.mxu0 %v10048_v53 }
0x2d15   : > { %9873 = vmatprep.subr.bf16.mxu0 %v10301_v9 }
0x2d18   : > { %9874 = vmatpush3.bf16.msra.mxu0 %v10049_v55 }
0x2d9f   : > { %v8083_v41 = vpop.xlane.xlu1 %8082 }
0x2da0   : > { %v8084_v33 = vmul.f32 0.03125, %v8083_v41 }
0x2da2   : > { %v8085_v34 = vsub.f32 %v8058_v24, %v8084_v33 }
0x2da4   : > { %v8086_v13 = vmul.f32 %v8085_v34, %v8085_v34  ;;  %v8097_v48 = vmul.f32 %v8821_v47, %v8085_v34 }
0x2da6   : > { %v8087_v37 = vsel %vm1243_vm0, %v8086_v13, 0.0 }
0x2da7   : > { %8088 = vadd.xlane.f32.xlu0 %v8087_v37 }
0x2e34   : > { %v8089_v39 = vpop.xlane.xlu0 %8088 }
0x2e35   : > { %v8090_v42 = vmul.f32 0.032258064, %v8089_v39 }
0x2e37   : > { %10186 = vrsqrt.f32 %v8090_v42  ;;  %vm8100_vm1 = vcmp.eq.f32.partialorder %v8090_v42, inf  ;;  %v8103_v30 = vand.u32 2147483648, %v8090_v42  ;;  %vm8102_vm4 = vcmp.eq.f32.partialorder %v8090_v42, 0.0 }
0x2e41   : > { %v10187_v43 = vpop.eup %10186 }
0x2e42   : > { %v8099_v40 = vmul.f32 %v10187_v43, %v8090_v42 }
0x2e44   : > { %v8101_v11 = vsel %vm8100_vm1, %v8090_v42, %v8099_v40 }
0x2e45   : > { %v8104_v19 = vsel %vm8102_vm4, %v8103_v30, %v8101_v11 }
0x2e46   : > { %v8105_v36 = vadd.f32 1e-06, %v8104_v19 }
0x2e48   : > { %10188 = vrcp.f32 %v8105_v36 }
0x2e52   : > { %v10189_v29 = vpop.eup %10188 }
0x2e53   : > { %v8107_v27 = vmul.f32 %v10189_v29, %v8097_v48 }
0x2e55   : > { %v8114_v35 = vadd.f32 %v8822_v44, %v8107_v27 }
0x2e57   : > { %v8115_v3 = vpack.c.bf16 %v8114_v35, %v8114_v35 }
0x2e59   : > { %9864 = vmatmul.mubr.msk.bf16.vlgmr.msra.gmra.mrb[220].mxu1 %vm1243_vm0, %v8115_v3 }
0x2f2c   : > { %v8171_v58 = vpop.f32.mrb[220].mxu1 }
0x2f2d   : > { %v8172_v59 = vadd.f32 %v8823_v56, %v8171_v58  ;;  %v9865_v60 = vpop.f32.mrb[221].mxu1 }
0x2f2e   : > { %v8174_v61 = vpop.f32.mrb[222].mxu1 }
0x2f2f   : > { %v8177_v62 = vmax.f32 %v8172_v59, 0.0  ;;  %v9866_v22 = vpop.f32.mrb[223].mxu1 }
0x2f31   : > { %v8178_v63 = vpack.c.bf16 %v8177_v62, %v8177_v62 }
0x2f33   : > { %9876 = vmatmul.mubr.msk.bf16.vlgmr.msra.gmra.mrb[220].mxu0 %vm2343_vm8, %v8178_v63 }
0x3006   : > { %v8246_v2 = vpop.f32.mrb[220].mxu0 }
0x3007   : > { %v8247_v51 = vadd.f32 %v8827_v1, %v8246_v2  ;;  %v9877_v4 = vpop.f32.mrb[221].mxu0 }
0x3008   : > { %v8249_v45 = vpop.f32.mrb[222].mxu0 }
0x3009   : > { %v8252_v5 = vadd.f32 %v8247_v51, %v8058_v24  ;;  %v9878_v25 = vpop.f32.mrb[223].mxu0 }
0x300b   : > { %v8255_v9 = vsel %vm1243_vm0, %v8252_v5, 0.0 }
0x300c   : > { %8256 = vadd.xlane.f32.xlu0 %v8255_v9 }
0x3099   : > { %v8257_v49 = vpop.xlane.xlu0 %8256 }
0x309a   : > { %v8258_v46 = vmul.f32 0.03125, %v8257_v49 }
0x309c   : > { %v8259_v6 = vsub.f32 %v8252_v5, %v8258_v46 }
0x309e   : > { %v8260_v8 = vmul.f32 %v8259_v6, %v8259_v6  ;;  %v8271_v0 = vmul.f32 %v8833_v21, %v8259_v6 }
0x30a0   : > { %v8261_v7 = vsel %vm1243_vm0, %v8260_v8, 0.0 }
0x30a1   : > { %8262 = vadd.xlane.f32.xlu1 %v8261_v7 }
0x312e   : > { %v8263_v57 = vpop.xlane.xlu1 %8262 }
0x312f   : > { %v8264_v10 = vmul.f32 0.032258064, %v8263_v57 }
0x3131   : > { %10190 = vrsqrt.f32 %v8264_v10  ;;  %vm8274_vm5 = vcmp.eq.f32.partialorder %v8264_v10, inf  ;;  %v8277_v14 = vand.u32 2147483648, %v8264_v10  ;;  %vm8276_vm8 = vcmp.eq.f32.partialorder %v8264_v10, 0.0 }
0x313b   : > { %v10191_v54 = vpop.eup %10190 }
0x313c   : > { %v8273_v12 = vmul.f32 %v10191_v54, %v8264_v10 }
0x313e   : > { %v8275_v15 = vsel %vm8274_vm5, %v8264_v10, %v8273_v12 }
0x313f   : > { %v8278_v16 = vsel %vm8276_vm8, %v8277_v14, %v8275_v15 }
0x3140   : > { %v8279_v20 = vadd.f32 1e-06, %v8278_v16 }
0x3142   : > { %10192 = vrcp.f32 %v8279_v20 }
0x314c   : > { %v10193_v26 = vpop.eup %10192 }
0x314d   : > { %v8281_v31 = vmul.f32 %v10193_v26, %v8271_v0 }
0x314f   : > { %v8288_v32 = vadd.f32 %v8834_v28, %v8281_v31 }
0x3151   : > { %8289 = vst.msk [vmem:[%s1225_s15] sm:$0xff] %vm1243_vm0, %v8288_v32 }
0x3152   : > { %10210 = shalt.err (!%p10207_p3)
}
0x3153   : > { %s10211_s8 = scalar_lea.hbm %s11646_s4, 128  ;;  %s10215_s7 = scalar_lea.hbm %s11831_s5, 256 }
0x3154   : > { %p10212_p4 = scmp.ne.s32.totalorder %s11646_s4, %s10211_s8  ;;  %p10216_p9 = scmp.lt.u32.totalorder %s11646_s4, %s11831_s5 }
0x3155   : > { %p10217_p10 = scmp.lt.u32.totalorder %s10215_s7, %s10211_s8  ;;  %p10219_p12 = scmp.lt.u32.totalorder %s10211_s8, %s11646_s4 }
0x3156   : > { %p10213_p7 = pnand %p10212_p4, %p10554_p5 }
0x3157   : > { %p10218_p11 = por %p10217_p10, %p10216_p9 }
0x3158   : > { %p10214_p8 = pneg %p10213_p7 }
0x3159   : > { %p10220_p0 = por %p10219_p12, %p10218_p11 }
0x315b   : > { %p10221_p13 = pnand %p10220_p0, %p10214_p8 }
0x315d   : > { %10224 = shalt.err (!%p10221_p13)
}
0x315e   : > { %9879 = dma.vmem_to_hbm [thread:$0]  (%p10554_p5), %s11648_s3, 128, %s11646_s4, %s8291_s6  }
0x315f PF: > { %s11833_s9 = sld [smem:[#allocation47_spill]]  ;;  %s11834_s10 = sld [smem:[#allocation45_spill]] }
0x3165   : > { %p9885_p1 = scmp.ge.s32.totalorder %s11833_s9, 2  ;;  %s8316_s0 = sand.u32 1, %s11834_s10  }
0x3166   : > { %s8317_s28 = scalar_lea.sflag [#allocation3], %s8316_s0 }
0x3167   : > { %p9882_p2 = pnand %p9885_p1, %p10558_p6 }
0x3169   : > { %10242 = dma.done.wait (!%p9882_p2), %s8317_s28, 128  }
0x316a   : > { %10244 = vsyncadd (!%p9882_p2), %s8317_s28, 4294967168  ;;  %s11836_s7 = sld [smem:[#allocation48_spill]]  ;;  %s11837_s8 = sld [smem:[#allocation46_spill]] }
0x316b   : > { %s11838_s2 = sld [smem:[#allocation49_spill]]  ;;  %s11839_s28 = smov %s10251_s1 }
0x3170   : > { %p91_p3 = scmp.ge.s32.totalorder %s11836_s7, 4   ;;  %s11840_s1 = smov %s11837_s8 }
0x3172   :  { %93 = sbr.rel (!%p91_p3) target bundleno = 99 (0x63), region = 293 }
0x3179   :  { %8322 = vsyncpa [#allocation3], 1 }
0x317a   :  { %8324 = vsyncpa [#allocation3 + $0x1], 1 }

</bundles_post_ra>
